<compile_context>
chip_gen: v6e
topology: v6e:2x2x1
jax: 0.10.0
libtpu: 0.0.40
codegen_flags: <defaults>
</compile_context>

<pallas_src>
import jax
import jax.numpy as jnp
from jax import lax
from jax.experimental import pallas as pl
from jax.experimental.pallas import tpu as pltpu

_EPS = 1e-5


def _make_kernel(stride, H, W, Ho, Wo, Cin, Cmid, Cout, has_proj, chunks):
    """Builds the fused BasicBlock kernel (one image per grid step)."""

    def kernel(*refs):
        if has_proj:
            (x_ref, w1_ref, b1_ref, w2_ref, b2_ref, wsc_ref, bsc_ref,
             out_ref, xpad_ref, mid_ref) = refs
        else:
            (x_ref, w1_ref, b1_ref, w2_ref, b2_ref,
             out_ref, xpad_ref, mid_ref) = refs

        def zero_border(ref, h, w):
            hp, wp, c = ref.shape
            ref[0:1, :, :] = jnp.zeros((1, wp, c), jnp.float32)
            # bottom border (+ any stride spill rows of the allocation)
            ref[h + 1:hp, :, :] = jnp.zeros((hp - h - 1, wp, c), jnp.float32)
            zcol = jnp.zeros((hp, 1, c), jnp.float32)
            ref[:, 0:1, :] = zcol
            ref[:, w + 1:w + 2, :] = zcol

        # Stage 0: zero only the 1-px borders of both padded scratches, then
        # copy the image into the interior (interiors are rewritten each step).
        zero_border(xpad_ref, H, W)
        zero_border(mid_ref, Ho, Wo)
        xpad_ref[1:H + 1, 1:W + 1, :] = x_ref[0].astype(jnp.float32)

        def conv3x3_s1(src_ref, w_ref, r0, cur, acc):
            # 3x3 stride-1 conv over `cur` output rows as 3 MXU matmuls: the
            # 3 dx taps of each kernel row are fused into K (= 3*C).
            for dy in range(3):
                slab = src_ref[r0 + dy:r0 + dy + cur, :, :].astype(jnp.bfloat16)
                patch = jnp.concatenate(
                    [slab[:, dx:dx + Wo, :] for dx in range(3)], axis=-1)
                acc = acc + jnp.dot(patch.reshape(cur * Wo, -1), w_ref[dy],
                                    preferred_element_type=jnp.float32)
            return acc

        if stride == 1:
            def conv1_chunk(r0, cur, acc):
                return conv3x3_s1(xpad_ref, w1_ref, r0, cur, acc)

            def shortcut_patch(r0, cur):
                return xpad_ref[1 + r0:1 + r0 + cur, 1:1 + Wo, :]
        else:
            # Strided conv1 / shortcut: sublane-strided ref reads select the
            # dx (resp. center) columns; the contiguous row band is decimated
            # with a leading-dim reshape.  Everything is per-chunk, so no
            # whole-image value stays live across the unrolled chunk loops.
            def _dec_rows(band, cur):
                return band.reshape(cur, stride, Wo, -1)[:, 0, :, :]

            def conv1_chunk(r0, cur, acc):
                for dy in range(3):
                    row0 = stride * r0 + dy
                    taps = [
                        _dec_rows(
                            xpad_ref[row0:row0 + stride * cur,
                                     pl.ds(dx, Wo, stride=stride), :], cur)
                        for dx in range(3)]
                    patch = jnp.concatenate(taps, axis=-1).astype(jnp.bfloat16)
                    acc = acc + jnp.dot(patch.reshape(cur * Wo, 3 * Cin),
                                        w1_ref[dy],
                                        preferred_element_type=jnp.float32)
                return acc

            def shortcut_patch(r0, cur):
                band = xpad_ref[1 + stride * r0:1 + stride * (r0 + cur),
                                pl.ds(1, Wo, stride=stride), :]
                return _dec_rows(band, cur)

        # Stage 1: conv1 (+ folded bn1) + relu -> mid interior.  The bias
        # initializes the accumulator (no post-matmul full-width add).
        for r0, cur in chunks:
            acc1 = conv1_chunk(r0, cur, b1_ref[...])
            mid_ref[1 + r0:1 + r0 + cur, 1:1 + Wo, :] = (
                jnp.maximum(acc1, 0.0).reshape(cur, Wo, Cmid))

        # Stage 2: conv2 (+ folded bn2) + shortcut + relu -> out.  Bias and
        # shortcut seed the accumulator, so only one full-width f32 tensor is
        # live across the matmuls of a chunk.
        for r0, cur in chunks:
            if has_proj:
                xs = shortcut_patch(r0, cur).astype(jnp.bfloat16)
                acc0 = jnp.dot(xs.reshape(cur * Wo, Cin), wsc_ref[...],
                               preferred_element_type=jnp.float32)
                acc0 = acc0 + (b2_ref[...] + bsc_ref[...])
            else:
                acc0 = (shortcut_patch(r0, cur).reshape(cur * Wo, Cout)
                        + b2_ref[...])
            acc2 = conv3x3_s1(mid_ref, w2_ref, r0, cur, acc0)
            res = jnp.maximum(acc2, 0.0)
            out_ref[:, r0:r0 + cur, :, :] = res.reshape(1, cur, Wo, Cout)

    return kernel


def _fold_bn(bn):
    scale = bn["gamma"] / jnp.sqrt(bn["var"] + _EPS)
    shift = bn["beta"] - bn["mean"] * scale
    return scale.astype(jnp.float32), shift.reshape(1, -1).astype(jnp.float32)


def basic_block(x_nchw, params, stride=1):
    """Fused BasicBlock forward. x_nchw: (N, Cin, H, W) -> (N, Cout, Ho, Wo) f32."""
    N, Cin, H, W = x_nchw.shape
    w1 = params["conv1_w"]                 # (Cmid, Cin, 3, 3)
    w2 = params["conv2_w"]                 # (Cout, Cmid, 3, 3)
    Cmid, Cout = w1.shape[0], w2.shape[0]
    has_proj = (stride != 1) or (Cin != Cout)

    s1, b1 = _fold_bn(params["bn1"])
    s2, b2 = _fold_bn(params["bn2"])

    # NCHW -> NHWC bf16 (halves the input DMA; MXU-ready operand dtype).
    x = jnp.transpose(x_nchw, (0, 2, 3, 1)).astype(jnp.bfloat16)
    Ho = (H - 1) // stride + 1
    Wo = (W - 1) // stride + 1

    # PyTorch OIHW -> (3, 3*Cin, Cout): dy-major, the 3 dx taps fused along
    # the matmul K dimension, BN scale folded into output channels, bf16.
    w1k = (jnp.transpose(w1, (2, 3, 1, 0)).reshape(3, 3 * Cin, Cmid)
           * s1[None, None, :]).astype(jnp.bfloat16)
    w2k = (jnp.transpose(w2, (2, 3, 1, 0)).reshape(3, 3 * Cmid, Cout)
           * s2[None, None, :]).astype(jnp.bfloat16)

    args = [x, w1k, b1, w2k, b2]
    in_specs = [
        pl.BlockSpec((1, H, W, Cin), lambda n: (n, 0, 0, 0)),
        pl.BlockSpec((3, 3 * Cin, Cmid), lambda n: (0, 0, 0)),
        pl.BlockSpec((1, Cmid), lambda n: (0, 0)),
        pl.BlockSpec((3, 3 * Cmid, Cout), lambda n: (0, 0, 0)),
        pl.BlockSpec((1, Cout), lambda n: (0, 0)),
    ]
    if has_proj:
        ssc, bsc = _fold_bn(params["bn_sc"])
        wsck = (jnp.transpose(params["sc_w"][:, :, 0, 0], (1, 0))
                * ssc[None, :]).astype(jnp.bfloat16)        # (Cin, Cout)
        args += [wsck, bsc]
        in_specs += [
            pl.BlockSpec((Cin, Cout), lambda n: (0, 0)),
            pl.BlockSpec((1, Cout), lambda n: (0, 0)),
        ]

    # Row chunking: keep ALL simultaneously-live chunk values (f32 acc,
    # bf16 fused 3-tap patch, f32 source slab / strided bands, f32 shortcut)
    # comfortably under the 256 KiB vreg file (per review).
    per_row = Wo * (4 * max(Cmid, Cout)                    # f32 accumulator
                    + 6 * max(Cin, Cmid)                   # bf16 fused patch
                    + 4 * max(Cin, Cmid) * (stride + 1)    # f32 slab / bands
                    + 4 * Cout)                            # f32 shortcut
    th = max(1, min(Ho, (192 * 1024) // max(1, per_row)))
    chunks = tuple((r0, min(th, Ho - r0)) for r0 in range(0, Ho, th))

    kernel = _make_kernel(stride, H, W, Ho, Wo, Cin, Cmid, Cout, has_proj, chunks)
    out_nhwc = pl.pallas_call(
        kernel,
        out_shape=jax.ShapeDtypeStruct((N, Ho, Wo, Cout), jnp.float32),
        grid=(N,),
        in_specs=in_specs,
        out_specs=pl.BlockSpec((1, Ho, Wo, Cout), lambda n: (n, 0, 0, 0)),
        scratch_shapes=[
            # f32 padded scratches keep every windowed sublane store 32-bit
            # aligned (guaranteed lowering of odd-offset interior stores).
            # TODO(synk): bf16 scratches with a 16-col-aligned interior.
            pltpu.VMEM((Ho * stride + 2, W + 2, Cin), jnp.float32),   # padded input
            pltpu.VMEM((Ho + 2, Wo + 2, Cmid), jnp.float32),          # padded conv1 out
        ],
        compiler_params=pltpu.CompilerParams(
            dimension_semantics=("parallel",),     # images are independent
            vmem_limit_bytes=32 * 1024 * 1024,     # headroom beyond v5e's 16 MiB default
        ),
    )(*args)
    return jnp.transpose(out_nhwc, (0, 3, 1, 2))


# ---------------- deterministic parameter init (no checkpoints) -------------
def _init_bn(key, c):
    k1, k2, k3, k4 = jax.random.split(key, 4)
    return {
        "gamma": 1.0 + 0.1 * jax.random.normal(k1, (c,), jnp.float32),
        "beta": 0.1 * jax.random.normal(k2, (c,), jnp.float32),
        "mean": 0.05 * jax.random.normal(k3, (c,), jnp.float32),
        "var": 1.0 + 0.1 * jnp.abs(jax.random.normal(k4, (c,), jnp.float32)),
    }


def init_params(key, in_planes, planes, stride):
    ks = jax.random.split(key, 6)
    p = {
        "conv1_w": 0.1 * jax.random.normal(ks[0], (planes, in_planes, 3, 3), jnp.float32),
        "bn1": _init_bn(ks[1], planes),
        "conv2_w": 0.1 * jax.random.normal(ks[2], (planes, planes, 3, 3), jnp.float32),
        "bn2": _init_bn(ks[3], planes),
    }
    if stride != 1 or in_planes != planes:
        p["sc_w"] = 0.1 * jax.random.normal(ks[4], (planes, in_planes, 1, 1), jnp.float32)
        p["bn_sc"] = _init_bn(ks[5], planes)
    return p


# ---------------- pure-JAX reference (for correctness check) ----------------
def basic_block_ref(x, params, stride=1):
    def conv(x, w, s, pad):
        return lax.conv_general_dilated(
            x, w, (s, s), [(pad, pad), (pad, pad)],
            dimension_numbers=("NCHW", "OIHW", "NCHW"))

    def bn(x, p):
        scale = p["gamma"] / jnp.sqrt(p["var"] + _EPS)
        shift = p["beta"] - p["mean"] * scale
        return x * scale[None, :, None, None] + shift[None, :, None, None]

    out = jax.nn.relu(bn(conv(x, params["conv1_w"], stride, 1), params["bn1"]))
    out = bn(conv(out, params["conv2_w"], 1, 1), params["bn2"])
    Cin, Cout = x.shape[1], params["conv2_w"].shape[0]
    if stride != 1 or Cin != Cout:
        sc = bn(conv(x, params["sc_w"], stride, 0), params["bn_sc"])
    else:
        sc = x
    return jax.nn.relu(out + sc)


if __name__ == "__main__":
    key = jax.random.PRNGKey(0)
    kx, kp1, kp2, kp3 = jax.random.split(key, 4)

    # bf16 MXU operands -> compare against the f32 reference with a loosened
    # tolerance.
    ATOL = RTOL = 5e-2

    x = jax.random.normal(kx, (2, 4, 16, 16), jnp.float32)

    # Case 1: identity shortcut (stride=1, in_planes == planes == 4)
    params = init_params(kp1, 4, 4, 1)
    out = basic_block(x, params, stride=1)
    jax.block_until_ready(out)
    ref = basic_block_ref(x, params, 1)
    assert out.shape == (2, 4, 16, 16)
    assert jnp.allclose(out, ref, atol=ATOL, rtol=RTOL), "identity-shortcut mismatch"

    # Case 2: projection shortcut (in_planes=4 -> planes=8, stride=1)
    params2 = init_params(kp2, 4, 8, 1)
    out2 = basic_block(x, params2, stride=1)
    jax.block_until_ready(out2)
    ref2 = basic_block_ref(x, params2, 1)
    assert out2.shape == (2, 8, 16, 16)
    assert jnp.allclose(out2, ref2, atol=ATOL, rtol=RTOL), "projection-shortcut mismatch"

    # Case 3: downsampling projection shortcut (in_planes=4 -> planes=8, stride=2)
    params3 = init_params(kp3, 4, 8, 2)
    out3 = basic_block(x, params3, stride=2)
    jax.block_until_ready(out3)
    ref3 = basic_block_ref(x, params3, 2)
    assert out3.shape == (2, 8, 8, 8)
    assert jnp.allclose(out3, ref3, atol=ATOL, rtol=RTOL), "stride-2 downsample mismatch"

    print("KERNEL_OK")
</pallas_src>

<mosaic_0001>
module attributes {stable_mosaic.version = 11 : i64} {
  func.func @kernel(%arg0: i32, %arg1: memref<1x16x16x4xbf16, #tpu.memory_space<vmem>>, %arg2: memref<3x12x4xbf16, #tpu.memory_space<vmem>>, %arg3: memref<1x4xf32, #tpu.memory_space<vmem>>, %arg4: memref<3x12x4xbf16, #tpu.memory_space<vmem>>, %arg5: memref<1x4xf32, #tpu.memory_space<vmem>>, %arg6: memref<1x16x16x4xf32, #tpu.memory_space<vmem>>, %arg7: memref<18x18x4xf32, #tpu.memory_space<vmem>>, %arg8: memref<18x18x4xf32, #tpu.memory_space<vmem>>) attributes {dimension_semantics = [#tpu.dimension_semantics<parallel>], iteration_bounds = array<i64: 2>, scalar_prefetch = 0 : i64, scratch_operands = 2 : i64, tpu.core_type = #tpu.core_type<tc>, window_params = [{transform_indices = @transform_0, window_bounds = array<i64: 1, 16, 16, 4>}, {pipeline_mode = #tpu.pipeline_mode<synchronous>, transform_indices = @transform_1, window_bounds = array<i64: 3, 12, 4>}, {pipeline_mode = #tpu.pipeline_mode<synchronous>, transform_indices = @transform_2, window_bounds = array<i64: 1, 4>}, {pipeline_mode = #tpu.pipeline_mode<synchronous>, transform_indices = @transform_3, window_bounds = array<i64: 3, 12, 4>}, {pipeline_mode = #tpu.pipeline_mode<synchronous>, transform_indices = @transform_4, window_bounds = array<i64: 1, 4>}, {transform_indices = @transform_5, window_bounds = array<i64: 1, 16, 16, 4>}]} {
    %cst = arith.constant 0.000000e+00 : f32
    %0 = vector.broadcast %cst : f32 to vector<1x18x4xf32>
    %c0 = arith.constant 0 : index
    %c0_0 = arith.constant 0 : index
    %c0_1 = arith.constant 0 : index
    %1 = vector.load %arg7[%c0, %c0_0, %c0_1] : memref<18x18x4xf32, #tpu.memory_space<vmem>>, vector<1x18x4xf32>
    tpu.vector_store %arg7[%c0, %c0_0, %c0_1], %0 {strides = array<i32>} : memref<18x18x4xf32, #tpu.memory_space<vmem>>, vector<1x18x4xf32>,
    %cst_2 = arith.constant 0.000000e+00 : f32
    %2 = vector.broadcast %cst_2 : f32 to vector<1x18x4xf32>
    %c17 = arith.constant 17 : index
    %c0_3 = arith.constant 0 : index
    %c0_4 = arith.constant 0 : index
    %3 = vector.load %arg7[%c17, %c0_3, %c0_4] : memref<18x18x4xf32, #tpu.memory_space<vmem>>, vector<1x18x4xf32>
    tpu.vector_store %arg7[%c17, %c0_3, %c0_4], %2 {strides = array<i32>} : memref<18x18x4xf32, #tpu.memory_space<vmem>>, vector<1x18x4xf32>,
    %cst_5 = arith.constant 0.000000e+00 : f32
    %4 = vector.broadcast %cst_5 : f32 to vector<18x1x4xf32>
    %c0_6 = arith.constant 0 : index
    %c0_7 = arith.constant 0 : index
    %c0_8 = arith.constant 0 : index
    %5 = vector.load %arg7[%c0_6, %c0_7, %c0_8] : memref<18x18x4xf32, #tpu.memory_space<vmem>>, vector<18x1x4xf32>
    tpu.vector_store %arg7[%c0_6, %c0_7, %c0_8], %4 {strides = array<i32>} : memref<18x18x4xf32, #tpu.memory_space<vmem>>, vector<18x1x4xf32>,
    %c0_9 = arith.constant 0 : index
    %c17_10 = arith.constant 17 : index
    %c0_11 = arith.constant 0 : index
    %6 = vector.load %arg7[%c0_9, %c17_10, %c0_11] : memref<18x18x4xf32, #tpu.memory_space<vmem>>, vector<18x1x4xf32>
    tpu.vector_store %arg7[%c0_9, %c17_10, %c0_11], %4 {strides = array<i32>} : memref<18x18x4xf32, #tpu.memory_space<vmem>>, vector<18x1x4xf32>,
    %cst_12 = arith.constant 0.000000e+00 : f32
    %7 = vector.broadcast %cst_12 : f32 to vector<1x18x4xf32>
    %c0_13 = arith.constant 0 : index
    %c0_14 = arith.constant 0 : index
    %c0_15 = arith.constant 0 : index
    %8 = vector.load %arg8[%c0_13, %c0_14, %c0_15] : memref<18x18x4xf32, #tpu.memory_space<vmem>>, vector<1x18x4xf32>
    tpu.vector_store %arg8[%c0_13, %c0_14, %c0_15], %7 {strides = array<i32>} : memref<18x18x4xf32, #tpu.memory_space<vmem>>, vector<1x18x4xf32>,
    %cst_16 = arith.constant 0.000000e+00 : f32
    %9 = vector.broadcast %cst_16 : f32 to vector<1x18x4xf32>
    %c17_17 = arith.constant 17 : index
    %c0_18 = arith.constant 0 : index
    %c0_19 = arith.constant 0 : index
    %10 = vector.load %arg8[%c17_17, %c0_18, %c0_19] : memref<18x18x4xf32, #tpu.memory_space<vmem>>, vector<1x18x4xf32>
    tpu.vector_store %arg8[%c17_17, %c0_18, %c0_19], %9 {strides = array<i32>} : memref<18x18x4xf32, #tpu.memory_space<vmem>>, vector<1x18x4xf32>,
    %cst_20 = arith.constant 0.000000e+00 : f32
    %11 = vector.broadcast %cst_20 : f32 to vector<18x1x4xf32>
    %c0_21 = arith.constant 0 : index
    %c0_22 = arith.constant 0 : index
    %c0_23 = arith.constant 0 : index
    %12 = vector.load %arg8[%c0_21, %c0_22, %c0_23] : memref<18x18x4xf32, #tpu.memory_space<vmem>>, vector<18x1x4xf32>
    tpu.vector_store %arg8[%c0_21, %c0_22, %c0_23], %11 {strides = array<i32>} : memref<18x18x4xf32, #tpu.memory_space<vmem>>, vector<18x1x4xf32>,
    %c0_24 = arith.constant 0 : index
    %c17_25 = arith.constant 17 : index
    %c0_26 = arith.constant 0 : index
    %13 = vector.load %arg8[%c0_24, %c17_25, %c0_26] : memref<18x18x4xf32, #tpu.memory_space<vmem>>, vector<18x1x4xf32>
    tpu.vector_store %arg8[%c0_24, %c17_25, %c0_26], %11 {strides = array<i32>} : memref<18x18x4xf32, #tpu.memory_space<vmem>>, vector<18x1x4xf32>,
    %c0_27 = arith.constant 0 : index
    %c0_28 = arith.constant 0 : index
    %c0_29 = arith.constant 0 : index
    %c0_30 = arith.constant 0 : index
    %14 = vector.load %arg1[%c0_27, %c0_28, %c0_29, %c0_30] : memref<1x16x16x4xbf16, #tpu.memory_space<vmem>>, vector<1x16x16x4xbf16>
    %15 = vector.shape_cast %14 : vector<1x16x16x4xbf16> to vector<16x16x4xbf16>
    %16 = arith.extf %15 : vector<16x16x4xbf16> to vector<16x16x4xf32>
    %c1 = arith.constant 1 : index
    %c1_31 = arith.constant 1 : index
    %c0_32 = arith.constant 0 : index
    %17 = vector.load %arg7[%c1, %c1_31, %c0_32] : memref<18x18x4xf32, #tpu.memory_space<vmem>>, vector<16x16x4xf32>
    tpu.vector_store %arg7[%c1, %c1_31, %c0_32], %16 {strides = array<i32>} : memref<18x18x4xf32, #tpu.memory_space<vmem>>, vector<16x16x4xf32>,
    %c0_33 = arith.constant 0 : index
    %c0_34 = arith.constant 0 : index
    %18 = vector.load %arg3[%c0_33, %c0_34] : memref<1x4xf32, #tpu.memory_space<vmem>>, vector<1x4xf32>
    %c0_35 = arith.constant 0 : index
    %c0_36 = arith.constant 0 : index
    %c0_37 = arith.constant 0 : index
    %19 = vector.load %arg7[%c0_35, %c0_36, %c0_37] : memref<18x18x4xf32, #tpu.memory_space<vmem>>, vector<16x18x4xf32>
    %20 = arith.truncf %19 : vector<16x18x4xf32> to vector<16x18x4xbf16>
    %21 = vector.extract_strided_slice %20 {offsets = [0, 0, 0], sizes = [16, 16, 4], strides = [1, 1, 1]} : vector<16x18x4xbf16> to vector<16x16x4xbf16>
    %22 = vector.extract_strided_slice %20 {offsets = [0, 1, 0], sizes = [16, 16, 4], strides = [1, 1, 1]} : vector<16x18x4xbf16> to vector<16x16x4xbf16>
    %23 = vector.extract_strided_slice %20 {offsets = [0, 2, 0], sizes = [16, 16, 4], strides = [1, 1, 1]} : vector<16x18x4xbf16> to vector<16x16x4xbf16>
    %24 = tpu.concatenate %21, %22, %23 in 2 : vector<16x16x4xbf16>, vector<16x16x4xbf16>, vector<16x16x4xbf16> -> vector<16x16x12xbf16>
    %25 = vector.shape_cast %24 : vector<16x16x12xbf16> to vector<256x12xbf16>
    %c0_38 = arith.constant 0 : index
    %c0_39 = arith.constant 0 : index
    %c0_40 = arith.constant 0 : index
    %26 = vector.load %arg2[%c0_38, %c0_39, %c0_40] : memref<3x12x4xbf16, #tpu.memory_space<vmem>>, vector<1x12x4xbf16>
    %27 = vector.shape_cast %26 : vector<1x12x4xbf16> to vector<12x4xbf16>
    %cst_41 = arith.constant dense<0.000000e+00> : vector<256x4xf32>
    %28 = tpu.matmul %25, %27, %cst_41 {dimension_numbers = #tpu.dot_dimension_numbers<[1], [0], [0], [1], [0, 0, 1, 1], [], []>} : vector<256x12xbf16>, vector<12x4xbf16>, vector<256x4xf32> -> vector<256x4xf32>
    %29 = vector.broadcast %18 : vector<1x4xf32> to vector<256x4xf32>
    %30 = arith.addf %29, %28 : vector<256x4xf32>
    %c1_42 = arith.constant 1 : index
    %c0_43 = arith.constant 0 : index
    %c0_44 = arith.constant 0 : index
    %31 = vector.load %arg7[%c1_42, %c0_43, %c0_44] : memref<18x18x4xf32, #tpu.memory_space<vmem>>, vector<16x18x4xf32>
    %32 = arith.truncf %31 : vector<16x18x4xf32> to vector<16x18x4xbf16>
    %33 = vector.extract_strided_slice %32 {offsets = [0, 0, 0], sizes = [16, 16, 4], strides = [1, 1, 1]} : vector<16x18x4xbf16> to vector<16x16x4xbf16>
    %34 = vector.extract_strided_slice %32 {offsets = [0, 1, 0], sizes = [16, 16, 4], strides = [1, 1, 1]} : vector<16x18x4xbf16> to vector<16x16x4xbf16>
    %35 = vector.extract_strided_slice %32 {offsets = [0, 2, 0], sizes = [16, 16, 4], strides = [1, 1, 1]} : vector<16x18x4xbf16> to vector<16x16x4xbf16>
    %36 = tpu.concatenate %33, %34, %35 in 2 : vector<16x16x4xbf16>, vector<16x16x4xbf16>, vector<16x16x4xbf16> -> vector<16x16x12xbf16>
    %37 = vector.shape_cast %36 : vector<16x16x12xbf16> to vector<256x12xbf16>
    %c1_45 = arith.constant 1 : index
    %c0_46 = arith.constant 0 : index
    %c0_47 = arith.constant 0 : index
    %38 = vector.load %arg2[%c1_45, %c0_46, %c0_47] : memref<3x12x4xbf16, #tpu.memory_space<vmem>>, vector<1x12x4xbf16>
    %39 = vector.shape_cast %38 : vector<1x12x4xbf16> to vector<12x4xbf16>
    %cst_48 = arith.constant dense<0.000000e+00> : vector<256x4xf32>
    %40 = tpu.matmul %37, %39, %cst_48 {dimension_numbers = #tpu.dot_dimension_numbers<[1], [0], [0], [1], [0, 0, 1, 1], [], []>} : vector<256x12xbf16>, vector<12x4xbf16>, vector<256x4xf32> -> vector<256x4xf32>
    %41 = arith.addf %30, %40 : vector<256x4xf32>
    %c2 = arith.constant 2 : index
    %c0_49 = arith.constant 0 : index
    %c0_50 = arith.constant 0 : index
    %42 = vector.load %arg7[%c2, %c0_49, %c0_50] : memref<18x18x4xf32, #tpu.memory_space<vmem>>, vector<16x18x4xf32>
    %43 = arith.truncf %42 : vector<16x18x4xf32> to vector<16x18x4xbf16>
    %44 = vector.extract_strided_slice %43 {offsets = [0, 0, 0], sizes = [16, 16, 4], strides = [1, 1, 1]} : vector<16x18x4xbf16> to vector<16x16x4xbf16>
    %45 = vector.extract_strided_slice %43 {offsets = [0, 1, 0], sizes = [16, 16, 4], strides = [1, 1, 1]} : vector<16x18x4xbf16> to vector<16x16x4xbf16>
    %46 = vector.extract_strided_slice %43 {offsets = [0, 2, 0], sizes = [16, 16, 4], strides = [1, 1, 1]} : vector<16x18x4xbf16> to vector<16x16x4xbf16>
    %47 = tpu.concatenate %44, %45, %46 in 2 : vector<16x16x4xbf16>, vector<16x16x4xbf16>, vector<16x16x4xbf16> -> vector<16x16x12xbf16>
    %48 = vector.shape_cast %47 : vector<16x16x12xbf16> to vector<256x12xbf16>
    %c2_51 = arith.constant 2 : index
    %c0_52 = arith.constant 0 : index
    %c0_53 = arith.constant 0 : index
    %49 = vector.load %arg2[%c2_51, %c0_52, %c0_53] : memref<3x12x4xbf16, #tpu.memory_space<vmem>>, vector<1x12x4xbf16>
    %50 = vector.shape_cast %49 : vector<1x12x4xbf16> to vector<12x4xbf16>
    %cst_54 = arith.constant dense<0.000000e+00> : vector<256x4xf32>
    %51 = tpu.matmul %48, %50, %cst_54 {dimension_numbers = #tpu.dot_dimension_numbers<[1], [0], [0], [1], [0, 0, 1, 1], [], []>} : vector<256x12xbf16>, vector<12x4xbf16>, vector<256x4xf32> -> vector<256x4xf32>
    %52 = arith.addf %41, %51 : vector<256x4xf32>
    %cst_55 = arith.constant 0.000000e+00 : f32
    %53 = vector.broadcast %cst_55 : f32 to vector<256x4xf32>
    %54 = arith.maximumf %52, %53 : vector<256x4xf32>
    %55 = vector.shape_cast %54 : vector<256x4xf32> to vector<16x16x4xf32>
    %c1_56 = arith.constant 1 : index
    %c1_57 = arith.constant 1 : index
    %c0_58 = arith.constant 0 : index
    %56 = vector.load %arg8[%c1_56, %c1_57, %c0_58] : memref<18x18x4xf32, #tpu.memory_space<vmem>>, vector<16x16x4xf32>
    tpu.vector_store %arg8[%c1_56, %c1_57, %c0_58], %55 {strides = array<i32>} : memref<18x18x4xf32, #tpu.memory_space<vmem>>, vector<16x16x4xf32>,
    %c1_59 = arith.constant 1 : index
    %c1_60 = arith.constant 1 : index
    %c0_61 = arith.constant 0 : index
    %57 = vector.load %arg7[%c1_59, %c1_60, %c0_61] : memref<18x18x4xf32, #tpu.memory_space<vmem>>, vector<16x16x4xf32>
    %58 = vector.shape_cast %57 : vector<16x16x4xf32> to vector<256x4xf32>
    %c0_62 = arith.constant 0 : index
    %c0_63 = arith.constant 0 : index
    %59 = vector.load %arg5[%c0_62, %c0_63] : memref<1x4xf32, #tpu.memory_space<vmem>>, vector<1x4xf32>
    %60 = vector.broadcast %59 : vector<1x4xf32> to vector<256x4xf32>
    %61 = arith.addf %58, %60 : vector<256x4xf32>
    %c0_64 = arith.constant 0 : index
    %c0_65 = arith.constant 0 : index
    %c0_66 = arith.constant 0 : index
    %62 = vector.load %arg8[%c0_64, %c0_65, %c0_66] : memref<18x18x4xf32, #tpu.memory_space<vmem>>, vector<16x18x4xf32>
    %63 = arith.truncf %62 : vector<16x18x4xf32> to vector<16x18x4xbf16>
    %64 = vector.extract_strided_slice %63 {offsets = [0, 0, 0], sizes = [16, 16, 4], strides = [1, 1, 1]} : vector<16x18x4xbf16> to vector<16x16x4xbf16>
    %65 = vector.extract_strided_slice %63 {offsets = [0, 1, 0], sizes = [16, 16, 4], strides = [1, 1, 1]} : vector<16x18x4xbf16> to vector<16x16x4xbf16>
    %66 = vector.extract_strided_slice %63 {offsets = [0, 2, 0], sizes = [16, 16, 4], strides = [1, 1, 1]} : vector<16x18x4xbf16> to vector<16x16x4xbf16>
    %67 = tpu.concatenate %64, %65, %66 in 2 : vector<16x16x4xbf16>, vector<16x16x4xbf16>, vector<16x16x4xbf16> -> vector<16x16x12xbf16>
    %68 = vector.shape_cast %67 : vector<16x16x12xbf16> to vector<256x12xbf16>
    %c0_67 = arith.constant 0 : index
    %c0_68 = arith.constant 0 : index
    %c0_69 = arith.constant 0 : index
    %69 = vector.load %arg4[%c0_67, %c0_68, %c0_69] : memref<3x12x4xbf16, #tpu.memory_space<vmem>>, vector<1x12x4xbf16>
    %70 = vector.shape_cast %69 : vector<1x12x4xbf16> to vector<12x4xbf16>
    %cst_70 = arith.constant dense<0.000000e+00> : vector<256x4xf32>
    %71 = tpu.matmul %68, %70, %cst_70 {dimension_numbers = #tpu.dot_dimension_numbers<[1], [0], [0], [1], [0, 0, 1, 1], [], []>} : vector<256x12xbf16>, vector<12x4xbf16>, vector<256x4xf32> -> vector<256x4xf32>
    %72 = arith.addf %61, %71 : vector<256x4xf32>
    %c1_71 = arith.constant 1 : index
    %c0_72 = arith.constant 0 : index
    %c0_73 = arith.constant 0 : index
    %73 = vector.load %arg8[%c1_71, %c0_72, %c0_73] : memref<18x18x4xf32, #tpu.memory_space<vmem>>, vector<16x18x4xf32>
    %74 = arith.truncf %73 : vector<16x18x4xf32> to vector<16x18x4xbf16>
    %75 = vector.extract_strided_slice %74 {offsets = [0, 0, 0], sizes = [16, 16, 4], strides = [1, 1, 1]} : vector<16x18x4xbf16> to vector<16x16x4xbf16>
    %76 = vector.extract_strided_slice %74 {offsets = [0, 1, 0], sizes = [16, 16, 4], strides = [1, 1, 1]} : vector<16x18x4xbf16> to vector<16x16x4xbf16>
    %77 = vector.extract_strided_slice %74 {offsets = [0, 2, 0], sizes = [16, 16, 4], strides = [1, 1, 1]} : vector<16x18x4xbf16> to vector<16x16x4xbf16>
    %78 = tpu.concatenate %75, %76, %77 in 2 : vector<16x16x4xbf16>, vector<16x16x4xbf16>, vector<16x16x4xbf16> -> vector<16x16x12xbf16>
    %79 = vector.shape_cast %78 : vector<16x16x12xbf16> to vector<256x12xbf16>
    %c1_74 = arith.constant 1 : index
    %c0_75 = arith.constant 0 : index
    %c0_76 = arith.constant 0 : index
    %80 = vector.load %arg4[%c1_74, %c0_75, %c0_76] : memref<3x12x4xbf16, #tpu.memory_space<vmem>>, vector<1x12x4xbf16>
    %81 = vector.shape_cast %80 : vector<1x12x4xbf16> to vector<12x4xbf16>
    %cst_77 = arith.constant dense<0.000000e+00> : vector<256x4xf32>
    %82 = tpu.matmul %79, %81, %cst_77 {dimension_numbers = #tpu.dot_dimension_numbers<[1], [0], [0], [1], [0, 0, 1, 1], [], []>} : vector<256x12xbf16>, vector<12x4xbf16>, vector<256x4xf32> -> vector<256x4xf32>
    %83 = arith.addf %72, %82 : vector<256x4xf32>
    %c2_78 = arith.constant 2 : index
    %c0_79 = arith.constant 0 : index
    %c0_80 = arith.constant 0 : index
    %84 = vector.load %arg8[%c2_78, %c0_79, %c0_80] : memref<18x18x4xf32, #tpu.memory_space<vmem>>, vector<16x18x4xf32>
    %85 = arith.truncf %84 : vector<16x18x4xf32> to vector<16x18x4xbf16>
    %86 = vector.extract_strided_slice %85 {offsets = [0, 0, 0], sizes = [16, 16, 4], strides = [1, 1, 1]} : vector<16x18x4xbf16> to vector<16x16x4xbf16>
    %87 = vector.extract_strided_slice %85 {offsets = [0, 1, 0], sizes = [16, 16, 4], strides = [1, 1, 1]} : vector<16x18x4xbf16> to vector<16x16x4xbf16>
    %88 = vector.extract_strided_slice %85 {offsets = [0, 2, 0], sizes = [16, 16, 4], strides = [1, 1, 1]} : vector<16x18x4xbf16> to vector<16x16x4xbf16>
    %89 = tpu.concatenate %86, %87, %88 in 2 : vector<16x16x4xbf16>, vector<16x16x4xbf16>, vector<16x16x4xbf16> -> vector<16x16x12xbf16>
    %90 = vector.shape_cast %89 : vector<16x16x12xbf16> to vector<256x12xbf16>
    %c2_81 = arith.constant 2 : index
    %c0_82 = arith.constant 0 : index
    %c0_83 = arith.constant 0 : index
    %91 = vector.load %arg4[%c2_81, %c0_82, %c0_83] : memref<3x12x4xbf16, #tpu.memory_space<vmem>>, vector<1x12x4xbf16>
    %92 = vector.shape_cast %91 : vector<1x12x4xbf16> to vector<12x4xbf16>
    %cst_84 = arith.constant dense<0.000000e+00> : vector<256x4xf32>
    %93 = tpu.matmul %90, %92, %cst_84 {dimension_numbers = #tpu.dot_dimension_numbers<[1], [0], [0], [1], [0, 0, 1, 1], [], []>} : vector<256x12xbf16>, vector<12x4xbf16>, vector<256x4xf32> -> vector<256x4xf32>
    %94 = arith.addf %83, %93 : vector<256x4xf32>
    %cst_85 = arith.constant 0.000000e+00 : f32
    %95 = vector.broadcast %cst_85 : f32 to vector<256x4xf32>
    %96 = arith.maximumf %94, %95 : vector<256x4xf32>
    %97 = vector.shape_cast %96 : vector<256x4xf32> to vector<1x16x16x4xf32>
    %c0_86 = arith.constant 0 : index
    %c0_87 = arith.constant 0 : index
    %c0_88 = arith.constant 0 : index
    %c0_89 = arith.constant 0 : index
    %98 = vector.load %arg6[%c0_86, %c0_87, %c0_88, %c0_89] : memref<1x16x16x4xf32, #tpu.memory_space<vmem>>, vector<1x16x16x4xf32>
    tpu.vector_store %arg6[%c0_86, %c0_87, %c0_88, %c0_89], %97 {strides = array<i32>} : memref<1x16x16x4xf32, #tpu.memory_space<vmem>>, vector<1x16x16x4xf32>,
    return
  }
  func.func @transform_0(%arg0: i32) -> (i32, i32, i32, i32) {
    %c0_i32 = arith.constant 0 : i32
    %c0_i32_0 = arith.constant 0 : i32
    %c0_i32_1 = arith.constant 0 : i32
    %c0_i32_2 = arith.constant 0 : i32
    return %arg0, %c0_i32, %c0_i32_0, %c0_i32_1 : i32, i32, i32, i32
  }
  func.func @transform_1(%arg0: i32) -> (i32, i32, i32) {
    %c0_i32 = arith.constant 0 : i32
    %c0_i32_0 = arith.constant 0 : i32
    %c0_i32_1 = arith.constant 0 : i32
    %c0_i32_2 = arith.constant 0 : i32
    return %c0_i32, %c0_i32_0, %c0_i32_1 : i32, i32, i32
  }
  func.func @transform_2(%arg0: i32) -> (i32, i32) {
    %c0_i32 = arith.constant 0 : i32
    %c0_i32_0 = arith.constant 0 : i32
    %c0_i32_1 = arith.constant 0 : i32
    return %c0_i32, %c0_i32_0 : i32, i32
  }
  func.func @transform_3(%arg0: i32) -> (i32, i32, i32) {
    %c0_i32 = arith.constant 0 : i32
    %c0_i32_0 = arith.constant 0 : i32
    %c0_i32_1 = arith.constant 0 : i32
    %c0_i32_2 = arith.constant 0 : i32
    return %c0_i32, %c0_i32_0, %c0_i32_1 : i32, i32, i32
  }
  func.func @transform_4(%arg0: i32) -> (i32, i32) {
    %c0_i32 = arith.constant 0 : i32
    %c0_i32_0 = arith.constant 0 : i32
    %c0_i32_1 = arith.constant 0 : i32
    return %c0_i32, %c0_i32_0 : i32, i32
  }
  func.func @transform_5(%arg0: i32) -> (i32, i32, i32, i32) {
    %c0_i32 = arith.constant 0 : i32
    %c0_i32_0 = arith.constant 0 : i32
    %c0_i32_1 = arith.constant 0 : i32
    %c0_i32_2 = arith.constant 0 : i32
    return %arg0, %c0_i32, %c0_i32_0, %c0_i32_1 : i32, i32, i32, i32
  }
}

</mosaic_0001>

<bundles_post_ra>
// kernel: tpu_custom_call.1
= control target key start
LH: loop header
LB: loop body
LE: loop exit
PB: predicated region body
PF: predicated region fallthrough
CT: control target
= control target key end

     0   :  { %s5549_s18 = smov 0   ;;  %s7656_s0 = inlined_call_operand.vmem [shape: bf16[2,16,16,4], index: 0, kind: input, shape index: {}]   ;;  %s7657_s1 = inlined_call_operand.vmem [shape: bf16[3,12,4], index: 1, kind: input, shape index: {}]   ;;  %s7658_s2 = inlined_call_operand.vmem [shape: f32[1,4], index: 2, kind: input, shape index: {}]   ;;  %s7659_s3 = inlined_call_operand.vmem [shape: bf16[3,12,4], index: 3, kind: input, shape index: {}]   ;;  %s7660_s4 = inlined_call_operand.vmem [shape: f32[1,4], index: 4, kind: input, shape index: {}]   ;;  %s7661_s5 = inlined_call_operand.vmem [shape: f32[2,16,16,4], index: 5, kind: output, shape index: {}]  }
   0x1 LB: > { %s4975_s19 = sadd.s32 4294967295, %s5514_s18   ;;  %p4979_p0 = scmp.ge.s32.totalorder %s5514_s18, 1  ;;  %s5514_s18 = sphi %s5549_s18, %s15_s18  }
   0x2   : > { %p187_p1 = scmp.lt.s32.totalorder %s5514_s18, 3 }
   0x4   : > { %p188_p2 = pnand %p4979_p0, %p187_p1 }
   0x5   : > { %p215_p3 = scmp.lt.s32.totalorder (!%p188_p2), %s4975_s19, 1  ;;  %s5517_s24 = smov (!%p188_p2), 8  }
   0x6   : > { %191 = sbr.rel (%p188_p2) target bundleno = 983 (0x3d7), region = 40  ;;  %s5518_s27 = smov (!%p188_p2), 4  }
   0xb   : > { %vm226_vm0 = vcmask 31744   ;;  %vm229_vm1 = vcmask 25600   ;;  %vm235_vm2 = vcmask 24576   ;;  %v5516_v0 = vmov 0.0   ;;  %s7663_s19 = smov (!%p215_p3, %s4975_s19), 1 }
   0xc   : > { %227 = vst.msk [vmem:[#allocation2] sm:$0xff] %vm226_vm0, %v5516_v0  ;;  %228 = vst.msk [vmem:[#allocation2 + $0x8] sm:$0xff] %vm226_vm0, %v5516_v0  ;;  %s5098_s20 = sshll.u32 %s7663_s19, 7  ;;  %vm750_vm3 = vcmask 1046528   ;;  %vm493_vm4 = vsmask.f32 7424 }
   0xd   : > { %230 = vst.msk [vmem:[#allocation2 + $0x10] sm:$0x3] %vm229_vm1, %v5516_v0  ;;  %234 = vst.msk [vmem:[#allocation2 + $0x1a8] sm:$0x3] %vm229_vm1, %v5516_v0  ;;  %s5735_s23 = scalar_lea.vmem %s7656_s0, %s5098_s20  ;;  %v5781_v55 = vld [vmem:[%s7657_s1] sm:$0x3f]  }
   0xe   : > { %232 = vst.msk [vmem:[#allocation2 + $0x198] sm:$0xff] %vm226_vm0, %v5516_v0  ;;  %233 = vst.msk [vmem:[#allocation2 + $0x1a0] sm:$0xff] %vm226_vm0, %v5516_v0  ;;  %v5101_v1 = vld [vmem:[%s5735_s23] sm:$0xff]   ;;  %v5164_v2 = vld [vmem:[%s5735_s23 + $0x8] sm:$0xff]   ;;  %vm936_vm5 = vcmask 1045504   ;;  %vm863_vm6 = vcmask 64512  }
   0xf   : > { %237 = vst.msk [vmem:[#allocation2 + $0x18] sm:$0x1] %vm235_vm2, %v5516_v0  ;;  %238 = vst.msk [vmem:[#allocation2 + $0x30] sm:$0x1] %vm235_vm2, %v5516_v0  ;;  %v5165_v3 = vld [vmem:[%s5735_s23 + $0x10] sm:$0xff]   ;;  %v5102_v5 = vunpack.c.l.bf16 %v5101_v1  ;;  %v5103_v6 = vunpack.c.h.bf16 %v5101_v1  ;;  %v5106_v7 = vunpack.c.l.bf16 %v5164_v2  ;;  %v5107_v8 = vunpack.c.h.bf16 %v5164_v2  ;;  %v5166_v9 = vld [vmem:[%s5735_s23 + $0x18] sm:$0xff]   ;;  %5485 = vmatprep.subr.msk.bf16.mxu0 %vm936_vm5, %v5781_v55 }
  0x10   : > { %239 = vst.msk [vmem:[#allocation2 + $0x48] sm:$0x1] %vm235_vm2, %v5516_v0  ;;  %240 = vst.msk [vmem:[#allocation2 + $0x60] sm:$0x1] %vm235_vm2, %v5516_v0  ;;  %v5167_v10 = vld [vmem:[%s5735_s23 + $0x20] sm:$0xff]   ;;  %v5110_v13 = vunpack.c.l.bf16 %v5165_v3  ;;  %v5111_v14 = vunpack.c.h.bf16 %v5165_v3  ;;  %v5114_v15 = vunpack.c.l.bf16 %v5166_v9  ;;  %v5115_v16 = vunpack.c.h.bf16 %v5166_v9  ;;  %v5169_v17 = vld [vmem:[%s5735_s23 + $0x30] sm:$0xff]  }
  0x11   : > { %241 = vst.msk [vmem:[#allocation2 + $0x78] sm:$0x1] %vm235_vm2, %v5516_v0  ;;  %242 = vst.msk [vmem:[#allocation2 + $0x90] sm:$0x1] %vm235_vm2, %v5516_v0  ;;  %v5118_v20 = vunpack.c.l.bf16 %v5167_v10  ;;  %v5119_v21 = vunpack.c.h.bf16 %v5167_v10  ;;  %v5168_v22 = vld [vmem:[%s5735_s23 + $0x28] sm:$0xff]   ;;  %v5171_v23 = vld [vmem:[%s5735_s23 + $0x40] sm:$0xff]   ;;  %v5126_v25 = vunpack.c.l.bf16 %v5169_v17  ;;  %v5127_v26 = vunpack.c.h.bf16 %v5169_v17 }
  0x12   : > { %243 = vst.msk [vmem:[#allocation2 + $0xa8] sm:$0x1] %vm235_vm2, %v5516_v0  ;;  %244 = vst.msk [vmem:[#allocation2 + $0xc0] sm:$0x1] %vm235_vm2, %v5516_v0  ;;  %v5170_v24 = vld [vmem:[%s5735_s23 + $0x38] sm:$0xff]   ;;  %v5122_v27 = vunpack.c.l.bf16 %v5168_v22  ;;  %v5123_v28 = vunpack.c.h.bf16 %v5168_v22  ;;  %v5173_v29 = vld [vmem:[%s5735_s23 + $0x50] sm:$0xff]   ;;  %v5134_v36 = vunpack.c.l.bf16 %v5171_v23  ;;  %v5135_v37 = vunpack.c.h.bf16 %v5171_v23 }
  0x13   : > { %245 = vst.msk [vmem:[#allocation2 + $0xd8] sm:$0x1] %vm235_vm2, %v5516_v0  ;;  %246 = vst.msk [vmem:[#allocation2 + $0xf0] sm:$0x1] %vm235_vm2, %v5516_v0  ;;  %v414_v4 = vld [vmem:[#allocation2 + $0x8] sm:$0xff]  ;;  %v5130_v38 = vunpack.c.l.bf16 %v5170_v24  ;;  %v5175_v39 = vld [vmem:[%s5735_s23 + $0x60] sm:$0xff]   ;;  %v5131_v43 = vunpack.c.h.bf16 %v5170_v24  ;;  %v5142_v44 = vunpack.c.l.bf16 %v5173_v29  ;;  %v5143_v48 = vunpack.c.h.bf16 %v5173_v29 }
  0x14   : > { %247 = vst.msk [vmem:[#allocation2 + $0x108] sm:$0x1] %vm235_vm2, %v5516_v0  ;;  %248 = vst.msk [vmem:[#allocation2 + $0x120] sm:$0x1] %vm235_vm2, %v5516_v0  ;;  %v5172_v34 = vld [vmem:[%s5735_s23 + $0x48] sm:$0xff]   ;;  %v5174_v40 = vld [vmem:[%s5735_s23 + $0x58] sm:$0xff]   ;;  %v5150_v52 = vunpack.c.l.bf16 %v5175_v39  ;;  %v5151_v53 = vunpack.c.h.bf16 %v5175_v39 }
  0x15   : > { %249 = vst.msk [vmem:[#allocation2 + $0x138] sm:$0x1] %vm235_vm2, %v5516_v0  ;;  %250 = vst.msk [vmem:[#allocation2 + $0x150] sm:$0x1] %vm235_vm2, %v5516_v0  ;;  %v5177_v45 = vld [vmem:[%s5735_s23 + $0x70] sm:$0xff]   ;;  %v5176_v46 = vld [vmem:[%s5735_s23 + $0x68] sm:$0xff]   ;;  %v5138_v49 = vunpack.c.l.bf16 %v5172_v34  ;;  %v5139_v50 = vunpack.c.h.bf16 %v5172_v34  ;;  %v5146_v54 = vunpack.c.l.bf16 %v5174_v40  ;;  %v5147_v59 = vunpack.c.h.bf16 %v5174_v40 }
  0x16   : > { %251 = vst.msk [vmem:[#allocation2 + $0x168] sm:$0x1] %vm235_vm2, %v5516_v0  ;;  %252 = vst.msk [vmem:[#allocation2 + $0x180] sm:$0x1] %vm235_vm2, %v5516_v0  ;;  %v5158_v60 = vunpack.c.l.bf16 %v5177_v45  ;;  %v5159_v61 = vunpack.c.h.bf16 %v5177_v45  ;;  %v5154_v62 = vunpack.c.l.bf16 %v5176_v46  ;;  %vm903_vm7 = vcmask 97280   ;;  %s5099_s17 = sshll.u32 %s7663_s19, 8 }
  0x17   : > { %255 = vst.msk [vmem:[#allocation2 + $0x29] sm:$0x1] %vm235_vm2, %v5516_v0  ;;  %256 = vst.msk [vmem:[#allocation2 + $0x41] sm:$0x1] %vm235_vm2, %v5516_v0  ;;  %s7500_s22 = scalar_lea.vmem %s7661_s5, %s5099_s17 }
  0x18   : > { %257 = vst.msk [vmem:[#allocation2 + $0x59] sm:$0x1] %vm235_vm2, %v5516_v0  ;;  %258 = vst.msk [vmem:[#allocation2 + $0x71] sm:$0x1] %vm235_vm2, %v5516_v0 }
  0x19   : > { %259 = vst.msk [vmem:[#allocation2 + $0x89] sm:$0x1] %vm235_vm2, %v5516_v0  ;;  %260 = vst.msk [vmem:[#allocation2 + $0xa1] sm:$0x1] %vm235_vm2, %v5516_v0 }
  0x1a   : > { %261 = vst.msk [vmem:[#allocation2 + $0xb9] sm:$0x1] %vm235_vm2, %v5516_v0  ;;  %262 = vst.msk [vmem:[#allocation2 + $0xd1] sm:$0x1] %vm235_vm2, %v5516_v0 }
  0x1b   : > { %263 = vst.msk [vmem:[#allocation2 + $0xe9] sm:$0x1] %vm235_vm2, %v5516_v0  ;;  %264 = vst.msk [vmem:[#allocation2 + $0x101] sm:$0x1] %vm235_vm2, %v5516_v0 }
  0x1c   : > { %265 = vst.msk [vmem:[#allocation2 + $0x119] sm:$0x1] %vm235_vm2, %v5516_v0  ;;  %266 = vst.msk [vmem:[#allocation2 + $0x131] sm:$0x1] %vm235_vm2, %v5516_v0 }
  0x1d   : > { %267 = vst.msk [vmem:[#allocation2 + $0x149] sm:$0x1] %vm235_vm2, %v5516_v0  ;;  %268 = vst.msk [vmem:[#allocation2 + $0x161] sm:$0x1] %vm235_vm2, %v5516_v0 }
  0x1e   : > { %269 = vst.msk [vmem:[#allocation2 + $0x179] sm:$0x1] %vm235_vm2, %v5516_v0  ;;  %270 = vst.msk [vmem:[#allocation2 + $0x191] sm:$0x1] %vm235_vm2, %v5516_v0 }
  0x1f   : > { %272 = vst.msk [vmem:[#allocation3] sm:$0xff] %vm226_vm0, %v5516_v0  ;;  %273 = vst.msk [vmem:[#allocation3 + $0x8] sm:$0xff] %vm226_vm0, %v5516_v0 }
  0x20   : > { %274 = vst.msk [vmem:[#allocation3 + $0x10] sm:$0x3] %vm229_vm1, %v5516_v0  ;;  %278 = vst.msk [vmem:[#allocation3 + $0x1a8] sm:$0x3] %vm229_vm1, %v5516_v0 }
  0x21   : > { %276 = vst.msk [vmem:[#allocation3 + $0x198] sm:$0xff] %vm226_vm0, %v5516_v0  ;;  %277 = vst.msk [vmem:[#allocation3 + $0x1a0] sm:$0xff] %vm226_vm0, %v5516_v0 }
  0x22   : > { %280 = vst.msk [vmem:[#allocation3 + $0x18] sm:$0x1] %vm235_vm2, %v5516_v0  ;;  %281 = vst.msk [vmem:[#allocation3 + $0x30] sm:$0x1] %vm235_vm2, %v5516_v0 }
  0x23   : > { %282 = vst.msk [vmem:[#allocation3 + $0x48] sm:$0x1] %vm235_vm2, %v5516_v0  ;;  %283 = vst.msk [vmem:[#allocation3 + $0x60] sm:$0x1] %vm235_vm2, %v5516_v0 }
  0x24   : > { %284 = vst.msk [vmem:[#allocation3 + $0x78] sm:$0x1] %vm235_vm2, %v5516_v0  ;;  %285 = vst.msk [vmem:[#allocation3 + $0x90] sm:$0x1] %vm235_vm2, %v5516_v0 }
  0x25   : > { %286 = vst.msk [vmem:[#allocation3 + $0xa8] sm:$0x1] %vm235_vm2, %v5516_v0  ;;  %287 = vst.msk [vmem:[#allocation3 + $0xc0] sm:$0x1] %vm235_vm2, %v5516_v0 }
  0x26   : > { %288 = vst.msk [vmem:[#allocation3 + $0xd8] sm:$0x1] %vm235_vm2, %v5516_v0  ;;  %289 = vst.msk [vmem:[#allocation3 + $0xf0] sm:$0x1] %vm235_vm2, %v5516_v0 }
  0x27   : > { %290 = vst.msk [vmem:[#allocation3 + $0x108] sm:$0x1] %vm235_vm2, %v5516_v0  ;;  %291 = vst.msk [vmem:[#allocation3 + $0x120] sm:$0x1] %vm235_vm2, %v5516_v0 }
  0x28   : > { %292 = vst.msk [vmem:[#allocation3 + $0x138] sm:$0x1] %vm235_vm2, %v5516_v0  ;;  %293 = vst.msk [vmem:[#allocation3 + $0x150] sm:$0x1] %vm235_vm2, %v5516_v0 }
  0x29   : > { %294 = vst.msk [vmem:[#allocation3 + $0x168] sm:$0x1] %vm235_vm2, %v5516_v0  ;;  %295 = vst.msk [vmem:[#allocation3 + $0x180] sm:$0x1] %vm235_vm2, %v5516_v0 }
  0x2a   : > { %298 = vst.msk [vmem:[#allocation3 + $0x29] sm:$0x1] %vm235_vm2, %v5516_v0  ;;  %299 = vst.msk [vmem:[#allocation3 + $0x41] sm:$0x1] %vm235_vm2, %v5516_v0 }
  0x2b   : > { %300 = vst.msk [vmem:[#allocation3 + $0x59] sm:$0x1] %vm235_vm2, %v5516_v0  ;;  %301 = vst.msk [vmem:[#allocation3 + $0x71] sm:$0x1] %vm235_vm2, %v5516_v0 }
  0x2c   : > { %302 = vst.msk [vmem:[#allocation3 + $0x89] sm:$0x1] %vm235_vm2, %v5516_v0  ;;  %303 = vst.msk [vmem:[#allocation3 + $0xa1] sm:$0x1] %vm235_vm2, %v5516_v0 }
  0x2d   : > { %304 = vst.msk [vmem:[#allocation3 + $0xb9] sm:$0x1] %vm235_vm2, %v5516_v0  ;;  %305 = vst.msk [vmem:[#allocation3 + $0xd1] sm:$0x1] %vm235_vm2, %v5516_v0 }
  0x2e   : > { %306 = vst.msk [vmem:[#allocation3 + $0xe9] sm:$0x1] %vm235_vm2, %v5516_v0  ;;  %307 = vst.msk [vmem:[#allocation3 + $0x101] sm:$0x1] %vm235_vm2, %v5516_v0 }
  0x2f   : > { %308 = vst.msk [vmem:[#allocation3 + $0x119] sm:$0x1] %vm235_vm2, %v5516_v0  ;;  %309 = vst.msk [vmem:[#allocation3 + $0x131] sm:$0x1] %vm235_vm2, %v5516_v0 }
  0x30   : > { %310 = vst.msk [vmem:[#allocation3 + $0x149] sm:$0x1] %vm235_vm2, %v5516_v0  ;;  %311 = vst.msk [vmem:[#allocation3 + $0x161] sm:$0x1] %vm235_vm2, %v5516_v0 }
  0x31   : > { %312 = vst.msk [vmem:[#allocation3 + $0x179] sm:$0x1] %vm235_vm2, %v5516_v0  ;;  %313 = vst.msk [vmem:[#allocation3 + $0x191] sm:$0x1] %vm235_vm2, %v5516_v0 }
  0x32   : > { %236 = vst.msk [vmem:[#allocation2] sm:$0x1] %vm235_vm2, %v5516_v0  ;;  %254 = vst.msk [vmem:[#allocation2 + $0x11] sm:$0x1] %vm235_vm2, %v5516_v0 }
  0x33   : > { %253 = vst.msk [vmem:[#allocation2 + $0x198] sm:$0x1] %vm235_vm2, %v5516_v0  ;;  %271 = vst.msk [vmem:[#allocation2 + $0x1a9] sm:$0x1] %vm235_vm2, %v5516_v0 }
  0x34   : > { %279 = vst.msk [vmem:[#allocation3] sm:$0x1] %vm235_vm2, %v5516_v0  ;;  %296 = vst.msk [vmem:[#allocation3 + $0x198] sm:$0x1] %vm235_vm2, %v5516_v0 }
  0x35   : > { %297 = vst.msk [vmem:[#allocation3 + $0x11] sm:$0x1] %vm235_vm2, %v5516_v0  ;;  %314 = vst.msk [vmem:[#allocation3 + $0x1a9] sm:$0x1] %vm235_vm2, %v5516_v0 }
  0x36   : > { %380 = vst.msk [vmem:[#allocation2 + $0x19] sm:$0xff] %vm226_vm0, %v5102_v5  ;;  %381 = vst.msk [vmem:[#allocation2 + $0x21] sm:$0xff] %vm226_vm0, %v5103_v6  ;;  %v5155_v5 = vunpack.c.h.bf16 %v5176_v46 }
  0x37   : > { %382 = vst.msk [vmem:[#allocation2 + $0x31] sm:$0xff] %vm226_vm0, %v5106_v7  ;;  %383 = vst.msk [vmem:[#allocation2 + $0x39] sm:$0xff] %vm226_vm0, %v5107_v8 }
  0x38   : > { %384 = vst.msk [vmem:[#allocation2 + $0x49] sm:$0xff] %vm226_vm0, %v5110_v13  ;;  %385 = vst.msk [vmem:[#allocation2 + $0x51] sm:$0xff] %vm226_vm0, %v5111_v14 }
  0x39   : > { %v413_v11 = vld [vmem:[#allocation2] sm:$0xff]  ;;  %v415_v12 = vld [vmem:[#allocation2 + $0x10] sm:$0x3]  ;;  %386 = vst.msk [vmem:[#allocation2 + $0x61] sm:$0xff] %vm226_vm0, %v5114_v15  ;;  %387 = vst.msk [vmem:[#allocation2 + $0x69] sm:$0xff] %vm226_vm0, %v5115_v16 }
  0x3a   : > { %v5743_v18 = vpack.c.bf16 %v414_v4, %v413_v11  ;;  %v462_v19 = vpack.c.bf16 %v415_v12, %v415_v12  ;;  %388 = vst.msk [vmem:[#allocation2 + $0x79] sm:$0xff] %vm226_vm0, %v5118_v20  ;;  %389 = vst.msk [vmem:[#allocation2 + $0x81] sm:$0xff] %vm226_vm0, %v5119_v21 }
  0x3b   : > { %392 = vst.msk [vmem:[#allocation2 + $0xa9] sm:$0xff] %vm226_vm0, %v5126_v25  ;;  %393 = vst.msk [vmem:[#allocation2 + $0xb1] sm:$0xff] %vm226_vm0, %v5127_v26 }
  0x3c   : > { %v751_v30 = vrot.slane %v5743_v18, 1  ;;  %v752_v31 = vrot.slane %v462_v19, 1  ;;  %v495_v32 = vshrl.u32 %v5743_v18, 16  ;;  %v497_v33 = vshll.u32 %v5743_v18, 16  ;;  %390 = vst.msk [vmem:[#allocation2 + $0x91] sm:$0xff] %vm226_vm0, %v5122_v27  ;;  %391 = vst.msk [vmem:[#allocation2 + $0x99] sm:$0xff] %vm226_vm0, %v5123_v28 }
  0x3d   : > { %v502_v35 = vshll.u32 %v462_v19, 16  ;;  %396 = vst.msk [vmem:[#allocation2 + $0xd9] sm:$0xff] %vm226_vm0, %v5134_v36  ;;  %397 = vst.msk [vmem:[#allocation2 + $0xe1] sm:$0xff] %vm226_vm0, %v5135_v37  ;;  %v416_v56 = vld [vmem:[#allocation2 + $0x18] sm:$0xff]  ;;  %v417_v57 = vld [vmem:[#allocation2 + $0x20] sm:$0xff] }
  0x3e   : > { %v753_v41 = vsel %vm750_vm3, %v751_v30, %v752_v31  ;;  %v499_v42 = vrot.slane %v497_v33, 1  ;;  %394 = vst.msk [vmem:[#allocation2 + $0xc1] sm:$0xff] %vm226_vm0, %v5130_v38  ;;  %395 = vst.msk [vmem:[#allocation2 + $0xc9] sm:$0xff] %vm226_vm0, %v5131_v43  ;;  %v418_v58 = vld [vmem:[#allocation2 + $0x28] sm:$0x3]  ;;  %v5787_v0 = vpack.c.bf16 %v417_v57, %v416_v56  ;;  %v419_v2 = vld [vmem:[#allocation2 + $0x30] sm:$0xff] }
  0x3f   : > { %799 = vrot.lane.b32.xlu1 %v753_v41, %s5517_s24  ;;  %v504_v47 = vrot.slane %v502_v35, 1  ;;  %400 = vst.msk [vmem:[#allocation2 + $0x109] sm:$0xff] %vm226_vm0, %v5142_v44  ;;  %401 = vst.msk [vmem:[#allocation2 + $0x111] sm:$0xff] %vm226_vm0, %v5143_v48  ;;  %v464_v1 = vpack.c.bf16 %v418_v58, %v418_v58  ;;  %v420_v3 = vld [vmem:[#allocation2 + $0x38] sm:$0xff]  ;;  %v421_v4 = vld [vmem:[#allocation2 + $0x40] sm:$0x3] }
  0x40   : > { %v500_v51 = vor.u32 %v499_v42, %v495_v32  ;;  %398 = vst.msk [vmem:[#allocation2 + $0xf1] sm:$0xff] %vm226_vm0, %v5138_v49  ;;  %399 = vst.msk [vmem:[#allocation2 + $0xf9] sm:$0xff] %vm226_vm0, %v5139_v50  ;;  %v5793_v6 = vpack.c.bf16 %v420_v3, %v419_v2  ;;  %v466_v7 = vpack.c.bf16 %v421_v4, %v421_v4  ;;  %v422_v8 = vld [vmem:[#allocation2 + $0x48] sm:$0xff]  ;;  %v423_v9 = vld [vmem:[#allocation2 + $0x50] sm:$0xff]  ;;  %v754_v11 = vrot.slane %v5787_v0, 1 }
  0x41   : > { %404 = vst.msk [vmem:[#allocation2 + $0x139] sm:$0xff] %vm226_vm0, %v5150_v52  ;;  %405 = vst.msk [vmem:[#allocation2 + $0x141] sm:$0xff] %vm226_vm0, %v5151_v53  ;;  %v424_v10 = vld [vmem:[#allocation2 + $0x58] sm:$0x3]  ;;  %v755_v12 = vrot.slane %v464_v1, 1  ;;  %v5800_v13 = vpack.c.bf16 %v423_v9, %v422_v8  ;;  %v425_v15 = vld [vmem:[#allocation2 + $0x60] sm:$0xff] }
  0x42   : > { %v505_v63 = vsel %vm493_vm4, %v500_v51, %v504_v47  ;;  %402 = vst.msk [vmem:[#allocation2 + $0x121] sm:$0xff] %vm226_vm0, %v5146_v54  ;;  %403 = vst.msk [vmem:[#allocation2 + $0x129] sm:$0xff] %vm226_vm0, %v5147_v59  ;;  %v468_v14 = vpack.c.bf16 %v424_v10, %v424_v10  ;;  %v426_v16 = vld [vmem:[#allocation2 + $0x68] sm:$0xff]  ;;  %v427_v17 = vld [vmem:[#allocation2 + $0x70] sm:$0x3]  ;;  %v5806_v19 = vrot.slane %v5793_v6, 1 }
  0x43   : > { %686 = vrot.lane.b32.xlu0 %v505_v63, %s5518_s27  ;;  %408 = vst.msk [vmem:[#allocation2 + $0x169] sm:$0xff] %vm226_vm0, %v5158_v60  ;;  %409 = vst.msk [vmem:[#allocation2 + $0x171] sm:$0xff] %vm226_vm0, %v5159_v61  ;;  %v758_v20 = vrot.slane %v466_v7, 1  ;;  %v5808_v21 = vpack.c.bf16 %v426_v16, %v425_v15  ;;  %v470_v22 = vpack.c.bf16 %v427_v17, %v427_v17  ;;  %v428_v23 = vld [vmem:[#allocation2 + $0x78] sm:$0xff]  ;;  %v429_v24 = vld [vmem:[#allocation2 + $0x80] sm:$0xff]  ;;  %v5814_v27 = vrot.slane %v5800_v13, 1 }
  0x44   : > { %406 = vst.msk [vmem:[#allocation2 + $0x151] sm:$0xff] %vm226_vm0, %v5154_v62  ;;  %407 = vst.msk [vmem:[#allocation2 + $0x159] sm:$0xff] %vm226_vm0, %v5155_v5  ;;  %v430_v25 = vld [vmem:[#allocation2 + $0x88] sm:$0x3]  ;;  %v756_v26 = vsel %vm750_vm3, %v754_v11, %v755_v12  ;;  %v761_v28 = vrot.slane %v468_v14, 1  ;;  %v5816_v29 = vpack.c.bf16 %v429_v24, %v428_v23  ;;  %v507_v36 = vshrl.u32 %v5787_v0, 16 }
  0x45   : > { %801 = vrot.lane.b32.xlu1 %v756_v26, %s5517_s24  ;;  %v759_v30 = vsel %vm750_vm3, %v5806_v19, %v758_v20  ;;  %v5822_v31 = vrot.slane %v5808_v21, 1  ;;  %v764_v32 = vrot.slane %v470_v22, 1  ;;  %v472_v33 = vpack.c.bf16 %v430_v25, %v430_v25  ;;  %v434_v54 = vld [vmem:[#allocation2 + $0xa8] sm:$0xff]  ;;  %v435_v56 = vld [vmem:[#allocation2 + $0xb0] sm:$0xff]  ;;  %v436_v61 = vld [vmem:[#allocation2 + $0xb8] sm:$0x3] }
  0x46   : > { %v762_v34 = vsel %vm750_vm3, %v5814_v27, %v761_v28  ;;  %v5828_v35 = vrot.slane %v5816_v29, 1  ;;  %v509_v37 = vshll.u32 %v5787_v0, 16  ;;  %v514_v40 = vshll.u32 %v464_v1, 16  ;;  %v431_v3 = vld [vmem:[#allocation2 + $0x90] sm:$0xff]  ;;  %v432_v4 = vld [vmem:[#allocation2 + $0x98] sm:$0xff] }
  0x47   : > { %803 = vrot.lane.b32.xlu0 %v759_v30, %s5517_s24  ;;  %v765_v38 = vsel %vm750_vm3, %v5822_v31, %v764_v32  ;;  %v767_v39 = vrot.slane %v472_v33, 1  ;;  %v531_v41 = vshrl.u32 %v5800_v13, 16  ;;  %v533_v43 = vshll.u32 %v5800_v13, 16  ;;  %v433_v16 = vld [vmem:[#allocation2 + $0xa0] sm:$0x3] }
  0x48   : > { %v511_v42 = vrot.slane %v509_v37, 1  ;;  %v538_v44 = vshll.u32 %v468_v14, 16  ;;  %v519_v45 = vshrl.u32 %v5793_v6, 16  ;;  %v516_v47 = vrot.slane %v514_v40, 1  ;;  %v442_v37 = vld [vmem:[#allocation2 + $0xe8] sm:$0x3] }
  0x49   : > { %805 = vrot.lane.b32.xlu1 %v762_v34, %s5517_s24  ;;  %v768_v46 = vsel %vm750_vm3, %v5828_v35, %v767_v39  ;;  %v521_v48 = vshll.u32 %v5793_v6, 16  ;;  %v526_v49 = vshll.u32 %v466_v7, 16  ;;  %v535_v51 = vrot.slane %v533_v43, 1  ;;  %v440_v34 = vld [vmem:[#allocation2 + $0xd8] sm:$0xff] }
  0x4a   : > { %v5842_v50 = vor.u32 %v511_v42, %v507_v36  ;;  %v540_v52 = vrot.slane %v538_v44, 1  ;;  %v555_v53 = vshrl.u32 %v5816_v29, 16  ;;  %v557_v59 = vshll.u32 %v5816_v29, 16  ;;  %v441_v36 = vld [vmem:[#allocation2 + $0xe0] sm:$0xff]  ;;  %v438_v42 = vld [vmem:[#allocation2 + $0xc8] sm:$0xff] }
  0x4b   : > { %807 = vrot.lane.b32.xlu0 %v765_v38, %s5517_s24  ;;  %v523_v57 = vrot.slane %v521_v48, 1  ;;  %v528_v58 = vrot.slane %v526_v49, 1  ;;  %v562_v60 = vshll.u32 %v472_v33, 16  ;;  %v5848_v63 = vor.u32 %v535_v51, %v531_v41  ;;  %v437_v41 = vld [vmem:[#allocation2 + $0xc0] sm:$0xff]  ;;  %v439_v51 = vld [vmem:[#allocation2 + $0xd0] sm:$0x3] }
  0x4c   : > { %v517_v62 = vsel %vm493_vm4, %v5842_v50, %v516_v47  ;;  %v543_v1 = vshrl.u32 %v5808_v21, 16  ;;  %v545_v2 = vshll.u32 %v5808_v21, 16  ;;  %v559_v7 = vrot.slane %v557_v59, 1 }
  0x4d   : > { %809 = vrot.lane.b32.xlu1 %v768_v46, %s5517_s24  ;;  %v5853_v5 = vor.u32 %v523_v57, %v519_v45  ;;  %v564_v8 = vrot.slane %v562_v60, 1  ;;  %v550_v9 = vshll.u32 %v470_v22, 16  ;;  %v541_v10 = vsel %vm493_vm4, %v5848_v63, %v540_v52 }
  0x4e   : > { %v547_v12 = vrot.slane %v545_v2, 1  ;;  %v5858_v14 = vpack.c.bf16 %v435_v56, %v434_v54  ;;  %v476_v15 = vpack.c.bf16 %v436_v61, %v436_v61  ;;  %v5862_v20 = vor.u32 %v559_v7, %v555_v53  ;;  %v443_v7 = vld [vmem:[#allocation2 + $0xf0] sm:$0xff] }
  0x4f   : > { %688 = vrot.lane.b32.xlu0 %v517_v62, %s5518_s27  ;;  %v529_v17 = vsel %vm493_vm4, %v5853_v5, %v528_v58  ;;  %v552_v23 = vrot.slane %v550_v9, 1  ;;  %v5864_v24 = vpack.c.bf16 %v432_v4, %v431_v3  ;;  %v474_v30 = vpack.c.bf16 %v433_v16, %v433_v16  ;;  %v446_v3 = vld [vmem:[#allocation2 + $0x108] sm:$0xff]  ;;  %v447_v4 = vld [vmem:[#allocation2 + $0x110] sm:$0xff] }
  0x50   : > { %v5866_v25 = vor.u32 %v547_v12, %v543_v1  ;;  %v579_v22 = vshrl.u32 %v5858_v14, 16  ;;  %v581_v26 = vshll.u32 %v5858_v14, 16  ;;  %v586_v28 = vshll.u32 %v476_v15, 16  ;;  %v448_v12 = vld [vmem:[#allocation2 + $0x118] sm:$0x3] }
  0x51   : > { %692 = vrot.lane.b32.xlu1 %v541_v10, %s5518_s27  ;;  %v567_v32 = vshrl.u32 %v5864_v24, 16  ;;  %v569_v33 = vshll.u32 %v5864_v24, 16  ;;  %v565_v38 = vsel %vm493_vm4, %v5862_v20, %v564_v8  ;;  %v574_v45 = vshll.u32 %v474_v30, 16 }
  0x52   : > { %v583_v39 = vrot.slane %v581_v26, 1  ;;  %v588_v40 = vrot.slane %v586_v28, 1  ;;  %v553_v43 = vsel %vm493_vm4, %v5866_v25, %v552_v23  ;;  %v5881_v47 = vrot.slane %v5858_v14, 1 }
  0x53   : > { %690 = vrot.lane.b32.xlu0 %v529_v17, %s5518_s27  ;;  %v571_v44 = vrot.slane %v569_v33, 1  ;;  %v5883_v48 = vpack.c.bf16 %v441_v36, %v440_v34  ;;  %v5885_v49 = vpack.c.bf16 %v442_v37, %v442_v37  ;;  %v576_v53 = vrot.slane %v574_v45, 1  ;;  %v452_v45 = vld [vmem:[#allocation2 + $0x138] sm:$0xff] }
  0x54   : > { %v5878_v46 = vor.u32 %v583_v39, %v579_v22  ;;  %v773_v54 = vrot.slane %v476_v15, 1  ;;  %v5890_v56 = vpack.c.bf16 %v438_v42, %v437_v41  ;;  %v5896_v58 = vrot.slane %v5864_v24, 1  ;;  %v444_v15 = vld [vmem:[#allocation2 + $0xf8] sm:$0xff] }
  0x55   : > { %696 = vrot.lane.b32.xlu1 %v565_v38, %s5518_s27  ;;  %v5888_v52 = vor.u32 %v571_v44, %v567_v32  ;;  %v603_v59 = vshrl.u32 %v5883_v48, 16  ;;  %v605_v60 = vshll.u32 %v5883_v48, 16  ;;  %v770_v62 = vrot.slane %v474_v30, 1  ;;  %v445_v30 = vld [vmem:[#allocation2 + $0x100] sm:$0x3] }
  0x56   : > { %v589_v57 = vsel %vm493_vm4, %v5878_v46, %v588_v40  ;;  %v610_v1 = vshll.u32 %v5885_v49, 16  ;;  %v478_v2 = vpack.c.bf16 %v439_v51, %v439_v51  ;;  %v591_v9 = vshrl.u32 %v5890_v56, 16  ;;  %v453_v51 = vld [vmem:[#allocation2 + $0x140] sm:$0xff] }
  0x57   : > { %694 = vrot.lane.b32.xlu0 %v553_v43, %s5518_s27  ;;  %v577_v61 = vsel %vm493_vm4, %v5888_v52, %v576_v53  ;;  %v607_v8 = vrot.slane %v605_v60, 1  ;;  %v593_v10 = vshll.u32 %v5890_v56, 16  ;;  %v774_v16 = vsel %vm750_vm3, %v5881_v47, %v773_v54  ;;  %v450_v60 = vld [vmem:[#allocation2 + $0x128] sm:$0xff] }
  0x58   : > { %v598_v17 = vshll.u32 %v478_v2, 16  ;;  %v612_v22 = vrot.slane %v610_v1, 1  ;;  %v5911_v28 = vpack.c.bf16 %v447_v4, %v446_v3  ;;  %v771_v32 = vsel %vm750_vm3, %v5896_v58, %v770_v62  ;;  %v454_v4 = vld [vmem:[#allocation2 + $0x148] sm:$0x3] }
  0x59   : > { %700 = vrot.lane.b32.xlu1 %v589_v57, %s5518_s27  ;;  %v5909_v23 = vor.u32 %v607_v8, %v603_v59  ;;  %v595_v26 = vrot.slane %v593_v10, 1  ;;  %v5915_v34 = vpack.c.bf16 %v448_v12, %v448_v12  ;;  %v5917_v36 = vpack.c.bf16 %v444_v15, %v443_v7  ;;  %v449_v59 = vld [vmem:[#allocation2 + $0x120] sm:$0xff]  ;;  %v451_v8 = vld [vmem:[#allocation2 + $0x130] sm:$0x3] }
  0x5a   : > { %v600_v33 = vrot.slane %v598_v17, 1  ;;  %v5922_v38 = vrot.slane %v5883_v48, 1  ;;  %v779_v39 = vrot.slane %v5885_v49, 1  ;;  %v629_v40 = vshll.u32 %v5911_v28, 16 }
  0x5b   : > { %698 = vrot.lane.b32.xlu0 %v577_v61, %s5518_s27  ;;  %v5919_v37 = vor.u32 %v595_v26, %v591_v9  ;;  %v627_v41 = vshrl.u32 %v5911_v28, 16  ;;  %v634_v42 = vshll.u32 %v5915_v34, 16  ;;  %v482_v43 = vpack.c.bf16 %v445_v30, %v445_v30 }
  0x5c   : > { %v617_v44 = vshll.u32 %v5917_v36, 16  ;;  %v613_v53 = vsel %vm493_vm4, %v5909_v23, %v612_v22  ;;  %v5934_v49 = vrot.slane %v5890_v56, 1  ;;  %v631_v54 = vrot.slane %v629_v40, 1 }
  0x5d   : > { %813 = vrot.lane.b32.xlu1 %v774_v16, %s5517_s24  ;;  %v615_v57 = vshrl.u32 %v5917_v36, 16  ;;  %v601_v61 = vsel %vm493_vm4, %v5919_v37, %v600_v33  ;;  %v776_v62 = vrot.slane %v478_v2, 1  ;;  %v622_v3 = vshll.u32 %v482_v43, 16  ;;  %v459_v33 = vld [vmem:[#allocation2 + $0x170] sm:$0xff] }
  0x5e   : > { %v619_v1 = vrot.slane %v617_v44, 1  ;;  %v5939_v7 = vpack.c.bf16 %v453_v51, %v452_v45  ;;  %v780_v9 = vsel %vm750_vm3, %v5922_v38, %v779_v39  ;;  %v5944_v10 = vor.u32 %v631_v54, %v627_v41  ;;  %v456_v44 = vld [vmem:[#allocation2 + $0x158] sm:$0xff] }
  0x5f   : > { %811 = vrot.lane.b32.xlu0 %v771_v32, %s5517_s24  ;;  %v636_v12 = vrot.slane %v634_v42, 1  ;;  %v5946_v15 = vpack.c.bf16 %v450_v60, %v449_v59  ;;  %v624_v2 = vrot.slane %v622_v3, 1  ;;  %v488_v17 = vpack.c.bf16 %v454_v4, %v454_v4  ;;  %v458_v32 = vld [vmem:[#allocation2 + $0x168] sm:$0xff]  ;;  %v455_v42 = vld [vmem:[#allocation2 + $0x150] sm:$0xff]  ;;  %v460_v3 = vld [vmem:[#allocation2 + $0x178] sm:$0x3] }
  0x60   : > { %v5949_v16 = vor.u32 %v619_v1, %v615_v57  ;;  %v653_v22 = vshll.u32 %v5939_v7, 16  ;;  %v777_v26 = vsel %vm750_vm3, %v5934_v49, %v776_v62  ;;  %v486_v30 = vpack.c.bf16 %v451_v8, %v451_v8  ;;  %v457_v8 = vld [vmem:[#allocation2 + $0x160] sm:$0x3] }
  0x61   : > { %704 = vrot.lane.b32.xlu1 %v613_v53, %s5518_s27  ;;  %v784_v39 = vrot.slane %v5911_v28, 1  ;;  %v785_v40 = vrot.slane %v5915_v34, 1  ;;  %v641_v41 = vshll.u32 %v5946_v15, 16  ;;  %v637_v45 = vsel %vm493_vm4, %v5944_v10, %v636_v12 }
  0x62   : > { %v5961_v51 = vrot.slane %v5917_v36, 1  ;;  %v782_v53 = vrot.slane %v482_v43, 1  ;;  %v651_v54 = vshrl.u32 %v5939_v7, 16  ;;  %v625_v34 = vsel %vm493_vm4, %v5949_v16, %v624_v2 }
  0x63   : > { %702 = vrot.lane.b32.xlu0 %v601_v61, %s5518_s27  ;;  %v655_v57 = vrot.slane %v653_v22, 1  ;;  %v658_v59 = vshll.u32 %v488_v17, 16  ;;  %v5967_v60 = vpack.c.bf16 %v459_v33, %v458_v32  ;;  %v639_v61 = vshrl.u32 %v5946_v15, 16 }
  0x64   : > { %v643_v62 = vrot.slane %v641_v41, 1  ;;  %v646_v1 = vshll.u32 %v486_v30, 16  ;;  %v5970_v4 = vpack.c.bf16 %v456_v44, %v455_v42  ;;  %v786_v43 = vsel %vm750_vm3, %v784_v39, %v785_v40 }
  0x65   : > { %817 = vrot.lane.b32.xlu1 %v780_v9, %s5517_s24  ;;  %v783_v9 = vsel %vm750_vm3, %v5961_v51, %v782_v53  ;;  %v656_v12 = vor.u32 %v655_v57, %v651_v54  ;;  %v660_v2 = vrot.slane %v658_v59, 1  ;;  %v492_v22 = vpack.c.bf16 %v460_v3, %v460_v3 }
  0x66   : > { %v5980_v32 = vor.u32 %v643_v62, %v639_v61  ;;  %v648_v33 = vrot.slane %v646_v1, 1  ;;  %v490_v41 = vpack.c.bf16 %v457_v8, %v457_v8  ;;  %v665_v42 = vshll.u32 %v5970_v4, 16  ;;  %v1144_v8 = vld [vmem:[#allocation2 + $0x40] sm:$0x3] }
  0x67   : > { %815 = vrot.lane.b32.xlu0 %v777_v26, %s5517_s24  ;;  %v677_v26 = vshll.u32 %v5967_v60, 16  ;;  %v790_v40 = vrot.slane %v5939_v7, 1  ;;  %v791_v44 = vrot.slane %v488_v17, 1  ;;  %v788_v53 = vrot.slane %v486_v30, 1  ;;  %v1141_v17 = vld [vmem:[#allocation2 + $0x28] sm:$0x3] }
  0x68   : > { %v661_v54 = vsel %vm493_vm4, %v656_v12, %v660_v2  ;;  %v682_v59 = vshll.u32 %v492_v22, 16  ;;  %v649_v61 = vsel %vm493_vm4, %v5980_v32, %v648_v33  ;;  %v663_v62 = vshrl.u32 %v5970_v4, 16 }
  0x69   : > { %708 = vrot.lane.b32.xlu1 %v637_v45, %s5518_s27  ;;  %v787_v45 = vrot.slane %v5946_v15, 1  ;;  %v679_v57 = vrot.slane %v677_v26, 1  ;;  %v667_v1 = vrot.slane %v665_v42, 1  ;;  %v670_v3 = vshll.u32 %v490_v41, 16 }
  0x6a   : > { %v792_v30 = vsel %vm750_vm3, %v790_v40, %v791_v44  ;;  %v1190_v12 = vpack.c.bf16 %v1144_v8, %v1144_v8  ;;  %v1188_v42 = vpack.c.bf16 %v1141_v17, %v1141_v17  ;;  %v796_v44 = vrot.slane %v5967_v60, 1 }
  0x6b   : > { %706 = vrot.lane.b32.xlu0 %v625_v34, %s5518_s27  ;;  %v675_v34 = vshrl.u32 %v5967_v60, 16  ;;  %v789_v2 = vsel %vm750_vm3, %v787_v45, %v788_v53  ;;  %v5998_v26 = vor.u32 %v667_v1, %v663_v62  ;;  %v672_v33 = vrot.slane %v670_v3, 1  ;;  %v1861_v1 = vld [vmem:[#allocation2 + $0x58] sm:$0x3]  ;;  %v1858_v3 = vld [vmem:[#allocation2 + $0x40] sm:$0x3] }
  0x6c   : > { %v1227_v62 = vshll.u32 %v1188_v42, 16  ;;  %v1907_v17 = vpack.c.bf16 %v1861_v1, %v1861_v1 }
  0x6d   : > { %821 = vrot.lane.b32.xlu1 %v786_v43, %s5517_s24  ;;  %v680_v43 = vor.u32 %v679_v57, %v675_v34  ;;  %v797_v34 = vrot.slane %v492_v22, 1  ;;  %v1239_v57 = vshll.u32 %v1190_v12, 16  ;;  %v673_v53 = vsel %vm493_vm4, %v5998_v26, %v672_v33 }
  0x6e   : > { %v1956_v33 = vshll.u32 %v1907_v17, 16 }
  0x6f   : > { %819 = vrot.lane.b32.xlu0 %v783_v9, %s5517_s24  ;;  %v684_v9 = vrot.slane %v682_v59, 1  ;;  %v793_v59 = vrot.slane %v5970_v4, 1  ;;  %v798_v8 = vsel %vm750_vm3, %v796_v44, %v797_v34  ;;  %v1241_v22 = vrot.slane %v1239_v57, 1  ;;  %v1150_v57 = vld [vmem:[#allocation2 + $0x70] sm:$0x3] }
  0x70   : > { %v1476_v44 = vrot.slane %v1188_v42, 1  ;;  %v1194_v1 = vpack.c.bf16 %v1150_v57, %v1150_v57 }
  0x71   : > { %712 = vrot.lane.b32.xlu1 %v661_v54, %s5518_s27  ;;  %v6004_v54 = vld [vmem:[%s7657_s1 + $0x8] sm:$0x3f]   ;;  %v685_v40 = vsel %vm493_vm4, %v680_v43, %v684_v9  ;;  %v1229_v43 = vrot.slane %v1227_v62, 1  ;;  %v1242_v9 = vsel %vm493_vm4, %v5853_v5, %v1241_v22  ;;  %v1958_v62 = vrot.slane %v1956_v33, 1 }
  0x72   : > { %5486 = vmatprep.subr.msk.bf16.mxu1 %vm936_vm5, %v6004_v54  ;;  %v1867_v33 = vld [vmem:[#allocation2 + $0x88] sm:$0x3] }
  0x73   : > { %710 = vrot.lane.b32.xlu0 %v649_v61, %s5518_s27  ;;  %v794_v61 = vrot.slane %v490_v41, 1  ;;  %v1905_v41 = vpack.c.bf16 %v1858_v3, %v1858_v3  ;;  %v1959_v22 = vsel %vm493_vm4, %v5848_v63, %v1958_v62 }
  0x75   : > { %825 = vrot.lane.b32.xlu1 %v792_v30, %s5517_s24  ;;  %v795_v30 = vsel %vm750_vm3, %v793_v59, %v794_v61  ;;  %v1944_v34 = vshll.u32 %v1905_v41, 16 }
  0x77   : > { %823 = vrot.lane.b32.xlu0 %v789_v2, %s5517_s24  ;;  %v1479_v2 = vrot.slane %v1190_v12, 1  ;;  %v6033_v12 = vld [vmem:[%s7657_s1 + $0x10] sm:$0x3f]   ;;  %v1946_v42 = vrot.slane %v1944_v34, 1 }
  0x79   : > { %716 = vrot.lane.b32.xlu1 %v685_v40, %s5518_s27  ;;  %v1230_v40 = vsel %vm493_vm4, %v5842_v50, %v1229_v43  ;;  %v1480_v61 = vsel %vm750_vm3, %v5806_v19, %v1479_v2  ;;  %v1477_v50 = vsel %vm750_vm3, %v754_v11, %v1476_v44  ;;  %v1263_v43 = vshll.u32 %v1194_v1, 16 }
  0x7a   : > { %v1947_v11 = vsel %vm493_vm4, %v5853_v5, %v1946_v42 }
  0x7b   : > { %714 = vrot.lane.b32.xlu0 %v673_v53, %s5518_s27  ;;  %v1147_v53 = vld [vmem:[#allocation2 + $0x58] sm:$0x3]  ;;  %v1265_v44 = vrot.slane %v1263_v43, 1 }
  0x7c   : > { %v1192_v3 = vpack.c.bf16 %v1147_v53, %v1147_v53 }
  0x7d   : > { %829 = vrot.lane.b32.xlu1 %v798_v8, %s5517_s24  ;;  %v938_v8 = vsel %vm936_vm5, %v5781_v55, 0  ;;  %v1864_v55 = vld [vmem:[#allocation2 + $0x70] sm:$0x3]  ;;  %v1266_v5 = vsel %vm493_vm4, %v5866_v25, %v1265_v44  ;;  %v1873_v44 = vld [vmem:[#allocation2 + $0xb8] sm:$0x3] }
  0x7e   : > { %5282 = vmatpush3.bf16.msra.mxu0 %v938_v8  ;;  %v1251_v2 = vshll.u32 %v1192_v3, 16  ;;  %v1909_v53 = vpack.c.bf16 %v1864_v55, %v1864_v55  ;;  %v1156_v8 = vld [vmem:[#allocation2 + $0xa0] sm:$0x3] }
  0x7f   : > { %827 = vrot.lane.b32.xlu0 %v795_v30, %s5517_s24  ;;  %v2196_v30 = vrot.slane %v1907_v17, 1  ;;  %5487 = vmatprep.subr.msk.bf16.mxu0 %vm936_vm5, %v6033_v12  ;;  %v1911_v17 = vpack.c.bf16 %v1867_v33, %v1867_v33  ;;  %v1198_v43 = vpack.c.bf16 %v1156_v8, %v1156_v8 }
  0x80   : > { %v1253_v57 = vrot.slane %v1251_v2, 1  ;;  %v1968_v42 = vshll.u32 %v1909_v53, 16  ;;  %v2199_v55 = vrot.slane %v1909_v53, 1 }
  0x81   : > { %1413 = vrot.lane.b32.xlu1 %v1242_v9, %s5518_s27  ;;  %v2193_v9 = vrot.slane %v1905_v41, 1  ;;  %v1485_v41 = vrot.slane %v1194_v1, 1  ;;  %v1287_v2 = vshll.u32 %v1198_v43, 16  ;;  %v1491_v53 = vrot.slane %v1198_v43, 1 }
  0x82   : > { %v1254_v62 = vsel %vm493_vm4, %v5848_v63, %v1253_v57 }
  0x83   : > { %1411 = vrot.lane.b32.xlu0 %v1230_v40, %s5518_s27  ;;  %v2197_v40 = vsel %vm750_vm3, %v5814_v27, %v2196_v30  ;;  %v2194_v34 = vsel %vm750_vm3, %v5806_v19, %v2193_v9  ;;  %v1486_v19 = vsel %vm750_vm3, %v5822_v31, %v1485_v41  ;;  %v1289_v57 = vrot.slane %v1287_v2, 1 }
  0x85   : > { %1525 = vrot.lane.b32.xlu1 %v1480_v61, %s5517_s24  ;;  %v1980_v61 = vshll.u32 %v1911_v17, 16 }
  0x87   : > { %1523 = vrot.lane.b32.xlu0 %v1477_v50, %s5517_s24  ;;  %v1482_v50 = vrot.slane %v1192_v3, 1  ;;  %v1982_v30 = vrot.slane %v1980_v61, 1  ;;  %v2202_v3 = vrot.slane %v1911_v17, 1  ;;  %v2200_v17 = vsel %vm750_vm3, %v5822_v31, %v2199_v55 }
  0x89   : > { %2130 = vrot.lane.b32.xlu1 %v1959_v22, %s5518_s27  ;;  %v1153_v22 = vld [vmem:[#allocation2 + $0x88] sm:$0x3]  ;;  %v1483_v1 = vsel %vm750_vm3, %v5814_v27, %v1482_v50  ;;  %v1983_v63 = vsel %vm493_vm4, %v5862_v20, %v1982_v30  ;;  %v2203_v27 = vsel %vm750_vm3, %v5828_v35, %v2202_v3  ;;  %v1162_v30 = vld [vmem:[#allocation2 + $0xd0] sm:$0x3] }
  0x8a   : > { %v1196_v9 = vpack.c.bf16 %v1153_v22, %v1153_v22 }
  0x8b   : > { %2128 = vrot.lane.b32.xlu0 %v1947_v11, %s5518_s27  ;;  %v1970_v11 = vrot.slane %v1968_v42, 1 }
  0x8c   : > { %v1488_v22 = vrot.slane %v1196_v9, 1 }
  0x8d   : > { %2242 = vrot.lane.b32.xlu1 %v2197_v40, %s5517_s24  ;;  %v1971_v33 = vsel %vm493_vm4, %v5866_v25, %v1970_v11  ;;  %v1275_v40 = vshll.u32 %v1196_v9, 16  ;;  %v1290_v25 = vsel %vm493_vm4, %v5888_v52, %v1289_v57  ;;  %v1660_v11 = vsel %vm936_vm5, %v6004_v54, 0  ;;  %v1876_v57 = vld [vmem:[#allocation2 + $0xd0] sm:$0x3] }
  0x8e   : > { %5316 = vmatpush3.bf16.msra.mxu1 %v1660_v11  ;;  %v1202_v9 = vpack.c.bf16 %v1162_v30, %v1162_v30 }
  0x8f   : > { %2240 = vrot.lane.b32.xlu0 %v2194_v34, %s5517_s24  ;;  %v1870_v34 = vld [vmem:[#allocation2 + $0xa0] sm:$0x3]  ;;  %v1277_v41 = vrot.slane %v1275_v40, 1 }
  0x90   : > { %v1913_v61 = vpack.c.bf16 %v1870_v34, %v1870_v34  ;;  %v1311_v55 = vshll.u32 %v1202_v9, 16 }
  0x91   : > { %1417 = vrot.lane.b32.xlu1 %v1266_v5, %s5518_s27  ;;  %v1915_v5 = vpack.c.bf16 %v1873_v44, %v1873_v44  ;;  %v1278_v8 = vsel %vm493_vm4, %v5862_v20, %v1277_v41  ;;  %v1492_v20 = vsel %vm750_vm3, %v5896_v58, %v1491_v53 }
  0x92   : > { %v2205_v44 = vrot.slane %v1913_v61, 1 }
  0x93   : > { %1415 = vrot.lane.b32.xlu0 %v1254_v62, %s5518_s27  ;;  %v5178_v62 = vld [vmem:[%s5735_s23 + $0x78] sm:$0xff]   ;;  %v2004_v50 = vshll.u32 %v1915_v5, 16 }
  0x94   : > { %v5162_v42 = vunpack.c.l.bf16 %v5178_v62  ;;  %v5163_v31 = vunpack.c.h.bf16 %v5178_v62 }
  0x95   : > { %1529 = vrot.lane.b32.xlu1 %v1486_v19, %s5517_s24  ;;  %v1992_v19 = vshll.u32 %v1913_v61, 16  ;;  %v2006_v43 = vrot.slane %v2004_v50, 1  ;;  %v1497_v61 = vrot.slane %v1202_v9, 1 }
  0x96   : > { %410 = vst.msk [vmem:[#allocation2 + $0x181] sm:$0xff] %vm226_vm0, %v5162_v42  ;;  %411 = vst.msk [vmem:[#allocation2 + $0x189] sm:$0xff] %vm226_vm0, %v5163_v31 }
  0x97   : > { %1527 = vrot.lane.b32.xlu0 %v1483_v1, %s5517_s24  ;;  %v1159_v1 = vld [vmem:[#allocation2 + $0xb8] sm:$0x3]  ;;  %v1994_v3 = vrot.slane %v1992_v19, 1  ;;  %v2007_v54 = vsel %vm493_vm4, %v5878_v46, %v2006_v43  ;;  %v1165_v19 = vld [vmem:[#allocation2 + $0xe8] sm:$0x3]  ;;  %v1498_v30 = vsel %vm750_vm3, %v5934_v49, %v1497_v61 }
  0x98   : > { %v1200_v2 = vpack.c.bf16 %v1159_v1, %v1159_v1  ;;  %v1204_v43 = vpack.c.bf16 %v1165_v19, %v1165_v19 }
  0x99   : > { %2134 = vrot.lane.b32.xlu1 %v1983_v63, %s5518_s27  ;;  %v1489_v63 = vsel %vm750_vm3, %v5828_v35, %v1488_v22  ;;  %v1995_v40 = vsel %vm493_vm4, %v5888_v52, %v1994_v3  ;;  %v1168_v22 = vld [vmem:[#allocation2 + $0x100] sm:$0x3] }
  0x9a   : > { %v1299_v34 = vshll.u32 %v1200_v2, 16  ;;  %v1494_v42 = vrot.slane %v1200_v2, 1  ;;  %v1206_v1 = vpack.c.bf16 %v1168_v22, %v1168_v22  ;;  %v1500_v19 = vrot.slane %v1204_v43, 1 }
  0x9b   : > { %2132 = vrot.lane.b32.xlu0 %v1971_v33, %s5518_s27  ;;  %v2208_v33 = vrot.slane %v1915_v5, 1  ;;  %v2206_v5 = vsel %vm750_vm3, %v5896_v58, %v2205_v44  ;;  %v1882_v44 = vld [vmem:[#allocation2 + $0x100] sm:$0x3] }
  0x9c   : > { %v1301_v62 = vrot.slane %v1299_v34, 1 }
  0x9d   : > { %2246 = vrot.lane.b32.xlu1 %v2203_v27, %s5517_s24  ;;  %v1879_v27 = vld [vmem:[#allocation2 + $0xe8] sm:$0x3]  ;;  %v2209_v35 = vsel %vm750_vm3, %v5881_v47, %v2208_v33 }
  0x9e   : > { %v1919_v41 = vpack.c.bf16 %v1879_v27, %v1879_v27  ;;  %v1302_v50 = vsel %vm493_vm4, %v5878_v46, %v1301_v62 }
  0x9f   : > { %2244 = vrot.lane.b32.xlu0 %v2200_v17, %s5517_s24  ;;  %v1313_v17 = vrot.slane %v1311_v55, 1 }
  0xa0   : > { %v2028_v53 = vshll.u32 %v1919_v41, 16  ;;  %v2214_v2 = vrot.slane %v1919_v41, 1 }
  0xa1   : > { %1421 = vrot.lane.b32.xlu1 %v1290_v25, %s5518_s27  ;;  %v1917_v25 = vpack.c.bf16 %v1876_v57, %v1876_v57  ;;  %v1314_v52 = vsel %vm493_vm4, %v5919_v37, %v1313_v17  ;;  %v6135_v17 = vpack.c.bf16 %v1882_v44, %v1882_v44 }
  0xa2   : > { %v2030_v31 = vrot.slane %v2028_v53, 1  ;;  %v2215_v27 = vsel %vm750_vm3, %v5922_v38, %v2214_v2  ;;  %v1503_v53 = vrot.slane %v1206_v1, 1 }
  0xa3   : > { %1419 = vrot.lane.b32.xlu0 %v1278_v8, %s5518_s27  ;;  %v2016_v8 = vshll.u32 %v1917_v25, 16  ;;  %v2211_v55 = vrot.slane %v1917_v25, 1  ;;  %v1169_v25 = vld [vmem:[#allocation2 + $0x108] sm:$0xff] }
  0xa4   : > { %v2031_v3 = vsel %vm493_vm4, %v5909_v23, %v2030_v31  ;;  %v1171_v31 = vld [vmem:[#allocation2 + $0x118] sm:$0x3] }
  0xa5   : > { %1533 = vrot.lane.b32.xlu1 %v1492_v20, %s5517_s24  ;;  %v1495_v20 = vsel %vm750_vm3, %v5881_v47, %v1494_v42  ;;  %v2018_v46 = vrot.slane %v2016_v8, 1  ;;  %v2040_v42 = vshll.u32 %v6135_v17, 16  ;;  %v1174_v8 = vld [vmem:[#allocation2 + $0x130] sm:$0x3] }
  0xa7   : > { %1531 = vrot.lane.b32.xlu0 %v1489_v63, %s5517_s24  ;;  %v2019_v33 = vsel %vm493_vm4, %v5919_v37, %v2018_v46  ;;  %v2212_v37 = vsel %vm750_vm3, %v5934_v49, %v2211_v55 }
  0xa9   : > { %2138 = vrot.lane.b32.xlu1 %v2007_v54, %s5518_s27  ;;  %v1335_v54 = vshll.u32 %v1206_v1, 16  ;;  %v2377_v1 = vsel %vm936_vm5, %v6033_v12, 0  ;;  %v6169_v12 = vpack.c.bf16 %v1171_v31, %v1171_v31 }
  0xab   : > { %2136 = vrot.lane.b32.xlu0 %v1995_v40, %s5518_s27  ;;  %v1323_v40 = vshll.u32 %v1204_v43, 16  ;;  %v1337_v57 = vrot.slane %v1335_v54, 1  ;;  %v1501_v54 = vsel %vm750_vm3, %v5922_v38, %v1500_v19 }
  0xad   : > { %2250 = vrot.lane.b32.xlu1 %v2209_v35, %s5517_s24  ;;  %v1338_v61 = vsel %vm493_vm4, %v5949_v16, %v1337_v57 }
  0xaf   : > { %2248 = vrot.lane.b32.xlu0 %v2206_v5, %s5517_s24  ;;  %v1325_v5 = vrot.slane %v1323_v40, 1  ;;  %v1886_v40 = vld [vmem:[#allocation2 + $0x120] sm:$0xff] }
  0xb1   : > { %1425 = vrot.lane.b32.xlu1 %v1314_v52, %s5518_s27  ;;  %v800_v58 = vpop.permute.xlu1 %799  ;;  %v1170_v52 = vld [vmem:[#allocation2 + $0x110] sm:$0xff]  ;;  %v1326_v49 = vsel %vm493_vm4, %v5909_v23, %v1325_v5  ;;  %v1504_v23 = vsel %vm750_vm3, %v5961_v51, %v1503_v53 }
  0xb3   : > { %1423 = vrot.lane.b32.xlu0 %v1302_v50, %s5518_s27 }
  0xb5   : > { %v687_v11 = vpop.permute.xlu0 %686  ;;  %1537 = vrot.lane.b32.xlu1 %v1498_v30, %s5517_s24 }
  0xb6   : > { %v832_v9 = vsel %vm226_vm0, %v5743_v18, %v687_v11  ;;  %v1885_v18 = vld [vmem:[#allocation2 + $0x118] sm:$0x3] }
  0xb7   : > { %v865_v63 = vsel %vm863_vm6, %v832_v9, %v800_v58  ;;  %1535 = vrot.lane.b32.xlu0 %v1495_v20, %s5517_s24  ;;  %v802_v47 = vpop.permute.xlu1 %801  ;;  %v6133_v35 = vpack.c.bf16 %v1885_v18, %v1885_v18  ;;  %v6153_v58 = vpack.c.bf16 %v1170_v52, %v1169_v25  ;;  %v6160_v20 = vpack.c.bf16 %v1174_v8, %v1174_v8  ;;  %v1887_v18 = vld [vmem:[#allocation2 + $0x128] sm:$0xff]  ;;  %v1888_v8 = vld [vmem:[#allocation2 + $0x130] sm:$0x3] }
  0xb8   : > { %5283 = vmatprep.mubr.msk.bf16.mxu0 %vm903_vm7, %v865_v63  ;;  %v2042_v9 = vrot.slane %v2040_v42, 1  ;;  %v1889_v63 = vld [vmem:[#allocation2 + $0x138] sm:$0xff]  ;;  %v1891_v52 = vld [vmem:[#allocation2 + $0x148] sm:$0x3]  ;;  %v6191_v42 = vpack.c.bf16 %v1887_v18, %v1886_v40 }
  0xb9   : > { %v804_v34 = vpop.permute.xlu0 %803  ;;  %2142 = vrot.lane.b32.xlu1 %v2031_v3, %s5518_s27  ;;  %v2052_v50 = vshll.u32 %v6133_v35, 16  ;;  %v1890_v3 = vld [vmem:[#allocation2 + $0x140] sm:$0xff]  ;;  %v1359_v57 = vshll.u32 %v6160_v20, 16  ;;  %v1340_v25 = vshrl.u32 %v6153_v58, 16 }
  0xba   : > { %v6178_v38 = vpack.c.bf16 %v1890_v3, %v1889_v63  ;;  %v2043_v5 = vsel %vm493_vm4, %v5949_v16, %v2042_v9  ;;  %v2059_v9 = vshll.u32 %v6191_v42, 16 }
  0xbb   : > { %2140 = vrot.lane.b32.xlu0 %v2019_v33, %s5518_s27  ;;  %v6137_v41 = vpop.permute.xlu1 %805  ;;  %v2054_v43 = vrot.slane %v2052_v50, 1  ;;  %v1342_v33 = vshll.u32 %v6153_v58, 16  ;;  %v1347_v50 = vshll.u32 %v6169_v12, 16 }
  0xbc   : > { %v2071_v19 = vshll.u32 %v6178_v38, 16  ;;  %v2061_v18 = vrot.slane %v2059_v9, 1 }
  0xbd   : > { %v6141_v62 = vpop.permute.xlu0 %807  ;;  %2254 = vrot.lane.b32.xlu1 %v2215_v27, %s5517_s24  ;;  %v2217_v27 = vrot.slane %v6135_v17, 1  ;;  %v1344_v53 = vrot.slane %v1342_v33, 1  ;;  %v1506_v33 = vrot.slane %v6169_v12, 1 }
  0xbf   : > { %2252 = vrot.lane.b32.xlu0 %v2212_v37, %s5517_s24  ;;  %v6149_v22 = vpop.permute.xlu1 %809 }
  0xc1   : > { %v689_v30 = vpop.permute.xlu0 %688  ;;  %1429 = vrot.lane.b32.xlu1 %v1338_v61, %s5518_s27 }
  0xc2   : > { %v834_v11 = vsel %vm226_vm0, %v5787_v0, %v689_v30 }
  0xc3   : > { %1427 = vrot.lane.b32.xlu0 %v1326_v49, %s5518_s27  ;;  %v867_v46 = vsel %vm863_vm6, %v834_v11, %v802_v47  ;;  %v693_v2 = vpop.permute.xlu1 %692  ;;  %v2220_v47 = vrot.slane %v6133_v35, 1  ;;  %v2055_v35 = vsel %vm493_vm4, %v5944_v10, %v2054_v43  ;;  %v6199_v49 = vpack.c.bf16 %v1891_v52, %v1891_v52 }
  0xc4   : > { %5284 = vmatmul.mubr.msk.bf16.vlgmr.msra.gmra.mxu0 %vm903_vm7, %v867_v46  ;;  %v838_v17 = vsel %vm226_vm0, %v5800_v13, %v693_v2  ;;  %v2218_v11 = vsel %vm750_vm3, %v5961_v51, %v2217_v27  ;;  %v6210_v43 = vpack.c.bf16 %v1888_v8, %v1888_v8  ;;  %v2073_v51 = vrot.slane %v2071_v19, 1  ;;  %v1180_v27 = vld [vmem:[#allocation2 + $0x160] sm:$0x3]  ;;  %v1892_v19 = vld [vmem:[#allocation2 + $0x150] sm:$0xff] }
  0xc5   : > { %5350 = vmatpush3.bf16.msra.mxu0 %v2377_v1  ;;  %v691_v55 = vpop.permute.xlu0 %690  ;;  %1541 = vrot.lane.b32.xlu1 %v1504_v23, %s5517_s24  ;;  %v2221_v16 = vsel %vm750_vm3, %v784_v39, %v2220_v47  ;;  %v871_v30 = vsel %vm863_vm6, %v838_v17, %v6137_v41  ;;  %v1361_v1 = vrot.slane %v1359_v57, 1  ;;  %v1345_v39 = vor.u32 %v1344_v53, %v1340_v25  ;;  %v1177_v57 = vld [vmem:[#allocation2 + $0x148] sm:$0x3]  ;;  %v1896_v53 = vld [vmem:[#allocation2 + $0x170] sm:$0xff] }
  0xc6   : > { %v836_v44 = vsel %vm226_vm0, %v5793_v6, %v691_v55  ;;  %v1349_v23 = vrot.slane %v1347_v50, 1  ;;  %v1509_v41 = vrot.slane %v6160_v20, 1  ;;  %v2076_v3 = vshll.u32 %v6199_v49, 16 }
  0xc7   : > { %1539 = vrot.lane.b32.xlu0 %v1501_v54, %s5517_s24  ;;  %v869_v37 = vsel %vm863_vm6, %v836_v44, %v804_v34  ;;  %v697_v61 = vpop.permute.xlu1 %696  ;;  %v1362_v2 = vsel %vm493_vm4, %v5980_v32, %v1361_v1  ;;  %v1505_v54 = vrot.slane %v6153_v58, 1  ;;  %v2057_v55 = vshrl.u32 %v6191_v42, 16 }
  0xc8   : > { %5287 = vmatprep.mubr.msk.bf16.mxu0 %vm903_vm7, %v869_v37  ;;  %v842_v47 = vsel %vm226_vm0, %v5816_v29, %v697_v61  ;;  %v1350_v40 = vsel %vm493_vm4, %v1345_v39, %v1349_v23  ;;  %v2064_v44 = vshll.u32 %v6210_v43, 16  ;;  %v1510_v32 = vsel %vm750_vm3, %v787_v45, %v1509_v41  ;;  %v1895_v61 = vld [vmem:[#allocation2 + $0x168] sm:$0xff] }
  0xc9   : > { %v695_v34 = vpop.permute.xlu0 %694  ;;  %2146 = vrot.lane.b32.xlu1 %v2055_v35, %s5518_s27  ;;  %v2078_v35 = vrot.slane %v2076_v3, 1  ;;  %v875_v25 = vsel %vm863_vm6, %v842_v47, %v6149_v22  ;;  %v6239_v52 = vpack.c.bf16 %v1180_v27, %v1180_v27  ;;  %v6241_v17 = vpack.c.bf16 %v1177_v57, %v1177_v57  ;;  %v1893_v22 = vld [vmem:[#allocation2 + $0x158] sm:$0xff] }
  0xca   : > { %v840_v10 = vsel %vm226_vm0, %v5808_v21, %v695_v34  ;;  %v1507_v34 = vsel %vm750_vm3, %v1505_v54, %v1506_v33  ;;  %v2062_v8 = vor.u32 %v2061_v18, %v2057_v55  ;;  %v2222_v39 = vrot.slane %v6191_v42, 1  ;;  %v1894_v54 = vld [vmem:[#allocation2 + $0x160] sm:$0x3] }
  0xcb   : > { %2144 = vrot.lane.b32.xlu0 %v2043_v5, %s5518_s27  ;;  %v873_v31 = vsel %vm863_vm6, %v840_v10, %v6141_v62  ;;  %v701_v46 = vpop.permute.xlu1 %700  ;;  %v2069_v62 = vshrl.u32 %v6178_v38, 16  ;;  %v2066_v10 = vrot.slane %v2064_v44, 1  ;;  %v1383_v23 = vshll.u32 %v6239_v52, 16 }
  0xcc   : > { %5288 = vmatmul.mubr.msk.bf16.gmra.mxu0 %vm903_vm7, %v871_v30  ;;  %v2225_v30 = vrot.slane %v6178_v38, 1  ;;  %v1371_v9 = vshll.u32 %v6241_v17, 16  ;;  %v846_v41 = vsel %vm226_vm0, %v5858_v14, %v701_v46  ;;  %v6262_v3 = vpack.c.bf16 %v1893_v22, %v1892_v19 }
  0xcd   : > { %5291 = vmatprep.mubr.msk.bf16.mxu0 %vm903_vm7, %v873_v31  ;;  %v699_v63 = vpop.permute.xlu0 %698  ;;  %2258 = vrot.lane.b32.xlu1 %v2221_v16, %s5517_s24  ;;  %v6232_v12 = vor.u32 %v2073_v51, %v2069_v62  ;;  %v2226_v31 = vrot.slane %v6199_v49, 1  ;;  %v2067_v49 = vsel %vm493_vm4, %v2062_v8, %v2066_v10  ;;  %v2223_v51 = vrot.slane %v6210_v43, 1 }
  0xce   : > { %v844_v5 = vsel %vm226_vm0, %v5864_v24, %v699_v63  ;;  %v1897_v63 = vld [vmem:[#allocation2 + $0x178] sm:$0x3]  ;;  %v1385_v43 = vrot.slane %v1383_v23, 1  ;;  %v1373_v18 = vrot.slane %v1371_v9, 1 }
  0xcf   : > { %2256 = vrot.lane.b32.xlu0 %v2218_v11, %s5517_s24  ;;  %v814_v20 = vpop.permute.xlu1 %813  ;;  %v6250_v11 = vpack.c.bf16 %v1896_v53, %v1895_v61  ;;  %v2079_v1 = vsel %vm493_vm4, %v6232_v12, %v2078_v35  ;;  %v2227_v33 = vsel %vm750_vm3, %v2225_v30, %v2226_v31  ;;  %v6266_v55 = vpack.c.bf16 %v1897_v63, %v1897_v63  ;;  %v1184_v35 = vld [vmem:[#allocation2 + $0x180] sm:$0xff]  ;;  %v1183_v23 = vld [vmem:[#allocation2 + $0x178] sm:$0x3] }
  0xd0   : > { %v2224_v57 = vsel %vm750_vm3, %v2222_v39, %v2223_v51  ;;  %v1512_v61 = vrot.slane %v6241_v17, 1  ;;  %v1386_v8 = vsel %vm493_vm4, %v5998_v26, %v1385_v43  ;;  %v1374_v10 = vsel %vm493_vm4, %v6232_v12, %v1373_v18 }
  0xd1   : > { %v812_v37 = vpop.permute.xlu0 %811  ;;  %1433 = vrot.lane.b32.xlu1 %v1362_v2, %s5518_s27  ;;  %v2095_v47 = vshll.u32 %v6250_v11, 16  ;;  %v2093_v53 = vshrl.u32 %v6250_v11, 16  ;;  %v2081_v17 = vshrl.u32 %v6262_v3, 16  ;;  %v2232_v43 = vrot.slane %v6266_v55, 1 }
  0xd2   : > { %v877_v50 = vsel %vm863_vm6, %v844_v5, %v812_v37  ;;  %v6276_v37 = vpack.c.bf16 %v1894_v54, %v1894_v54  ;;  %v1513_v12 = vsel %vm750_vm3, %v2225_v30, %v1512_v61  ;;  %v1902_v54 = vld [vmem:[#allocation2 + $0x1a0] sm:$0xff]  ;;  %v2228_v18 = vrot.slane %v6262_v3, 1 }
  0xd3   : > { %1431 = vrot.lane.b32.xlu0 %v1350_v40, %s5518_s27  ;;  %v705_v45 = vpop.permute.xlu1 %704  ;;  %v879_v40 = vsel %vm863_vm6, %v846_v41, %v814_v20  ;;  %v1185_v20 = vld [vmem:[#allocation2 + $0x188] sm:$0xff] }
  0xd4   : > { %5292 = vmatmul.mubr.msk.bf16.gmra.mxu0 %vm903_vm7, %v875_v25  ;;  %v1515_v25 = vrot.slane %v6239_v52, 1  ;;  %v850_v52 = vsel %vm226_vm0, %v5883_v48, %v705_v45  ;;  %v2088_v31 = vshll.u32 %v6276_v37, 16 }
  0xd5   : > { %5295 = vmatprep.mubr.msk.bf16.mxu0 %vm903_vm7, %v877_v50  ;;  %v703_v16 = vpop.permute.xlu0 %702  ;;  %1545 = vrot.lane.b32.xlu1 %v1510_v32, %s5517_s24  ;;  %v2083_v32 = vshll.u32 %v6262_v3, 16  ;;  %v2097_v50 = vrot.slane %v2095_v47, 1 }
  0xd6   : > { %v848_v46 = vsel %vm226_vm0, %v5890_v56, %v703_v16  ;;  %v6290_v16 = vpack.c.bf16 %v1185_v20, %v1184_v35  ;;  %v1516_v26 = vsel %vm750_vm3, %v793_v59, %v1515_v25  ;;  %v2090_v47 = vrot.slane %v2088_v31, 1 }
  0xd7   : > { %1543 = vrot.lane.b32.xlu0 %v1507_v34, %s5517_s24  ;;  %v818_v62 = vpop.permute.xlu1 %817  ;;  %v2100_v34 = vshll.u32 %v6266_v55, 16  ;;  %v2085_v22 = vrot.slane %v2083_v32, 1  ;;  %v6301_v9 = vor.u32 %v2097_v50, %v2093_v53  ;;  %v2229_v53 = vrot.slane %v6276_v37, 1 }
  0xd8   : > { %v883_v63 = vsel %vm863_vm6, %v850_v52, %v818_v62  ;;  %v1402_v51 = vshll.u32 %v6290_v16, 16  ;;  %v1400_v32 = vshrl.u32 %v6290_v16, 16 }
  0xd9   : > { %v816_v2 = vpop.permute.xlu0 %815  ;;  %2150 = vrot.lane.b32.xlu1 %v2079_v1, %s5518_s27  ;;  %v1186_v1 = vld [vmem:[#allocation2 + $0x190] sm:$0x3]  ;;  %v2102_v45 = vrot.slane %v2100_v34, 1  ;;  %v2086_v30 = vor.u32 %v2085_v22, %v2081_v17 }
  0xda   : > { %v881_v44 = vsel %vm863_vm6, %v848_v46, %v816_v2  ;;  %v1901_v2 = vld [vmem:[#allocation2 + $0x198] sm:$0xff]  ;;  %v2231_v46 = vrot.slane %v6250_v11, 1  ;;  %v1404_v35 = vrot.slane %v1402_v51, 1  ;;  %v1520_v51 = vrot.slane %v6290_v16, 1 }
  0xdb   : > { %2148 = vrot.lane.b32.xlu0 %v2067_v49, %s5518_s27  ;;  %v709_v27 = vpop.permute.xlu1 %708  ;;  %v6307_v49 = vpack.c.bf16 %v1186_v1, %v1186_v1  ;;  %v2091_v55 = vsel %vm493_vm4, %v2086_v30, %v2090_v47 }
  0xdc   : > { %5296 = vmatmul.mubr.msk.bf16.gmra.mxu0 %vm903_vm7, %v879_v40  ;;  %v6312_v40 = vpack.c.bf16 %v1183_v23, %v1183_v23  ;;  %v854_v25 = vsel %vm226_vm0, %v5911_v28, %v709_v27  ;;  %v1405_v37 = vor.u32 %v1404_v35, %v1400_v32  ;;  %v2230_v23 = vsel %vm750_vm3, %v2228_v18, %v2229_v53 }
  0xdd   : > { %5299 = vmatprep.mubr.msk.bf16.mxu0 %vm903_vm7, %v881_v44  ;;  %v707_v5 = vpop.permute.xlu0 %706  ;;  %2262 = vrot.lane.b32.xlu1 %v2227_v33, %s5517_s24  ;;  %v6319_v44 = vpack.c.bf16 %v1902_v54, %v1901_v2  ;;  %v1407_v20 = vshll.u32 %v6307_v49, 16  ;;  %v1521_v2 = vrot.slane %v6307_v49, 1 }
  0xde   : > { %v852_v41 = vsel %vm226_vm0, %v5917_v36, %v707_v5  ;;  %v1903_v5 = vld [vmem:[#allocation2 + $0x1a8] sm:$0x3]  ;;  %v1395_v50 = vshll.u32 %v6312_v40, 16 }
  0xdf   : > { %2260 = vrot.lane.b32.xlu0 %v2224_v57, %s5517_s24  ;;  %v822_v19 = vpop.permute.xlu1 %821  ;;  %v2103_v57 = vsel %vm493_vm4, %v6301_v9, %v2102_v45  ;;  %v6333_v52 = vpack.c.bf16 %v1903_v5, %v1903_v5  ;;  %v2119_v17 = vshll.u32 %v6319_v44, 16  ;;  %v1409_v31 = vrot.slane %v1407_v20, 1 }
  0xe0   : > { %v887_v22 = vsel %vm863_vm6, %v854_v25, %v822_v19  ;;  %v2117_v19 = vshrl.u32 %v6319_v44, 16 }
  0xe1   : > { %v820_v39 = vpop.permute.xlu0 %819  ;;  %1437 = vrot.lane.b32.xlu1 %v1386_v8, %s5518_s27  ;;  %v1900_v8 = vld [vmem:[#allocation2 + $0x190] sm:$0x3]  ;;  %v2121_v54 = vrot.slane %v2119_v17, 1 }
  0xe2   : > { %v885_v59 = vsel %vm863_vm6, %v852_v41, %v820_v39  ;;  %v1410_v41 = vsel %vm493_vm4, %v1405_v37, %v1409_v31 }
  0xe3   : > { %1435 = vrot.lane.b32.xlu0 %v1374_v10, %s5518_s27  ;;  %v713_v33 = vpop.permute.xlu1 %712  ;;  %v2233_v10 = vsel %vm750_vm3, %v2231_v46, %v2232_v43 }
  0xe4   : > { %5300 = vmatmul.mubr.msk.bf16.gmra.mxu0 %vm903_vm7, %v883_v63  ;;  %v2124_v63 = vshll.u32 %v6333_v52, 16 }
  0xe5   : > { %5303 = vmatprep.mubr.msk.bf16.mxu0 %vm903_vm7, %v885_v59  ;;  %v711_v62 = vpop.permute.xlu0 %710  ;;  %1549 = vrot.lane.b32.xlu1 %v1516_v26, %s5517_s24  ;;  %v1397_v26 = vrot.slane %v1395_v50, 1  ;;  %v858_v59 = vsel %vm226_vm0, %v5939_v7, %v713_v33  ;;  %v1522_v7 = vsel %vm750_vm3, %v1520_v51, %v1521_v2  ;;  %v2122_v33 = vor.u32 %v2121_v54, %v2117_v19 }
  0xe6   : > { %v856_v27 = vsel %vm226_vm0, %v5946_v15, %v711_v62  ;;  %v1518_v62 = vrot.slane %v6312_v40, 1 }
  0xe7   : > { %1547 = vrot.lane.b32.xlu0 %v1513_v12, %s5517_s24  ;;  %v826_v61 = vpop.permute.xlu1 %825  ;;  %v1933_v12 = vpack.c.bf16 %v1900_v8, %v1900_v8  ;;  %v1398_v47 = vsel %vm493_vm4, %v6301_v9, %v1397_v26 }
  0xe8   : > { %v891_v32 = vsel %vm863_vm6, %v858_v59, %v826_v61  ;;  %v1519_v40 = vsel %vm750_vm3, %v2231_v46, %v1518_v62  ;;  %v2237_v61 = vrot.slane %v6319_v44, 1 }
  0xe9   : > { %v824_v34 = vpop.permute.xlu0 %823  ;;  %2154 = vrot.lane.b32.xlu1 %v2103_v57, %s5518_s27  ;;  %v2112_v43 = vshll.u32 %v1933_v12, 16  ;;  %v2126_v57 = vrot.slane %v2124_v63, 1  ;;  %v2235_v8 = vrot.slane %v1933_v12, 1 }
  0xea   : > { %v889_v1 = vsel %vm863_vm6, %v856_v27, %v824_v34 }
  0xeb   : > { %2152 = vrot.lane.b32.xlu0 %v2091_v55, %s5518_s27  ;;  %v717_v39 = vpop.permute.xlu1 %716  ;;  %v2114_v20 = vrot.slane %v2112_v43, 1  ;;  %v2127_v25 = vsel %vm493_vm4, %v2122_v33, %v2126_v57  ;;  %v2238_v55 = vrot.slane %v6333_v52, 1 }
  0xec   : > { %5304 = vmatmul.mubr.msk.bf16.gmra.mxu0 %vm903_vm7, %v887_v22  ;;  %v862_v53 = vsel %vm226_vm0, %v5967_v60, %v717_v39 }
  0xed   : > { %5307 = vmatprep.mubr.msk.bf16.mxu0 %vm903_vm7, %v889_v1  ;;  %v715_v45 = vpop.permute.xlu0 %714  ;;  %2266 = vrot.lane.b32.xlu1 %v2233_v10, %s5517_s24  ;;  %v2115_v34 = vsel %vm493_vm4, %v1405_v37, %v2114_v20  ;;  %v2239_v60 = vsel %vm750_vm3, %v2237_v61, %v2238_v55 }
  0xee   : > { %v860_v49 = vsel %vm226_vm0, %v5970_v4, %v715_v45 }
  0xef   : > { %2264 = vrot.lane.b32.xlu0 %v2230_v23, %s5517_s24  ;;  %v830_v30 = vpop.permute.xlu1 %829 }
  0xf0   : > { %v895_v52 = vsel %vm863_vm6, %v862_v53, %v830_v30 }
  0xf1   : > { %v828_v18 = vpop.permute.xlu0 %827  ;;  %1441 = vrot.lane.b32.xlu1 %v1410_v41, %s5518_s27 }
  0xf2   : > { %v893_v35 = vsel %vm863_vm6, %v860_v49, %v828_v18 }
  0xf3   : > { %1439 = vrot.lane.b32.xlu0 %v1398_v47, %s5518_s27  ;;  %v1414_v9 = vpop.permute.xlu1 %1413 }
  0xf4   : > { %5308 = vmatmul.mubr.msk.bf16.gmra.mxu0 %vm903_vm7, %v891_v32  ;;  %v1558_v46 = vsel %vm226_vm0, %v5793_v6, %v1414_v9 }
  0xf5   : > { %5311 = vmatprep.mubr.msk.bf16.mxu0 %vm903_vm7, %v893_v35  ;;  %v1412_v5 = vpop.permute.xlu0 %1411  ;;  %1553 = vrot.lane.b32.xlu1 %v1522_v7, %s5517_s24 }
  0xf6   : > { %v1556_v10 = vsel %vm226_vm0, %v5787_v0, %v1412_v5  ;;  %v2236_v0 = vsel %vm750_vm3, %v1520_v51, %v2235_v8 }
  0xf7   : > { %1551 = vrot.lane.b32.xlu0 %v1519_v40, %s5517_s24  ;;  %v1526_v50 = vpop.permute.xlu1 %1525 }
  0xf8   : > { %v1590_v27 = vsel %vm863_vm6, %v1558_v46, %v1526_v50 }
  0xf9   : > { %v1524_v17 = vpop.permute.xlu0 %1523  ;;  %2158 = vrot.lane.b32.xlu1 %v2127_v25, %s5518_s27 }
  0xfa   : > { %v1588_v22 = vsel %vm863_vm6, %v1556_v10, %v1524_v17 }
  0xfb   : > { %2156 = vrot.lane.b32.xlu0 %v2115_v34, %s5518_s27  ;;  %5317 = vmatprep.mubr.msk.bf16.mxu1 %vm903_vm7, %v1588_v22  ;;  %v2131_v37 = vpop.permute.xlu1 %2130 }
  0xfc   : > { %5312 = vmatmul.mubr.msk.bf16.gmra.mxu0 %vm903_vm7, %v895_v52  ;;  %5318 = vmatmul.mubr.msk.bf16.vlgmr.msra.gmra.mxu1 %vm903_vm7, %v1590_v27  ;;  %v2275_v1 = vsel %vm226_vm0, %v5800_v13, %v2131_v37 }
  0xfd   : > { %v2129_v31 = vpop.permute.xlu0 %2128  ;;  %2270 = vrot.lane.b32.xlu1 %v2239_v60, %s5517_s24 }
  0xfe   : > { %v2273_v23 = vsel %vm226_vm0, %v5793_v6, %v2129_v31 }
  0xff   : > { %2268 = vrot.lane.b32.xlu0 %v2236_v0, %s5517_s24  ;;  %v2243_v39 = vpop.permute.xlu1 %2242 }
 0x100   : > { %v2307_v45 = vsel %vm863_vm6, %v2275_v1, %v2243_v39 }
 0x101   : > { %v2241_v26 = vpop.permute.xlu0 %2240 }
 0x102   : > { %v2305_v12 = vsel %vm863_vm6, %v2273_v23, %v2241_v26 }
 0x103   : > { %5351 = vmatprep.mubr.msk.bf16.mxu0 %vm903_vm7, %v2305_v12  ;;  %v1418_v19 = vpop.permute.xlu1 %1417 }
 0x104   : > { %5352 = vmatmul.mubr.msk.bf16.vlgmr.msra.gmra.mxu0 %vm903_vm7, %v2307_v45  ;;  %v1562_v41 = vsel %vm226_vm0, %v5808_v21, %v1418_v19 }
 0x105   : > { %v1416_v63 = vpop.permute.xlu0 %1415 }
 0x106   : > { %v1560_v2 = vsel %vm226_vm0, %v5800_v13, %v1416_v63 }
 0x107   : > { %v1530_v51 = vpop.permute.xlu1 %1529 }
 0x108   : > { %v1594_v59 = vsel %vm863_vm6, %v1562_v41, %v1530_v51 }
 0x109   : > { %v1528_v54 = vpop.permute.xlu0 %1527 }
 0x10a   : > { %v1592_v6 = vsel %vm863_vm6, %v1560_v2, %v1528_v54 }
 0x10b   : > { %5321 = vmatprep.mubr.msk.bf16.mxu1 %vm903_vm7, %v1592_v6  ;;  %v2135_v30 = vpop.permute.xlu1 %2134 }
 0x10c   : > { %5322 = vmatmul.mubr.msk.bf16.gmra.mxu1 %vm903_vm7, %v1594_v59  ;;  %v2279_v62 = vsel %vm226_vm0, %v5816_v29, %v2135_v30 }
 0x10d   : > { %v2133_v47 = vpop.permute.xlu0 %2132 }
 0x10e   : > { %v2277_v18 = vsel %vm226_vm0, %v5808_v21, %v2133_v47 }
 0x10f   : > { %v2247_v43 = vpop.permute.xlu1 %2246 }
 0x110   : > { %v2311_v32 = vsel %vm863_vm6, %v2279_v62, %v2247_v43 }
 0x111   : > { %v2245_v57 = vpop.permute.xlu0 %2244 }
 0x112   : > { %v2309_v13 = vsel %vm863_vm6, %v2277_v18, %v2245_v57 }
 0x113   : > { %5355 = vmatprep.mubr.msk.bf16.mxu0 %vm903_vm7, %v2309_v13  ;;  %v1422_v49 = vpop.permute.xlu1 %1421 }
 0x114   : > { %5356 = vmatmul.mubr.msk.bf16.gmra.mxu0 %vm903_vm7, %v2311_v32  ;;  %v1566_v33 = vsel %vm226_vm0, %v5864_v24, %v1422_v49  ;;  %v2709_v32 = vld [vmem:[#allocation3 + $0x8] sm:$0xff] }
 0x115   : > { %v1420_v7 = vpop.permute.xlu0 %1419 }
 0x116   : > { %v1564_v35 = vsel %vm226_vm0, %v5816_v29, %v1420_v7 }
 0x117   : > { %v1534_v9 = vpop.permute.xlu1 %1533 }
 0x118   : > { %v1598_v21 = vsel %vm863_vm6, %v1566_v33, %v1534_v9  ;;  %v2710_v9 = vld [vmem:[#allocation3 + $0x10] sm:$0x3] }
 0x119   : > { %v1532_v40 = vpop.permute.xlu0 %1531 }
 0x11a   : > { %v1596_v20 = vsel %vm863_vm6, %v1564_v35, %v1532_v40 }
 0x11b   : > { %5325 = vmatprep.mubr.msk.bf16.mxu1 %vm903_vm7, %v1596_v20  ;;  %v2139_v5 = vpop.permute.xlu1 %2138 }
 0x11c   : > { %5326 = vmatmul.mubr.msk.bf16.gmra.mxu1 %vm903_vm7, %v1598_v21  ;;  %v2283_v61 = vsel %vm226_vm0, %v5858_v14, %v2139_v5  ;;  %v2757_v21 = vpack.c.bf16 %v2710_v9, %v2710_v9 }
 0x11d   : > { %v2137_v25 = vpop.permute.xlu0 %2136 }
 0x11e   : > { %v2281_v55 = vsel %vm226_vm0, %v5864_v24, %v2137_v25  ;;  %v2796_v25 = vshll.u32 %v2757_v21, 16 }
 0x11f   : > { %v2251_v53 = vpop.permute.xlu1 %2250 }
 0x120   : > { %v2315_v29 = vsel %vm863_vm6, %v2283_v61, %v2251_v53 }
 0x121   : > { %v2249_v46 = vpop.permute.xlu0 %2248 }
 0x122   : > { %v2313_v50 = vsel %vm863_vm6, %v2281_v55, %v2249_v46 }
 0x123   : > { %5359 = vmatprep.mubr.msk.bf16.mxu0 %vm903_vm7, %v2313_v50  ;;  %v1426_v34 = vpop.permute.xlu1 %1425 }
 0x124   : > { %5360 = vmatmul.mubr.msk.bf16.gmra.mxu0 %vm903_vm7, %v2315_v29  ;;  %v1570_v10 = vsel %vm226_vm0, %v5890_v56, %v1426_v34  ;;  %v2798_v29 = vrot.slane %v2796_v25, 1 }
 0x125   : > { %v1424_v8 = vpop.permute.xlu0 %1423 }
 0x126   : > { %v1568_v17 = vsel %vm226_vm0, %v5858_v14, %v1424_v8 }
 0x127   : > { %v1538_v22 = vpop.permute.xlu1 %1537 }
 0x128   : > { %v1602_v24 = vsel %vm863_vm6, %v1570_v10, %v1538_v22  ;;  %v3045_v22 = vrot.slane %v2757_v21, 1 }
 0x129   : > { %v1536_v52 = vpop.permute.xlu0 %1535 }
 0x12a   : > { %v1600_v27 = vsel %vm863_vm6, %v1568_v17, %v1536_v52 }
 0x12b   : > { %5329 = vmatprep.mubr.msk.bf16.mxu1 %vm903_vm7, %v1600_v27  ;;  %v2143_v60 = vpop.permute.xlu1 %2142 }
 0x12c   : > { %5330 = vmatmul.mubr.msk.bf16.gmra.mxu1 %vm903_vm7, %v1602_v24  ;;  %v2287_v0 = vsel %vm226_vm0, %v5883_v48, %v2143_v60 }
 0x12d   : > { %v2141_v37 = vpop.permute.xlu0 %2140 }
 0x12e   : > { %v2285_v31 = vsel %vm226_vm0, %v5890_v56, %v2141_v37 }
 0x12f   : > { %v2255_v1 = vpop.permute.xlu1 %2254 }
 0x130   : > { %v2319_v14 = vsel %vm863_vm6, %v2287_v0, %v2255_v1 }
 0x131   : > { %v2253_v39 = vpop.permute.xlu0 %2252 }
 0x132   : > { %v2317_v23 = vsel %vm863_vm6, %v2285_v31, %v2253_v39 }
 0x133   : > { %5363 = vmatprep.mubr.msk.bf16.mxu0 %vm903_vm7, %v2317_v23  ;;  %v1430_v26 = vpop.permute.xlu1 %1429 }
 0x134   : > { %5364 = vmatmul.mubr.msk.bf16.gmra.mxu0 %vm903_vm7, %v2319_v14  ;;  %v1574_v45 = vsel %vm226_vm0, %v5917_v36, %v1430_v26 }
 0x135   : > { %v1428_v12 = vpop.permute.xlu0 %1427 }
 0x136   : > { %v1572_v19 = vsel %vm226_vm0, %v5883_v48, %v1428_v12 }
 0x137   : > { %v1542_v63 = vpop.permute.xlu1 %1541 }
 0x138   : > { %v1606_v56 = vsel %vm863_vm6, %v1574_v45, %v1542_v63 }
 0x139   : > { %v1540_v41 = vpop.permute.xlu0 %1539 }
 0x13a   : > { %v1604_v51 = vsel %vm863_vm6, %v1572_v19, %v1540_v41 }
 0x13b   : > { %5333 = vmatprep.mubr.msk.bf16.mxu1 %vm903_vm7, %v1604_v51  ;;  %v2147_v2 = vpop.permute.xlu1 %2146 }
 0x13c   : > { %5334 = vmatmul.mubr.msk.bf16.gmra.mxu1 %vm903_vm7, %v1606_v56  ;;  %v2291_v6 = vsel %vm226_vm0, %v5911_v28, %v2147_v2 }
 0x13d   : > { %v2145_v54 = vpop.permute.xlu0 %2144 }
 0x13e   : > { %v2289_v59 = vsel %vm226_vm0, %v5917_v36, %v2145_v54  ;;  %v2708_v36 = vld [vmem:[#allocation3] sm:$0xff] }
 0x13f   : > { %v2259_v30 = vpop.permute.xlu1 %2258  ;;  %v6467_v33 = vpack.c.bf16 %v2709_v32, %v2708_v36 }
 0x140   : > { %v2323_v48 = vsel %vm863_vm6, %v2291_v6, %v2259_v30 }
 0x141   : > { %v2257_v47 = vpop.permute.xlu0 %2256  ;;  %v2791_v40 = vshll.u32 %v6467_v33, 16  ;;  %v2789_v20 = vshrl.u32 %v6467_v33, 16  ;;  %v3044_v17 = vrot.slane %v6467_v33, 1 }
 0x142   : > { %v2321_v62 = vsel %vm863_vm6, %v2289_v59, %v2257_v47 }
 0x143   : > { %5367 = vmatprep.mubr.msk.bf16.mxu0 %vm903_vm7, %v2321_v62  ;;  %v1434_v43 = vpop.permute.xlu1 %1433  ;;  %v2793_v5 = vrot.slane %v2791_v40, 1  ;;  %v3046_v52 = vsel %vm750_vm3, %v3044_v17, %v3045_v22 }
 0x144   : > { %5368 = vmatmul.mubr.msk.bf16.gmra.mxu0 %vm903_vm7, %v2323_v48  ;;  %v1578_v57 = vsel %vm226_vm0, %v5946_v15, %v1434_v43 }
 0x145   : > { %v1432_v18 = vpop.permute.xlu0 %1431  ;;  %v2794_v53 = vor.u32 %v2793_v5, %v2789_v20  ;;  %v6546_v20 = vld [vmem:[%s7658_s2] ss:$0 sm:$0xff] }
 0x146   : > { %v1576_v28 = vsel %vm226_vm0, %v6153_v58, %v1432_v18 }
 0x147   : > { %v1546_v13 = vpop.permute.xlu1 %1545  ;;  %v2799_v8 = vsel %vm493_vm4, %v2794_v53, %v2798_v29 }
 0x148   : > { %v1610_v49 = vsel %vm863_vm6, %v1578_v57, %v1546_v13  ;;  %2980 = vrot.lane.b32.xlu0 %v2799_v8, %s5518_s27 }
 0x149   : > { %v1544_v7 = vpop.permute.xlu0 %1543 }
 0x14a   : > { %v1608_v35 = vsel %vm863_vm6, %v1576_v28, %v1544_v7 }
 0x14b   : > { %5337 = vmatprep.mubr.msk.bf16.mxu1 %vm903_vm7, %v1608_v35  ;;  %v2151_v15 = vpop.permute.xlu1 %2150 }
 0x14c   : > { %5338 = vmatmul.mubr.msk.bf16.gmra.mxu1 %vm903_vm7, %v1610_v49  ;;  %v2295_v61 = vsel %vm226_vm0, %v6178_v38, %v2151_v15  ;;  %3092 = vrot.lane.b32.xlu0 %v3046_v52, %s5517_s24 }
 0x14d   : > { %v2149_v58 = vpop.permute.xlu0 %2148 }
 0x14e   : > { %v2293_v55 = vsel %vm226_vm0, %v6191_v42, %v2149_v58 }
 0x14f   : > { %v2263_v46 = vpop.permute.xlu1 %2262 }
 0x150   : > { %v2327_v50 = vsel %vm863_vm6, %v2295_v61, %v2263_v46 }
 0x151   : > { %v2261_v34 = vpop.permute.xlu0 %2260 }
 0x152   : > { %v2325_v10 = vsel %vm863_vm6, %v2293_v55, %v2261_v34 }
 0x153   : > { %5371 = vmatprep.mubr.msk.bf16.mxu0 %vm903_vm7, %v2325_v10  ;;  %v1438_v42 = vpop.permute.xlu1 %1437 }
 0x154   : > { %5372 = vmatmul.mubr.msk.bf16.gmra.mxu0 %vm903_vm7, %v2327_v50  ;;  %v1582_v27 = vsel %vm226_vm0, %v5970_v4, %v1438_v42 }
 0x155   : > { %v1436_v24 = vpop.permute.xlu0 %1435 }
 0x156   : > { %v1580_v60 = vsel %vm226_vm0, %v6178_v38, %v1436_v24 }
 0x157   : > { %v1550_v37 = vpop.permute.xlu1 %1549 }
 0x158   : > { %v1614_v0 = vsel %vm863_vm6, %v1582_v27, %v1550_v37 }
 0x159   : > { %v1548_v31 = vpop.permute.xlu0 %1547 }
 0x15a   : > { %v1612_v1 = vsel %vm863_vm6, %v1580_v60, %v1548_v31 }
 0x15b   : > { %5341 = vmatprep.mubr.msk.bf16.mxu1 %vm903_vm7, %v1612_v1  ;;  %v2155_v14 = vpop.permute.xlu1 %2154 }
 0x15c   : > { %5342 = vmatmul.mubr.msk.bf16.gmra.mxu1 %vm903_vm7, %v1614_v0  ;;  %v2299_v4 = vsel %vm226_vm0, %v6250_v11, %v2155_v14 }
 0x15d   : > { %v2153_v39 = vpop.permute.xlu0 %2152 }
 0x15e   : > { %v2297_v23 = vsel %vm226_vm0, %v6262_v3, %v2153_v39 }
 0x15f   : > { %v2267_v26 = vpop.permute.xlu1 %2266 }
 0x160   : > { %v2331_v38 = vsel %vm863_vm6, %v2299_v4, %v2267_v26 }
 0x161   : > { %v2265_v12 = vpop.permute.xlu0 %2264 }
 0x162   : > { %v2329_v45 = vsel %vm863_vm6, %v2297_v23, %v2265_v12 }
 0x163   : > { %5375 = vmatprep.mubr.msk.bf16.mxu0 %vm903_vm7, %v2329_v45  ;;  %v1442_v19 = vpop.permute.xlu1 %1441 }
 0x164   : > { %5376 = vmatmul.mubr.msk.bf16.gmra.mxu0 %vm903_vm7, %v2331_v38  ;;  %v1586_v56 = vsel %vm226_vm0, %v6290_v16, %v1442_v19 }
 0x165   : > { %v1440_v63 = vpop.permute.xlu0 %1439 }
 0x166   : > { %v1584_v41 = vsel %vm226_vm0, %v6250_v11, %v1440_v63 }
 0x167   : > { %v1554_v51 = vpop.permute.xlu1 %1553 }
 0x168   : > { %v1618_v3 = vsel %vm863_vm6, %v1586_v56, %v1554_v51 }
 0x169   : > { %v1552_v2 = vpop.permute.xlu0 %1551 }
 0x16a   : > { %v1616_v54 = vsel %vm863_vm6, %v1584_v41, %v1552_v2 }
 0x16b   : > { %5345 = vmatprep.mubr.msk.bf16.mxu1 %vm903_vm7, %v1616_v54  ;;  %v2159_v6 = vpop.permute.xlu1 %2158 }
 0x16c   : > { %5346 = vmatmul.mubr.msk.bf16.gmra.mxu1 %vm903_vm7, %v1618_v3  ;;  %v2303_v30 = vsel %vm226_vm0, %v6319_v44, %v2159_v6 }
 0x16d   : > { %v2157_v59 = vpop.permute.xlu0 %2156 }
 0x16e   : > { %v2301_v48 = vsel %vm226_vm0, %v6290_v16, %v2157_v59 }
 0x16f   : > { %v2271_v47 = vpop.permute.xlu1 %2270 }
 0x170   : > { %v2335_v11 = vsel %vm863_vm6, %v2303_v30, %v2271_v47 }
 0x171   : > { %v2269_v62 = vpop.permute.xlu0 %2268 }
 0x172   : > { %v2333_v43 = vsel %vm863_vm6, %v2301_v48, %v2269_v62 }
 0x173   : > { %5379 = vmatprep.mubr.msk.bf16.mxu0 %vm903_vm7, %v2333_v43 }
 0x174   : > { %5380 = vmatmul.mubr.msk.bf16.gmra.mxu0 %vm903_vm7, %v2335_v11 }
 0x184   : > { %v5285_v18 = vpop.f32.mrf.mxu0 }
 0x185   : > { %v1109_v63 = vadd.f32 %v5285_v18, %v6546_v20 }
 0x186   : > { %v974_v57 = vpop.f32.mrf.mxu0 }
 0x187   : > { %v1107_v3 = vadd.f32 %v6546_v20, %v974_v57 }
 0x188   : > { %v5286_v28 = vpop.f32.mrf.mxu0 }
 0x189   : > { %v1110_v30 = vadd.f32 %v5286_v28, %v6546_v20 }
 0x18a   : > { %v977_v13 = vpop.f32.mrf.mxu0 }
 0x18b   : > { %v1108_v18 = vadd.f32 %v6546_v20, %v977_v13 }
 0x18c   : > { %v6519_v36 = vpop.f32.mrf.mxu0 }
 0x18e   : > { %v6521_v44 = vpop.f32.mrf.mxu0 }
 0x190   : > { %v6523_v32 = vpop.f32.mrf.mxu0 }
 0x192   : > { %v6525_v16 = vpop.f32.mrf.mxu0 }
 0x194   : > { %v6527_v49 = vpop.f32.mrf.mxu0 }
 0x196   : > { %v6529_v7 = vpop.f32.mrf.mxu0 }
 0x198   : > { %v6531_v35 = vpop.f32.mrf.mxu0 }
 0x19a   : > { %v6533_v9 = vpop.f32.mrf.mxu0 }
 0x19c   : > { %v6535_v21 = vpop.f32.mrf.mxu0 }
 0x19e   : > { %v6537_v40 = vpop.f32.mrf.mxu0 }
 0x1a0   : > { %v6539_v15 = vpop.f32.mrf.mxu0 }
 0x1a2   : > { %v6541_v58 = vpop.f32.mrf.mxu0 }
 0x1a4   : > { %v5301_v5 = vpop.f32.mrf.mxu0 }
 0x1a5   : > { %v6549_v25 = vadd.f32 %v5301_v5, %v6546_v20 }
 0x1a6   : > { %v1038_v61 = vpop.f32.mrf.mxu0 }
 0x1a7   : > { %v6552_v55 = vadd.f32 %v6546_v20, %v1038_v61 }
 0x1a8   : > { %v5302_v53 = vpop.f32.mrf.mxu0 }
 0x1a9   : > { %v6555_v29 = vadd.f32 %v5302_v53, %v6546_v20 }
 0x1aa   : > { %v1041_v46 = vpop.f32.mrf.mxu0 }
 0x1ab   : > { %v6558_v50 = vadd.f32 %v6546_v20, %v1041_v46 }
 0x1ac   : > { %v5305_v34 = vpop.f32.mrf.mxu0 }
 0x1ad   : > { %v6561_v8 = vadd.f32 %v5305_v34, %v6546_v20 }
 0x1ae   : > { %v1054_v10 = vpop.f32.mrf.mxu0 }
 0x1af   : > { %v6564_v17 = vadd.f32 %v6546_v20, %v1054_v10 }
 0x1b0   : > { %v5306_v22 = vpop.f32.mrf.mxu0 }
 0x1b1   : > { %v6567_v42 = vadd.f32 %v5306_v22, %v6546_v20 }
 0x1b2   : > { %v1057_v24 = vpop.f32.mrf.mxu0 }
 0x1b3   : > { %v6570_v52 = vadd.f32 %v6546_v20, %v1057_v24 }
 0x1b4   : > { %v5309_v27 = vpop.f32.mrf.mxu0 }
 0x1b5   : > { %v6573_v60 = vadd.f32 %v5309_v27, %v6546_v20 }
 0x1b6   : > { %v1070_v37 = vpop.f32.mrf.mxu0 }
 0x1b7   : > { %v6576_v0 = vadd.f32 %v6546_v20, %v1070_v37 }
 0x1b8   : > { %v5310_v31 = vpop.f32.mrf.mxu0 }
 0x1b9   : > { %v6579_v1 = vadd.f32 %v5310_v31, %v6546_v20 }
 0x1ba   : > { %v1073_v14 = vpop.f32.mrf.mxu0  ;;  %v2981_v59 = vpop.permute.xlu0 %2980 }
 0x1bb   : > { %v6582_v39 = vadd.f32 %v6546_v20, %v1073_v14  ;;  %v3125_v43 = vsel %vm226_vm0, %v6467_v33, %v2981_v59  ;;  %v1113_v14 = vadd.f32 %v6519_v36, %v6546_v20 }
 0x1bc   : > { %v5313_v4 = vpop.f32.mrf.mxu0  ;;  %v5319_v23 = vpop.f32.mrf.mxu1 }
 0x1bd   : > { %v6585_v26 = vadd.f32 %v5313_v4, %v6546_v20  ;;  %v1825_v2 = vadd.f32 %v5319_v23, %v1109_v63  ;;  %v5505_v23 = vld [vmem:[%s7659_s3] sm:$0x3f]  }
 0x1be   : > { %v1086_v38 = vpop.f32.mrf.mxu0  ;;  %v1696_v12 = vpop.f32.mrf.mxu1  ;;  %5488 = vmatprep.subr.msk.bf16.mxu1 %vm936_vm5, %v5505_v23  ;;  %v3228_v63 = vsel %vm936_vm5, %v5505_v23, 0 }
 0x1bf   : > { %v6588_v45 = vadd.f32 %v6546_v20, %v1086_v38  ;;  %v1823_v48 = vadd.f32 %v1696_v12, %v1107_v3  ;;  %v3093_v46 = vpop.permute.xlu0 %3092  ;;  %v1111_v38 = vadd.f32 %v6546_v20, %v6521_v44  ;;  %5384 = vmatpush3.bf16.msra.mxu1 %v3228_v63 }
 0x1c0   : > { %v5314_v19 = vpop.f32.mrf.mxu0  ;;  %v5320_v41 = vpop.f32.mrf.mxu1  ;;  %v3157_v28 = vsel %vm863_vm6, %v3125_v43, %v3093_v46 }
 0x1c1   : > { %v6592_v56 = vadd.f32 %v5314_v19, %v6546_v20  ;;  %v1826_v5 = vadd.f32 %v5320_v41, %v1110_v30  ;;  %5385 = vmatprep.mubr.msk.bf16.mxu1 %vm903_vm7, %v3157_v28  ;;  %v1114_v41 = vadd.f32 %v6523_v32, %v6546_v20 }
 0x1c2   : > { %v1089_v51 = vpop.f32.mrf.mxu0  ;;  %v1699_v11 = vpop.f32.mrf.mxu1 }
 0x1c3   : > { %v6596_v54 = vadd.f32 %v6546_v20, %v1089_v51  ;;  %v1824_v34 = vadd.f32 %v1699_v11, %v1108_v18 }
 0x1c4   : > { %v5353_v6 = vpop.f32.mrf.mxu0 }
 0x1c5   : > { %v2542_v47 = vadd.f32 %v5353_v6, %v1825_v2 }
 0x1c6   : > { %v2413_v62 = vpop.f32.mrf.mxu0 }
 0x1c7   : > { %v2574_v61 = vmax.f32 %v2542_v47, 0.0  ;;  %v2540_v57 = vadd.f32 %v2413_v62, %v1823_v48  ;;  %v1112_v62 = vadd.f32 %v6546_v20, %v6525_v16 }
 0x1c8   : > { %v5354_v53 = vpop.f32.mrf.mxu0 }
 0x1c9   : > { %2607 = vst.msk [vmem:[#allocation3 + $0x31] sm:$0xff] %vm226_vm0, %v2574_v61  ;;  %v2572_v10 = vmax.f32 %v2540_v57, 0.0  ;;  %v2543_v22 = vadd.f32 %v5354_v53, %v1826_v5 }
 0x1ca   : > { %v2416_v24 = vpop.f32.mrf.mxu0 }
 0x1cb   : > { %2605 = vst.msk [vmem:[#allocation3 + $0x19] sm:$0xff] %vm226_vm0, %v2572_v10  ;;  %v2575_v33 = vmax.f32 %v2543_v22, 0.0  ;;  %v2541_v27 = vadd.f32 %v2416_v24, %v1824_v34 }
 0x1cc   : > { %v5323_v13 = vpop.f32.mrf.mxu1 }
 0x1cd   : > { %2608 = vst.msk [vmem:[#allocation3 + $0x39] sm:$0xff] %vm226_vm0, %v2575_v33  ;;  %v2573_v37 = vmax.f32 %v2541_v27, 0.0  ;;  %v1829_v12 = vadd.f32 %v5323_v13, %v1113_v14 }
 0x1ce   : > { %v1712_v31 = vpop.f32.mrf.mxu1 }
 0x1cf   : > { %2606 = vst.msk [vmem:[#allocation3 + $0x21] sm:$0xff] %vm226_vm0, %v2573_v37  ;;  %v1827_v51 = vadd.f32 %v1712_v31, %v1111_v38 }
 0x1d0   : > { %v5324_v4 = vpop.f32.mrf.mxu1  ;;  %v3426_v19 = vld [vmem:[#allocation3 + $0x30] sm:$0xff] }
 0x1d1   : > { %v1830_v43 = vadd.f32 %v5324_v4, %v1114_v41 }
 0x1d2   : > { %v1715_v59 = vpop.f32.mrf.mxu1  ;;  %v2711_v10 = vld [vmem:[#allocation3 + $0x18] sm:$0xff] }
 0x1d3   : > { %v1828_v28 = vadd.f32 %v1715_v59, %v1112_v62 }
 0x1d4   : > { %v5357_v3 = vpop.f32.mrf.mxu0  ;;  %v3427_v36 = vld [vmem:[#allocation3 + $0x38] sm:$0xff]  ;;  %v3428_v2 = vld [vmem:[#allocation3 + $0x40] sm:$0x3] }
 0x1d5   : > { %v2716_v6 = vld [vmem:[#allocation3 + $0x40] sm:$0x3]  ;;  %v2546_v30 = vadd.f32 %v5357_v3, %v1829_v12  ;;  %v6619_v48 = vpack.c.bf16 %v3427_v36, %v3426_v19  ;;  %v3474_v44 = vpack.c.bf16 %v3428_v2, %v3428_v2 }
 0x1d6   : > { %v6621_v47 = vpack.c.bf16 %v2716_v6, %v2716_v6  ;;  %v4142_v11 = vld [vmem:[#allocation3 + $0x40] sm:$0x3]  ;;  %v2429_v18 = vpop.f32.mrf.mxu0  ;;  %v2713_v61 = vld [vmem:[#allocation3 + $0x28] sm:$0x3] }
 0x1d7   : > { %v6625_v32 = vpack.c.bf16 %v4142_v11, %v4142_v11  ;;  %v2712_v5 = vld [vmem:[#allocation3 + $0x20] sm:$0xff]  ;;  %v2578_v57 = vmax.f32 %v2546_v30, 0.0  ;;  %v2544_v53 = vadd.f32 %v2429_v18, %v1827_v51  ;;  %v3762_v46 = vrot.slane %v6619_v48, 1  ;;  %v3425_v22 = vld [vmem:[#allocation3 + $0x28] sm:$0x3] }
 0x1d8   : > { %v3763_v34 = vrot.slane %v3474_v44, 1  ;;  %v5358_v24 = vpop.f32.mrf.mxu0  ;;  %v3051_v33 = vrot.slane %v6621_v47, 1  ;;  %v6629_v27 = vpack.c.bf16 %v2712_v5, %v2711_v10  ;;  %v2759_v16 = vpack.c.bf16 %v2713_v61, %v2713_v61  ;;  %v5506_v61 = vld [vmem:[%s7659_s3 + $0x8] sm:$0x3f]  }
 0x1d9   : > { %2611 = vst.msk [vmem:[#allocation3 + $0x61] sm:$0xff] %vm226_vm0, %v2578_v57  ;;  %v2576_v13 = vmax.f32 %v2544_v53, 0.0  ;;  %v2547_v37 = vadd.f32 %v5358_v24, %v1830_v43  ;;  %v4477_v14 = vrot.slane %v6625_v32, 1  ;;  %v6637_v19 = vpack.c.bf16 %v3425_v22, %v3425_v22  ;;  %5489 = vmatprep.subr.msk.bf16.mxu0 %vm936_vm5, %v5506_v61 }
 0x1da   : > { %v3764_v31 = vsel %vm750_vm3, %v3762_v46, %v3763_v34  ;;  %v3052_v4 = vsel %vm750_vm3, %v3762_v46, %v3051_v33  ;;  %v2432_v23 = vpop.f32.mrf.mxu0  ;;  %v3047_v38 = vrot.slane %v6629_v27, 1  ;;  %v3048_v12 = vrot.slane %v2759_v16, 1 }
 0x1db   : > { %3809 = vrot.lane.b32.xlu1 %v3764_v31, %s5517_s24  ;;  %2609 = vst.msk [vmem:[#allocation3 + $0x49] sm:$0xff] %vm226_vm0, %v2576_v13  ;;  %v2579_v63 = vmax.f32 %v2547_v37, 0.0  ;;  %3096 = vrot.lane.b32.xlu0 %v3052_v4, %s5517_s24  ;;  %v2545_v41 = vadd.f32 %v2432_v23, %v1828_v28  ;;  %v3518_v3 = vshll.u32 %v6619_v48, 16  ;;  %v3523_v36 = vshll.u32 %v3474_v44, 16 }
 0x1dc   : > { %v5327_v51 = vpop.f32.mrf.mxu1  ;;  %v4478_v6 = vsel %vm750_vm3, %v3762_v46, %v4477_v14  ;;  %v3049_v59 = vsel %vm750_vm3, %v3047_v38, %v3048_v12  ;;  %v3760_v11 = vrot.slane %v6637_v19, 1  ;;  %v3516_v62 = vshrl.u32 %v6619_v48, 16 }
 0x1dd   : > { %2612 = vst.msk [vmem:[#allocation3 + $0x69] sm:$0xff] %vm226_vm0, %v2579_v63  ;;  %v2577_v2 = vmax.f32 %v2545_v41, 0.0  ;;  %v3520_v43 = vrot.slane %v3518_v3, 1  ;;  %v2803_v18 = vshll.u32 %v6629_v27, 16  ;;  %v2820_v44 = vshll.u32 %v6621_v47, 16 }
 0x1de   : > { %v1728_v30 = vpop.f32.mrf.mxu1  ;;  %v2801_v5 = vshrl.u32 %v6629_v27, 16  ;;  %v3525_v53 = vrot.slane %v3523_v36, 1  ;;  %v2808_v34 = vshll.u32 %v2759_v16, 16  ;;  %v1117_v10 = vadd.f32 %v6527_v49, %v6546_v20 }
 0x1df   : > { %3094 = vrot.lane.b32.xlu1 %v3049_v59, %s5517_s24  ;;  %2610 = vst.msk [vmem:[#allocation3 + $0x51] sm:$0xff] %vm226_vm0, %v2577_v2  ;;  %4524 = vrot.lane.b32.xlu0 %v4478_v6, %s5517_s24  ;;  %v3521_v57 = vor.u32 %v3520_v43, %v3516_v62  ;;  %v2805_v46 = vrot.slane %v2803_v18, 1  ;;  %v3761_v28 = vsel %vm750_vm3, %v3047_v38, %v3760_v11  ;;  %v3944_v33 = vsel %vm936_vm5, %v5506_v61, 0 }
 0x1e0   : > { %v5328_v22 = vpop.f32.mrf.mxu1  ;;  %v1115_v13 = vadd.f32 %v6546_v20, %v6529_v7  ;;  %v1833_v37 = vadd.f32 %v5327_v51, %v1117_v10  ;;  %v2822_v49 = vrot.slane %v2820_v44, 1  ;;  %v1118_v16 = vadd.f32 %v6531_v35, %v6546_v20  ;;  %v3432_v38 = vld [vmem:[#allocation3 + $0x60] sm:$0xff]  ;;  %5418 = vmatpush3.bf16.msra.mxu0 %v3944_v33 }
 0x1e1   : > { %v3526_v47 = vsel %vm493_vm4, %v3521_v57, %v3525_v53  ;;  %v6661_v24 = vor.u32 %v2805_v46, %v2801_v5  ;;  %v1116_v31 = vadd.f32 %v6546_v20, %v6533_v9  ;;  %v2810_v4 = vrot.slane %v2808_v34, 1 }
 0x1e2   : > { %v4228_v23 = vshll.u32 %v6625_v32, 16  ;;  %v1831_v7 = vadd.f32 %v1728_v30, %v1115_v13  ;;  %v1731_v41 = vpop.f32.mrf.mxu1  ;;  %v1834_v2 = vadd.f32 %v5328_v22, %v1118_v16  ;;  %v2823_v35 = vsel %vm493_vm4, %v3521_v57, %v2822_v49  ;;  %v2717_v5 = vld [vmem:[#allocation3 + $0x48] sm:$0xff] }
 0x1e3   : > { %3807 = vrot.lane.b32.xlu0 %v3761_v28, %s5517_s24  ;;  %3697 = vrot.lane.b32.xlu1 %v3526_v47, %s5518_s27  ;;  %v2811_v9 = vsel %vm493_vm4, %v6661_v24, %v2810_v4  ;;  %v3511_v32 = vshll.u32 %v6637_v19, 16  ;;  %v1832_v53 = vadd.f32 %v1731_v41, %v1116_v31 }
 0x1e4   : > { %v5361_v14 = vpop.f32.mrf.mxu0  ;;  %v3433_v12 = vld [vmem:[#allocation3 + $0x68] sm:$0xff]  ;;  %v3434_v63 = vld [vmem:[#allocation3 + $0x70] sm:$0x3]  ;;  %v4230_v34 = vrot.slane %v4228_v23, 1 }
 0x1e5   : > { %v2550_v51 = vadd.f32 %v5361_v14, %v1833_v37  ;;  %v6673_v3 = vpack.c.bf16 %v3433_v12, %v3432_v38  ;;  %v6675_v36 = vpack.c.bf16 %v3434_v63, %v3434_v63  ;;  %v2722_v62 = vld [vmem:[#allocation3 + $0x70] sm:$0x3]  ;;  %v3513_v38 = vrot.slane %v3511_v32, 1 }
 0x1e6   : > { %v2445_v6 = vpop.f32.mrf.mxu0  ;;  %v2718_v59 = vld [vmem:[#allocation3 + $0x50] sm:$0xff]  ;;  %v2719_v11 = vld [vmem:[#allocation3 + $0x58] sm:$0x3]  ;;  %v6694_v33 = vpack.c.bf16 %v2722_v62, %v2722_v62  ;;  %v4231_v13 = vsel %vm493_vm4, %v3521_v57, %v4230_v34  ;;  %v1121_v62 = vadd.f32 %v6535_v21, %v6546_v20  ;;  %v1122_v21 = vadd.f32 %v6539_v15, %v6546_v20 }
 0x1e7   : > { %v2582_v43 = vmax.f32 %v2550_v51, 0.0  ;;  %2984 = vrot.lane.b32.xlu0 %v2823_v35, %s5518_s27  ;;  %2982 = vrot.lane.b32.xlu1 %v2811_v9, %s5518_s27  ;;  %v2548_v30 = vadd.f32 %v2445_v6, %v1831_v7  ;;  %v6684_v18 = vrot.slane %v6673_v3, 1  ;;  %v3769_v44 = vrot.slane %v6675_v36, 1  ;;  %v4145_v61 = vld [vmem:[#allocation3 + $0x58] sm:$0x3] }
 0x1e8   : > { %v5362_v46 = vpop.f32.mrf.mxu0  ;;  %v6687_v19 = vpack.c.bf16 %v2718_v59, %v2717_v5  ;;  %v6689_v10 = vpack.c.bf16 %v2719_v11, %v2719_v11  ;;  %v6701_v31 = vpack.c.bf16 %v4145_v61, %v4145_v61  ;;  %v4148_v14 = vld [vmem:[#allocation3 + $0x70] sm:$0x3]  ;;  %v3542_v57 = vshll.u32 %v6673_v3, 16 }
 0x1e9   : > { %2615 = vst.msk [vmem:[#allocation3 + $0x91] sm:$0xff] %vm226_vm0, %v2582_v43  ;;  %v2580_v22 = vmax.f32 %v2548_v30, 0.0  ;;  %v2551_v28 = vadd.f32 %v5362_v46, %v1834_v2  ;;  %v3770_v47 = vsel %vm750_vm3, %v6684_v18, %v3769_v44  ;;  %v3514_v7 = vsel %vm493_vm4, %v6661_v24, %v3513_v38  ;;  %v3431_v24 = vld [vmem:[#allocation3 + $0x58] sm:$0x3] }
 0x1ea   : > { %v2448_v37 = vpop.f32.mrf.mxu0  ;;  %v6698_v49 = vrot.slane %v6687_v19, 1  ;;  %v3054_v16 = vrot.slane %v6689_v10, 1  ;;  %v3057_v41 = vrot.slane %v6694_v33, 1  ;;  %v6711_v51 = vpack.c.bf16 %v4148_v14, %v4148_v14 }
 0x1eb   : > { %2613 = vst.msk [vmem:[#allocation3 + $0x79] sm:$0xff] %vm226_vm0, %v2580_v22  ;;  %v2583_v4 = vmax.f32 %v2551_v28, 0.0  ;;  %4412 = vrot.lane.b32.xlu0 %v4231_v13, %s5518_s27  ;;  %3813 = vrot.lane.b32.xlu1 %v3770_v47, %s5517_s24  ;;  %v2549_v23 = vadd.f32 %v2448_v37, %v1832_v53  ;;  %v4480_v9 = vrot.slane %v6701_v31, 1  ;;  %v3544_v6 = vrot.slane %v3542_v57, 1 }
 0x1ec   : > { %v5331_v12 = vpop.f32.mrf.mxu1  ;;  %v3055_v2 = vsel %vm750_vm3, %v6698_v49, %v3054_v16  ;;  %v2827_v32 = vshll.u32 %v6687_v19, 16  ;;  %v3540_v59 = vshrl.u32 %v6673_v3, 16  ;;  %v3547_v11 = vshll.u32 %v6675_v36, 16 }
 0x1ed   : > { %2616 = vst.msk [vmem:[#allocation3 + $0x99] sm:$0xff] %vm226_vm0, %v2583_v4  ;;  %v2581_v63 = vmax.f32 %v2549_v23, 0.0  ;;  %v3058_v43 = vsel %vm750_vm3, %v6684_v18, %v3057_v41  ;;  %v4483_v30 = vrot.slane %v6711_v51, 1  ;;  %v4481_v5 = vsel %vm750_vm3, %v6698_v49, %v4480_v9 }
 0x1ee   : > { %v1744_v35 = vpop.f32.mrf.mxu1  ;;  %v6729_v61 = vor.u32 %v3544_v6, %v3540_v59  ;;  %v6731_v53 = vpack.c.bf16 %v3431_v24, %v3431_v24  ;;  %v2829_v46 = vrot.slane %v2827_v32, 1  ;;  %v1119_v36 = vadd.f32 %v6546_v20, %v6537_v40 }
 0x1ef   : > { %2614 = vst.msk [vmem:[#allocation3 + $0x81] sm:$0xff] %vm226_vm0, %v2581_v63  ;;  %3695 = vrot.lane.b32.xlu0 %v3514_v7, %s5518_s27  ;;  %3098 = vrot.lane.b32.xlu1 %v3055_v2, %s5517_s24  ;;  %v1837_v34 = vadd.f32 %v5331_v12, %v1121_v62  ;;  %v3549_v28 = vrot.slane %v3547_v11, 1  ;;  %v2825_v47 = vshrl.u32 %v6687_v19, 16  ;;  %v2832_v13 = vshll.u32 %v6689_v10, 16 }
 0x1f0   : > { %v5332_v44 = vpop.f32.mrf.mxu1  ;;  %v1120_v37 = vadd.f32 %v6546_v20, %v6541_v58  ;;  %v1835_v16 = vadd.f32 %v1744_v35, %v1119_v36  ;;  %v4484_v40 = vsel %vm750_vm3, %v6684_v18, %v4483_v30  ;;  %v3766_v15 = vrot.slane %v6731_v53, 1  ;;  %v3438_v32 = vld [vmem:[#allocation3 + $0x90] sm:$0xff] }
 0x1f1   : > { %v3550_v23 = vsel %vm493_vm4, %v6729_v61, %v3549_v28  ;;  %v6748_v12 = vor.u32 %v2829_v46, %v2825_v47  ;;  %v2844_v57 = vshll.u32 %v6694_v33, 16  ;;  %v1838_v10 = vadd.f32 %v5332_v44, %v1122_v21 }
 0x1f2   : > { %v1747_v4 = vpop.f32.mrf.mxu1  ;;  %v4240_v20 = vshll.u32 %v6701_v31, 16  ;;  %v2834_v2 = vrot.slane %v2832_v13, 1  ;;  %v4252_v33 = vshll.u32 %v6711_v51, 16  ;;  %v3767_v24 = vsel %vm750_vm3, %v6698_v49, %v3766_v15 }
 0x1f3   : > { %3100 = vrot.lane.b32.xlu0 %v3058_v43, %s5517_s24  ;;  %4526 = vrot.lane.b32.xlu1 %v4481_v5, %s5517_s24  ;;  %v1836_v35 = vadd.f32 %v1747_v4, %v1120_v37  ;;  %v2846_v30 = vrot.slane %v2844_v57, 1 }
 0x1f4   : > { %v5365_v22 = vpop.f32.mrf.mxu0  ;;  %v3439_v18 = vld [vmem:[#allocation3 + $0x98] sm:$0xff]  ;;  %v3440_v7 = vld [vmem:[#allocation3 + $0xa0] sm:$0x3]  ;;  %v2835_v59 = vsel %vm493_vm4, %v6748_v12, %v2834_v2  ;;  %v4242_v44 = vrot.slane %v4240_v20, 1  ;;  %v4254_v4 = vrot.slane %v4252_v33, 1 }
 0x1f5   : > { %v2554_v14 = vadd.f32 %v5365_v22, %v1837_v34  ;;  %v6760_v31 = vpack.c.bf16 %v3439_v18, %v3438_v32  ;;  %v6762_v62 = vpack.c.bf16 %v3440_v7, %v3440_v7  ;;  %v2847_v34 = vsel %vm493_vm4, %v6729_v61, %v2846_v30  ;;  %v2723_v22 = vld [vmem:[#allocation3 + $0x78] sm:$0xff] }
 0x1f6   : > { %v2461_v38 = vpop.f32.mrf.mxu0  ;;  %v2724_v5 = vld [vmem:[#allocation3 + $0x80] sm:$0xff]  ;;  %v2725_v49 = vld [vmem:[#allocation3 + $0x88] sm:$0x3]  ;;  %v4243_v21 = vsel %vm493_vm4, %v6748_v12, %v4242_v44 }
 0x1f7   : > { %v2586_v63 = vmax.f32 %v2554_v14, 0.0  ;;  %4528 = vrot.lane.b32.xlu0 %v4484_v40, %s5517_s24  ;;  %3701 = vrot.lane.b32.xlu1 %v3550_v23, %s5518_s27  ;;  %v2552_v58 = vadd.f32 %v2461_v38, %v1835_v16  ;;  %v6773_v47 = vrot.slane %v6760_v31, 1  ;;  %v3775_v13 = vrot.slane %v6762_v62, 1  ;;  %v2728_v14 = vld [vmem:[#allocation3 + $0xa0] sm:$0x3] }
 0x1f8   : > { %v5366_v41 = vpop.f32.mrf.mxu0  ;;  %v6776_v37 = vpack.c.bf16 %v2724_v5, %v2723_v22  ;;  %v6778_v16 = vpack.c.bf16 %v2725_v49, %v2725_v49  ;;  %v4151_v40 = vld [vmem:[#allocation3 + $0x88] sm:$0x3]  ;;  %v3535_v23 = vshll.u32 %v6731_v53, 16  ;;  %v4255_v38 = vsel %vm493_vm4, %v6729_v61, %v4254_v4 }
 0x1f9   : > { %2619 = vst.msk [vmem:[#allocation3 + $0xc1] sm:$0xff] %vm226_vm0, %v2586_v63  ;;  %v2584_v9 = vmax.f32 %v2552_v58, 0.0  ;;  %v2555_v6 = vadd.f32 %v5366_v41, %v1838_v10  ;;  %v6786_v15 = vpack.c.bf16 %v2728_v14, %v2728_v14  ;;  %v6788_v57 = vpack.c.bf16 %v4151_v40, %v4151_v40  ;;  %v4154_v10 = vld [vmem:[#allocation3 + $0xa0] sm:$0x3] }
 0x1fa   : > { %v2464_v11 = vpop.f32.mrf.mxu0  ;;  %v3776_v58 = vsel %vm750_vm3, %v6773_v47, %v3775_v13  ;;  %v6793_v20 = vrot.slane %v6776_v37, 1  ;;  %v3060_v18 = vrot.slane %v6778_v16, 1  ;;  %v3566_v7 = vshll.u32 %v6760_v31, 16 }
 0x1fb   : > { %2617 = vst.msk [vmem:[#allocation3 + $0xa9] sm:$0xff] %vm226_vm0, %v2584_v9  ;;  %v2587_v43 = vmax.f32 %v2555_v6, 0.0  ;;  %3811 = vrot.lane.b32.xlu0 %v3767_v24, %s5517_s24  ;;  %2986 = vrot.lane.b32.xlu1 %v2835_v59, %s5518_s27  ;;  %v2553_v51 = vadd.f32 %v2464_v11, %v1836_v35  ;;  %v3537_v61 = vrot.slane %v3535_v23, 1  ;;  %v6800_v2 = vpack.c.bf16 %v4154_v10, %v4154_v10 }
 0x1fc   : > { %v5335_v46 = vpop.f32.mrf.mxu1  ;;  %v3063_v33 = vrot.slane %v6786_v15, 1  ;;  %v4486_v59 = vrot.slane %v6788_v57, 1  ;;  %v3568_v11 = vrot.slane %v3566_v7, 1  ;;  %v3564_v49 = vshrl.u32 %v6760_v31, 16 }
 0x1fd   : > { %2620 = vst.msk [vmem:[#allocation3 + $0xc9] sm:$0xff] %vm226_vm0, %v2587_v43  ;;  %v2585_v36 = vmax.f32 %v2553_v51, 0.0  ;;  %v1841_v53 = vadd.f32 %v5335_v46, %v6549_v25  ;;  %v3538_v6 = vsel %vm493_vm4, %v6748_v12, %v3537_v61  ;;  %v3061_v25 = vsel %vm750_vm3, %v6793_v20, %v3060_v18  ;;  %v3437_v12 = vld [vmem:[#allocation3 + $0x88] sm:$0x3] }
 0x1fe   : > { %v1760_v28 = vpop.f32.mrf.mxu1  ;;  %v2851_v43 = vshll.u32 %v6776_v37, 16  ;;  %v4489_v5 = vrot.slane %v6800_v2, 1  ;;  %v3571_v46 = vshll.u32 %v6762_v62, 16  ;;  %v4487_v22 = vsel %vm750_vm3, %v6793_v20, %v4486_v59 }
 0x1ff   : > { %2618 = vst.msk [vmem:[#allocation3 + $0xb1] sm:$0xff] %vm226_vm0, %v2585_v36  ;;  %2988 = vrot.lane.b32.xlu0 %v2847_v34, %s5518_s27  ;;  %4414 = vrot.lane.b32.xlu1 %v4243_v21, %s5518_s27  ;;  %v1839_v35 = vadd.f32 %v1760_v28, %v6552_v55  ;;  %v3064_v21 = vsel %vm750_vm3, %v6773_v47, %v3063_v33  ;;  %v2856_v10 = vshll.u32 %v6778_v16, 16  ;;  %v2868_v16 = vshll.u32 %v6786_v15, 16  ;;  %v6856_v15 = vld [vmem:[%s7659_s3 + $0x10] sm:$0x3f]  }
 0x200   : > { %v5336_v63 = vpop.f32.mrf.mxu1  ;;  %v6822_v13 = vor.u32 %v3568_v11, %v3564_v49  ;;  %v6824_v14 = vpack.c.bf16 %v3437_v12, %v3437_v12  ;;  %v2853_v40 = vrot.slane %v2851_v43, 1  ;;  %v3573_v23 = vrot.slane %v3571_v46, 1  ;;  %v3444_v33 = vld [vmem:[#allocation3 + $0xc0] sm:$0xff]  ;;  %5490 = vmatprep.subr.msk.bf16.mxu1 %vm936_vm5, %v6856_v15 }
 0x201   : > { %v1842_v51 = vadd.f32 %v5336_v63, %v6555_v29 }
 0x202   : > { %v1763_v32 = vpop.f32.mrf.mxu1  ;;  %v3574_v18 = vsel %vm493_vm4, %v6822_v13, %v3573_v23  ;;  %v2729_v49 = vld [vmem:[#allocation3 + $0xa8] sm:$0xff] }
 0x203   : > { %4416 = vrot.lane.b32.xlu0 %v4255_v38, %s5518_s27  ;;  %3817 = vrot.lane.b32.xlu1 %v3776_v58, %s5517_s24  ;;  %v1840_v36 = vadd.f32 %v1763_v32, %v6558_v50  ;;  %v2849_v38 = vshrl.u32 %v6776_v37, 16  ;;  %v4490_v58 = vsel %vm750_vm3, %v6773_v47, %v4489_v5 }
 0x204   : > { %v5369_v41 = vpop.f32.mrf.mxu0  ;;  %v3446_v47 = vld [vmem:[#allocation3 + $0xd0] sm:$0x3] }
 0x205   : > { %v2558_v9 = vadd.f32 %v5369_v41, %v1841_v53  ;;  %v3772_v53 = vrot.slane %v6824_v14, 1  ;;  %v6837_v61 = vor.u32 %v2853_v40, %v2849_v38  ;;  %v4264_v41 = vshll.u32 %v6788_v57, 16  ;;  %v2734_v46 = vld [vmem:[#allocation3 + $0xd0] sm:$0x3] }
 0x206   : > { %v2477_v24 = vpop.f32.mrf.mxu0  ;;  %v6851_v11 = vpack.c.bf16 %v3446_v47, %v3446_v47  ;;  %v2730_v43 = vld [vmem:[#allocation3 + $0xb0] sm:$0xff] }
 0x207   : > { %v2590_v30 = vmax.f32 %v2558_v9, 0.0  ;;  %3699 = vrot.lane.b32.xlu0 %v3538_v6, %s5518_s27  ;;  %3102 = vrot.lane.b32.xlu1 %v3061_v25, %s5517_s24  ;;  %v2556_v55 = vadd.f32 %v2477_v24, %v1839_v35  ;;  %v3445_v35 = vld [vmem:[#allocation3 + $0xc8] sm:$0xff]  ;;  %v2858_v9 = vrot.slane %v2856_v10, 1  ;;  %v4276_v6 = vshll.u32 %v6800_v2, 16 }
 0x208   : > { %v5370_v44 = vpop.f32.mrf.mxu0  ;;  %v3773_v25 = vsel %vm750_vm3, %v6793_v20, %v3772_v53  ;;  %v6849_v59 = vpack.c.bf16 %v3445_v35, %v3444_v33  ;;  %v2870_v2 = vrot.slane %v2868_v16, 1  ;;  %v4266_v20 = vrot.slane %v4264_v41, 1 }
 0x209   : > { %2623 = vst.msk [vmem:[#allocation3 + $0xf1] sm:$0xff] %vm226_vm0, %v2590_v30  ;;  %v2588_v34 = vmax.f32 %v2556_v55, 0.0  ;;  %v2559_v29 = vadd.f32 %v5370_v44, %v1842_v51  ;;  %v2859_v24 = vsel %vm493_vm4, %v6837_v61, %v2858_v9  ;;  %v2731_v51 = vld [vmem:[#allocation3 + $0xb8] sm:$0x3]  ;;  %v4278_v55 = vrot.slane %v4276_v6, 1 }
 0x20a   : > { %v2480_v28 = vpop.f32.mrf.mxu0  ;;  %v2871_v5 = vsel %vm493_vm4, %v6822_v13, %v2870_v2  ;;  %v2773_v10 = vpack.c.bf16 %v2734_v46, %v2734_v46 }
 0x20b   : > { %2621 = vst.msk [vmem:[#allocation3 + $0xd9] sm:$0xff] %vm226_vm0, %v2588_v34  ;;  %v2591_v62 = vmax.f32 %v2559_v29, 0.0  ;;  %3104 = vrot.lane.b32.xlu0 %v3064_v21, %s5517_s24  ;;  %4530 = vrot.lane.b32.xlu1 %v4487_v22, %s5517_s24  ;;  %v2557_v50 = vadd.f32 %v2480_v28, %v1840_v36  ;;  %v6869_v29 = vrot.slane %v6849_v59, 1  ;;  %v3781_v21 = vrot.slane %v6851_v11, 1 }
 0x20c   : > { %v5339_v4 = vpop.f32.mrf.mxu1  ;;  %v6872_v22 = vpack.c.bf16 %v2730_v43, %v2729_v49  ;;  %v6874_v28 = vpack.c.bf16 %v2731_v51, %v2731_v51  ;;  %v4279_v38 = vsel %vm493_vm4, %v6822_v13, %v4278_v55  ;;  %v3590_v13 = vshll.u32 %v6849_v59, 16  ;;  %v4160_v51 = vld [vmem:[#allocation3 + $0xd0] sm:$0x3] }
 0x20d   : > { %2624 = vst.msk [vmem:[#allocation3 + $0xf9] sm:$0xff] %vm226_vm0, %v2591_v62  ;;  %v2589_v63 = vmax.f32 %v2557_v50, 0.0  ;;  %v1845_v57 = vadd.f32 %v5339_v4, %v6561_v8  ;;  %v4267_v8 = vsel %vm493_vm4, %v6837_v61, %v4266_v20  ;;  %v3559_v4 = vshll.u32 %v6824_v14, 16 }
 0x20e   : > { %v1776_v7 = vpop.f32.mrf.mxu1  ;;  %v3782_v53 = vsel %vm750_vm3, %v6869_v29, %v3781_v21  ;;  %v3065_v14 = vrot.slane %v6872_v22, 1  ;;  %v3066_v41 = vrot.slane %v6874_v28, 1  ;;  %v3592_v20 = vrot.slane %v3590_v13, 1 }
 0x20f   : > { %2622 = vst.msk [vmem:[#allocation3 + $0xe1] sm:$0xff] %vm226_vm0, %v2589_v63  ;;  %4532 = vrot.lane.b32.xlu0 %v4490_v58, %s5517_s24  ;;  %3705 = vrot.lane.b32.xlu1 %v3574_v18, %s5518_s27  ;;  %v1843_v12 = vadd.f32 %v1776_v7, %v6564_v17  ;;  %v4157_v17 = vld [vmem:[#allocation3 + $0xb8] sm:$0x3]  ;;  %v3561_v47 = vrot.slane %v3559_v4, 1  ;;  %v2875_v43 = vshll.u32 %v6872_v22, 16  ;;  %v3595_v55 = vshll.u32 %v6851_v11, 16 }
 0x210   : > { %v5340_v32 = vpop.f32.mrf.mxu1  ;;  %v3443_v7 = vld [vmem:[#allocation3 + $0xb8] sm:$0x3]  ;;  %v2880_v4 = vshll.u32 %v6874_v28, 16 }
 0x211   : > { %v1846_v40 = vadd.f32 %v5340_v32, %v6567_v42  ;;  %v6884_v42 = vpack.c.bf16 %v4157_v17, %v4157_v17  ;;  %v6894_v6 = vpack.c.bf16 %v3443_v7, %v3443_v7  ;;  %v3562_v32 = vsel %vm493_vm4, %v6837_v61, %v3561_v47 }
 0x212   : > { %v1779_v36 = vpop.f32.mrf.mxu1  ;;  %v3588_v61 = vshrl.u32 %v6849_v59, 16 }
 0x213   : > { %3815 = vrot.lane.b32.xlu0 %v3773_v25, %s5517_s24  ;;  %2990 = vrot.lane.b32.xlu1 %v2859_v24, %s5518_s27  ;;  %v1844_v63 = vadd.f32 %v1779_v36, %v6570_v52  ;;  %v3069_v25 = vrot.slane %v2773_v10, 1  ;;  %v3067_v24 = vsel %vm750_vm3, %v3065_v14, %v3066_v41  ;;  %v4492_v2 = vrot.slane %v6884_v42, 1 }
 0x214   : > { %v5373_v30 = vpop.f32.mrf.mxu0  ;;  %v3593_v46 = vor.u32 %v3592_v20, %v3588_v61  ;;  %v2877_v36 = vrot.slane %v2875_v43, 1  ;;  %v2739_v17 = vld [vmem:[#allocation3 + $0xf8] sm:$0xff] }
 0x215   : > { %v2562_v44 = vadd.f32 %v5373_v30, %v1845_v57  ;;  %v3778_v30 = vrot.slane %v6894_v6, 1  ;;  %v4493_v49 = vsel %vm750_vm3, %v3065_v14, %v4492_v2 }
 0x216   : > { %v2493_v34 = vpop.f32.mrf.mxu0  ;;  %v2736_v21 = vld [vmem:[#allocation3 + $0xe0] sm:$0xff]  ;;  %v4163_v2 = vld [vmem:[#allocation3 + $0xe8] sm:$0x3] }
 0x217   : > { %v2594_v62 = vmax.f32 %v2562_v44, 0.0  ;;  %2992 = vrot.lane.b32.xlu0 %v2871_v5, %s5518_s27  ;;  %4418 = vrot.lane.b32.xlu1 %v4267_v8, %s5518_s27  ;;  %v2560_v50 = vadd.f32 %v2493_v34, %v1843_v12  ;;  %v2892_v12 = vshll.u32 %v2773_v10, 16  ;;  %v6908_v44 = vpack.c.bf16 %v4160_v51, %v4160_v51 }
 0x218   : > { %v5374_v23 = vpop.f32.mrf.mxu0  ;;  %v3070_v8 = vsel %vm750_vm3, %v6869_v29, %v3069_v25 }
 0x219   : > { %2627 = vst.msk [vmem:[#allocation3 + $0x121] sm:$0xff] %vm226_vm0, %v2594_v62  ;;  %v2592_v58 = vmax.f32 %v2560_v50, 0.0  ;;  %v2563_v18 = vadd.f32 %v5374_v23, %v1846_v40  ;;  %v3779_v40 = vsel %vm750_vm3, %v3065_v14, %v3778_v30  ;;  %v3597_v62 = vrot.slane %v3595_v55, 1 }
 0x21a   : > { %v2496_v16 = vpop.f32.mrf.mxu0  ;;  %v2873_v50 = vshrl.u32 %v6872_v22, 16  ;;  %v2894_v10 = vrot.slane %v2892_v12, 1 }
 0x21b   : > { %2625 = vst.msk [vmem:[#allocation3 + $0x109] sm:$0xff] %vm226_vm0, %v2592_v58  ;;  %v2595_v52 = vmax.f32 %v2563_v18, 0.0  ;;  %4420 = vrot.lane.b32.xlu0 %v4279_v38, %s5518_s27  ;;  %3821 = vrot.lane.b32.xlu1 %v3782_v53, %s5517_s24  ;;  %v2561_v35 = vadd.f32 %v2496_v16, %v1844_v63  ;;  %v2735_v63 = vld [vmem:[#allocation3 + $0xd8] sm:$0xff]  ;;  %v2738_v58 = vld [vmem:[#allocation3 + $0xf0] sm:$0xff]  ;;  %v3598_v7 = vsel %vm493_vm4, %v3593_v46, %v3597_v62 }
 0x21c   : > { %v5343_v9 = vpop.f32.mrf.mxu1  ;;  %v6922_v16 = vor.u32 %v2877_v36, %v2873_v50  ;;  %v6924_v14 = vpack.c.bf16 %v2736_v21, %v2735_v63  ;;  %v6926_v41 = vpack.c.bf16 %v2739_v17, %v2738_v58 }
 0x21d   : > { %2628 = vst.msk [vmem:[#allocation3 + $0x129] sm:$0xff] %vm226_vm0, %v2595_v52  ;;  %v2593_v33 = vmax.f32 %v2561_v35, 0.0  ;;  %v1849_v34 = vadd.f32 %v5343_v9, %v6573_v60  ;;  %v4300_v60 = vshll.u32 %v6908_v44, 16  ;;  %v4288_v52 = vshll.u32 %v6884_v42, 16  ;;  %v2737_v35 = vld [vmem:[#allocation3 + $0xe8] sm:$0x3] }
 0x21e   : > { %v1792_v57 = vpop.f32.mrf.mxu1  ;;  %v2882_v9 = vrot.slane %v2880_v4, 1  ;;  %v2775_v42 = vpack.c.bf16 %v2737_v35, %v2737_v35  ;;  %v2899_v51 = vshll.u32 %v6924_v14, 16  ;;  %v2911_v30 = vshll.u32 %v6926_v41, 16 }
 0x21f   : > { %2626 = vst.msk [vmem:[#allocation3 + $0x111] sm:$0xff] %vm226_vm0, %v2593_v33  ;;  %3703 = vrot.lane.b32.xlu0 %v3562_v32, %s5518_s27  ;;  %3106 = vrot.lane.b32.xlu1 %v3067_v24, %s5517_s24  ;;  %v1847_v23 = vadd.f32 %v1792_v57, %v6576_v0  ;;  %v3583_v33 = vshll.u32 %v6894_v6, 16  ;;  %v2740_v57 = vld [vmem:[#allocation3 + $0x100] sm:$0x3]  ;;  %v4302_v61 = vrot.slane %v4300_v60, 1  ;;  %v4290_v55 = vrot.slane %v4288_v52, 1 }
 0x220   : > { %v5344_v5 = vpop.f32.mrf.mxu1  ;;  %v2883_v20 = vsel %vm493_vm4, %v6922_v16, %v2882_v9  ;;  %v2901_v62 = vrot.slane %v2899_v51, 1  ;;  %v2913_v50 = vrot.slane %v2911_v30, 1  ;;  %v2897_v60 = vshrl.u32 %v6924_v14, 16 }
 0x221   : > { %v1850_v28 = vadd.f32 %v5344_v5, %v6579_v1  ;;  %v2895_v1 = vsel %vm493_vm4, %v3593_v46, %v2894_v10  ;;  %v2777_v5 = vpack.c.bf16 %v2740_v57, %v2740_v57  ;;  %v4303_v36 = vsel %vm493_vm4, %v3593_v46, %v4302_v61  ;;  %v2744_v10 = vld [vmem:[#allocation3 + $0x120] sm:$0xff] }
 0x222   : > { %v1795_v18 = vpop.f32.mrf.mxu1  ;;  %v2904_v46 = vshll.u32 %v2775_v42, 16  ;;  %v6969_v9 = vor.u32 %v2901_v62, %v2897_v60 }
 0x223   : > { %3108 = vrot.lane.b32.xlu0 %v3070_v8, %s5517_s24  ;;  %4534 = vrot.lane.b32.xlu1 %v4493_v49, %s5517_s24  ;;  %v1848_v32 = vadd.f32 %v1795_v18, %v6582_v39  ;;  %v6943_v8 = vpack.c.bf16 %v4163_v2, %v4163_v2  ;;  %v2916_v63 = vshll.u32 %v2777_v5, 16 }
 0x224   : > { %v5377_v11 = vpop.f32.mrf.mxu0  ;;  %v2745_v21 = vld [vmem:[#allocation3 + $0x128] sm:$0xff] }
 0x225   : > { %v2566_v38 = vadd.f32 %v5377_v11, %v1849_v34  ;;  %v4291_v34 = vsel %vm493_vm4, %v6922_v16, %v4290_v55  ;;  %v6950_v11 = vrot.slane %v6924_v14, 1  ;;  %v4312_v58 = vshll.u32 %v6943_v8, 16 }
 0x226   : > { %v2509_v53 = vpop.f32.mrf.mxu0  ;;  %v2742_v4 = vld [vmem:[#allocation3 + $0x110] sm:$0xff]  ;;  %v6958_v18 = vpack.c.bf16 %v2745_v21, %v2744_v10  ;;  %v2918_v57 = vrot.slane %v2916_v63, 1 }
 0x227   : > { %v2598_v13 = vmax.f32 %v2566_v38, 0.0  ;;  %3819 = vrot.lane.b32.xlu0 %v3779_v40, %s5517_s24  ;;  %3709 = vrot.lane.b32.xlu1 %v3598_v7, %s5518_s27  ;;  %v2564_v0 = vadd.f32 %v2509_v53, %v1847_v23  ;;  %v3072_v40 = vrot.slane %v2775_v42, 1  ;;  %v3585_v23 = vrot.slane %v3583_v33, 1  ;;  %v2741_v7 = vld [vmem:[#allocation3 + $0x108] sm:$0xff] }
 0x228   : > { %v5378_v47 = vpop.f32.mrf.mxu0  ;;  %v2909_v38 = vshrl.u32 %v6926_v41, 16  ;;  %v6961_v53 = vrot.slane %v6926_v41, 1  ;;  %v4314_v2 = vrot.slane %v4312_v58, 1  ;;  %v2933_v62 = vshrl.u32 %v6958_v18, 16 }
 0x229   : > { %2631 = vst.msk [vmem:[#allocation3 + $0x151] sm:$0xff] %vm226_vm0, %v2598_v13  ;;  %v2596_v25 = vmax.f32 %v2564_v0, 0.0  ;;  %v2567_v24 = vadd.f32 %v5378_v47, %v1850_v28  ;;  %v3075_v28 = vrot.slane %v2777_v5, 1  ;;  %v2746_v13 = vld [vmem:[#allocation3 + $0x130] sm:$0x3]  ;;  %v6963_v0 = vpack.c.bf16 %v2742_v4, %v2741_v7 }
 0x22a   : > { %v2512_v43 = vpop.f32.mrf.mxu0  ;;  %v3586_v35 = vsel %vm493_vm4, %v6922_v16, %v3585_v23  ;;  %v3073_v47 = vsel %vm750_vm3, %v6950_v11, %v3072_v40  ;;  %v6971_v33 = vor.u32 %v2913_v50, %v2909_v38  ;;  %v2935_v16 = vshll.u32 %v6958_v18, 16 }
 0x22b   : > { %2629 = vst.msk [vmem:[#allocation3 + $0x139] sm:$0xff] %vm226_vm0, %v2596_v25  ;;  %v2599_v39 = vmax.f32 %v2567_v24, 0.0  ;;  %2996 = vrot.lane.b32.xlu0 %v2895_v1, %s5518_s27  ;;  %2994 = vrot.lane.b32.xlu1 %v2883_v20, %s5518_s27  ;;  %v2565_v6 = vadd.f32 %v2512_v43, %v1848_v32  ;;  %v2906_v25 = vrot.slane %v2904_v46, 1  ;;  %v2743_v24 = vld [vmem:[#allocation3 + $0x118] sm:$0x3]  ;;  %v2781_v20 = vpack.c.bf16 %v2746_v13, %v2746_v13 }
 0x22c   : > { %v5347_v12 = vpop.f32.mrf.mxu1  ;;  %v3076_v51 = vsel %vm750_vm3, %v6961_v53, %v3075_v28  ;;  %v2919_v61 = vsel %vm493_vm4, %v6971_v33, %v2918_v57  ;;  %v4315_v55 = vsel %vm493_vm4, %v6969_v9, %v4314_v2  ;;  %v2937_v50 = vrot.slane %v2935_v16, 1 }
 0x22d   : > { %2632 = vst.msk [vmem:[#allocation3 + $0x159] sm:$0xff] %vm226_vm0, %v2599_v39  ;;  %v2597_v49 = vmax.f32 %v2565_v6, 0.0  ;;  %v1853_v32 = vadd.f32 %v5347_v12, %v6585_v26  ;;  %v2923_v26 = vshll.u32 %v6963_v0, 16  ;;  %v2907_v39 = vsel %vm493_vm4, %v6969_v9, %v2906_v25 }
 0x22e   : > { %v1808_v17 = vpop.f32.mrf.mxu1  ;;  %v2779_v12 = vpack.c.bf16 %v2743_v24, %v2743_v24  ;;  %v3081_v40 = vrot.slane %v2781_v20, 1  ;;  %v2940_v4 = vshll.u32 %v2781_v20, 16  ;;  %v6997_v58 = vrot.slane %v6963_v0, 1 }
 0x22f   : > { %2630 = vst.msk [vmem:[#allocation3 + $0x141] sm:$0xff] %vm226_vm0, %v2597_v49  ;;  %4424 = vrot.lane.b32.xlu0 %v4303_v36, %s5518_s27  ;;  %4422 = vrot.lane.b32.xlu1 %v4291_v34, %s5518_s27  ;;  %v1851_v43 = vadd.f32 %v1808_v17, %v6588_v45  ;;  %v6991_v36 = vrot.slane %v6958_v18, 1  ;;  %v2925_v38 = vrot.slane %v2923_v26, 1  ;;  %v7010_v57 = vor.u32 %v2937_v50, %v2933_v62  ;;  %v3449_v62 = vld [vmem:[#allocation3 + $0xe8] sm:$0x3] }
 0x230   : > { %v5348_v52 = vpop.f32.mrf.mxu1  ;;  %v2750_v10 = vld [vmem:[#allocation3 + $0x150] sm:$0xff]  ;;  %v3078_v7 = vrot.slane %v2779_v12, 1  ;;  %v2942_v26 = vrot.slane %v2940_v4, 1 }
 0x231   : > { %v1854_v45 = vadd.f32 %v5348_v52, %v6592_v56  ;;  %v3082_v24 = vsel %vm750_vm3, %v6991_v36, %v3081_v40 }
 0x232   : > { %v1811_v30 = vpop.f32.mrf.mxu1  ;;  %v2747_v60 = vld [vmem:[#allocation3 + $0x138] sm:$0xff]  ;;  %v3079_v16 = vsel %vm750_vm3, %v6997_v58, %v3078_v7 }
 0x233   : > { %3707 = vrot.lane.b32.xlu0 %v3586_v35, %s5518_s27  ;;  %3110 = vrot.lane.b32.xlu1 %v3073_v47, %s5517_s24  ;;  %v1852_v23 = vadd.f32 %v1811_v30, %v6596_v54  ;;  %v2921_v47 = vshrl.u32 %v6963_v0, 16 }
 0x234   : > { %v5381_v1 = vpop.f32.mrf.mxu0  ;;  %v2751_v34 = vld [vmem:[#allocation3 + $0x158] sm:$0xff]  ;;  %v2752_v28 = vld [vmem:[#allocation3 + $0x160] sm:$0x3] }
 0x235   : > { %v2570_v42 = vadd.f32 %v5381_v1, %v1853_v32  ;;  %v6999_v13 = vpack.c.bf16 %v2751_v34, %v2750_v10  ;;  %v2928_v32 = vshll.u32 %v2779_v12, 16  ;;  %v7012_v2 = vor.u32 %v2925_v38, %v2921_v47 }
 0x236   : > { %v2525_v6 = vpop.f32.mrf.mxu0  ;;  %v2748_v21 = vld [vmem:[#allocation3 + $0x140] sm:$0xff]  ;;  %v2749_v25 = vld [vmem:[#allocation3 + $0x148] sm:$0x3]  ;;  %v2785_v20 = vpack.c.bf16 %v2752_v28, %v2752_v28 }
 0x237   : > { %v2602_v5 = vmax.f32 %v2570_v42, 0.0  ;;  %3112 = vrot.lane.b32.xlu0 %v3076_v51, %s5517_s24  ;;  %2998 = vrot.lane.b32.xlu1 %v2907_v39, %s5518_s27  ;;  %v2568_v49 = vadd.f32 %v2525_v6, %v1851_v43  ;;  %v7001_v52 = vpack.c.bf16 %v2748_v21, %v2747_v60  ;;  %v2783_v43 = vpack.c.bf16 %v2749_v25, %v2749_v25 }
 0x238   : > { %v5382_v17 = vpop.f32.mrf.mxu0  ;;  %v2959_v42 = vshll.u32 %v6999_v13, 16  ;;  %v2930_v30 = vrot.slane %v2928_v32, 1  ;;  %v2943_v39 = vsel %vm493_vm4, %v7010_v57, %v2942_v26  ;;  %v2957_v34 = vshrl.u32 %v6999_v13, 16 }
 0x239   : > { %2635 = vst.msk [vmem:[#allocation3 + $0x181] sm:$0xff] %vm226_vm0, %v2602_v5  ;;  %v2600_v56 = vmax.f32 %v2568_v49, 0.0  ;;  %v2571_v46 = vadd.f32 %v5382_v17, %v1854_v45  ;;  %v2947_v51 = vshll.u32 %v7001_v52, 16  ;;  %v7029_v12 = vrot.slane %v7001_v52, 1 }
 0x23a   : > { %v2528_v63 = vpop.f32.mrf.mxu0  ;;  %v2931_v6 = vsel %vm493_vm4, %v7012_v2, %v2930_v30  ;;  %v3084_v45 = vrot.slane %v2783_v43, 1  ;;  %v2961_v5 = vrot.slane %v2959_v42, 1  ;;  %v2964_v21 = vshll.u32 %v2785_v20, 16  ;;  %v3452_v30 = vld [vmem:[#allocation3 + $0x100] sm:$0x3] }
 0x23b   : > { %2633 = vst.msk [vmem:[#allocation3 + $0x169] sm:$0xff] %vm226_vm0, %v2600_v56  ;;  %v2603_v54 = vmax.f32 %v2571_v46, 0.0  ;;  %3000 = vrot.lane.b32.xlu0 %v2919_v61, %s5518_s27  ;;  %4426 = vrot.lane.b32.xlu1 %v4315_v55, %s5518_s27  ;;  %v2569_v35 = vadd.f32 %v2528_v63, %v1852_v23  ;;  %v7026_v61 = vrot.slane %v6999_v13, 1  ;;  %v3087_v55 = vrot.slane %v2785_v20, 1 }
 0x23c   : > { %v2949_v49 = vrot.slane %v2947_v51, 1  ;;  %v2945_v17 = vshrl.u32 %v7001_v52, 16  ;;  %v2952_v40 = vshll.u32 %v2783_v43, 16  ;;  %v3085_v4 = vsel %vm750_vm3, %v7029_v12, %v3084_v45  ;;  %v4166_v51 = vld [vmem:[#allocation3 + $0x100] sm:$0x3] }
 0x23d   : > { %2636 = vst.msk [vmem:[#allocation3 + $0x189] sm:$0xff] %vm226_vm0, %v2603_v54  ;;  %v2601_v1 = vmax.f32 %v2569_v35, 0.0  ;;  %v3088_v50 = vsel %vm750_vm3, %v7026_v61, %v3087_v55  ;;  %v7039_v23 = vor.u32 %v2961_v5, %v2957_v34  ;;  %v2966_v7 = vrot.slane %v2964_v21, 1 }
 0x23e   : > { %v7041_v56 = vor.u32 %v2949_v49, %v2945_v17  ;;  %v2954_v28 = vrot.slane %v2952_v40, 1  ;;  %v3488_v54 = vpack.c.bf16 %v3449_v62, %v3449_v62  ;;  %v4495_v35 = vrot.slane %v6908_v44, 1 }
 0x23f   : > { %2634 = vst.msk [vmem:[#allocation3 + $0x171] sm:$0xff] %vm226_vm0, %v2601_v1  ;;  %3116 = vrot.lane.b32.xlu0 %v3082_v24, %s5517_s24  ;;  %3114 = vrot.lane.b32.xlu1 %v3079_v16, %s5517_s24  ;;  %v2967_v32 = vsel %vm493_vm4, %v7039_v23, %v2966_v7  ;;  %v4205_v45 = vpack.c.bf16 %v4166_v51, %v4166_v51  ;;  %v4169_v7 = vld [vmem:[#allocation3 + $0x118] sm:$0x3]  ;;  %v4661_v51 = vsel %vm936_vm5, %v6856_v15, 0 }
 0x240   : > { %v2955_v25 = vsel %vm493_vm4, %v7041_v56, %v2954_v28  ;;  %v3607_v44 = vshll.u32 %v3488_v54, 16  ;;  %v3490_v21 = vpack.c.bf16 %v3452_v30, %v3452_v30  ;;  %v3784_v62 = vrot.slane %v3488_v54, 1 }
 0x242   : > { %v2753_v46 = vld [vmem:[#allocation3 + $0x168] sm:$0xff]  ;;  %v3609_v49 = vrot.slane %v3607_v44, 1  ;;  %v3785_v28 = vsel %vm750_vm3, %v6950_v11, %v3784_v62  ;;  %v3787_v44 = vrot.slane %v3490_v21, 1 }
 0x243   : > { %3004 = vrot.lane.b32.xlu0 %v2943_v39, %s5518_s27  ;;  %3002 = vrot.lane.b32.xlu1 %v2931_v6, %s5518_s27  ;;  %v4496_v39 = vsel %vm750_vm3, %v6869_v29, %v4495_v35 }
 0x244   : > { %v3610_v40 = vsel %vm493_vm4, %v6969_v9, %v3609_v49 }
 0x246   : > { %v2754_v38 = vld [vmem:[#allocation3 + $0x170] sm:$0xff]  ;;  %v2755_v10 = vld [vmem:[#allocation3 + $0x178] sm:$0x3] }
 0x247   : > { %3120 = vrot.lane.b32.xlu0 %v3088_v50, %s5517_s24  ;;  %3118 = vrot.lane.b32.xlu1 %v3085_v4, %s5517_s24  ;;  %v7045_v60 = vpack.c.bf16 %v2754_v38, %v2753_v46  ;;  %v2787_v63 = vpack.c.bf16 %v2755_v10, %v2755_v10  ;;  %v4498_v50 = vrot.slane %v6943_v8, 1  ;;  %v4324_v4 = vshll.u32 %v4205_v45, 16 }
 0x248   : > { %v3619_v46 = vshll.u32 %v3490_v21, 16  ;;  %v3458_v21 = vld [vmem:[#allocation3 + $0x130] sm:$0x3] }
 0x249   : > { %v2971_v47 = vshll.u32 %v7045_v60, 16  ;;  %v7054_v24 = vrot.slane %v7045_v60, 1  ;;  %v3090_v1 = vrot.slane %v2787_v63, 1  ;;  %v2969_v43 = vshrl.u32 %v7045_v60, 16 }
 0x24a   : > { %v2976_v42 = vshll.u32 %v2787_v63, 16  ;;  %v3455_v63 = vld [vmem:[#allocation3 + $0x118] sm:$0x3]  ;;  %v4499_v9 = vsel %vm750_vm3, %v6950_v11, %v4498_v50  ;;  %v4326_v8 = vrot.slane %v4324_v4, 1  ;;  %v3621_v54 = vrot.slane %v3619_v46, 1 }
 0x24b   : > { %3008 = vrot.lane.b32.xlu0 %v2967_v32, %s5518_s27  ;;  %3006 = vrot.lane.b32.xlu1 %v2955_v25, %s5518_s27  ;;  %v2973_v20 = vrot.slane %v2971_v47, 1  ;;  %v3091_v6 = vsel %vm750_vm3, %v7054_v24, %v3090_v1  ;;  %v3492_v35 = vpack.c.bf16 %v3455_v63, %v3455_v63  ;;  %v4207_v47 = vpack.c.bf16 %v4169_v7, %v4169_v7 }
 0x24c   : > { %v2978_v34 = vrot.slane %v2976_v42, 1  ;;  %v4327_v1 = vsel %vm493_vm4, %v6971_v33, %v4326_v8  ;;  %v3622_v42 = vsel %vm493_vm4, %v6971_v33, %v3621_v54  ;;  %v3494_v4 = vpack.c.bf16 %v3458_v21, %v3458_v21 }
 0x24d   : > { %v7058_v16 = vpop.permute.xlu1 %3809  ;;  %v3097_v26 = vpop.permute.xlu0 %3096  ;;  %v7065_v55 = vor.u32 %v2973_v20, %v2969_v43  ;;  %v4501_v20 = vrot.slane %v4205_v45, 1  ;;  %v4336_v45 = vshll.u32 %v4207_v47, 16  ;;  %v4504_v8 = vrot.slane %v4207_v47, 1 }
 0x24f   : > { %4536 = vrot.lane.b32.xlu0 %v4496_v39, %s5517_s24  ;;  %3122 = vrot.lane.b32.xlu1 %v3091_v6, %s5517_s24  ;;  %v2979_v29 = vsel %vm493_vm4, %v7065_v55, %v2978_v34  ;;  %v3631_v6 = vshll.u32 %v3492_v35, 16  ;;  %v4172_v34 = vld [vmem:[#allocation3 + $0x130] sm:$0x3]  ;;  %v4338_v62 = vrot.slane %v4336_v45, 1  ;;  %v4178_v45 = vld [vmem:[#allocation3 + $0x160] sm:$0x3] }
 0x250   : > { %v4209_v50 = vpack.c.bf16 %v4172_v34, %v4172_v34 }
 0x251   : > { %v3095_v5 = vpop.permute.xlu1 %3094  ;;  %v4525_v17 = vpop.permute.xlu0 %4524 }
 0x253   : > { %3711 = vrot.lane.b32.xlu0 %v3610_v40, %s5518_s27  ;;  %3010 = vrot.lane.b32.xlu1 %v2979_v29, %s5518_s27  ;;  %v3633_v29 = vrot.slane %v3631_v6, 1 }
 0x255   : > { %v3698_v38 = vpop.permute.xlu1 %3697  ;;  %v3808_v10 = vpop.permute.xlu0 %3807 }
 0x256   : > { %v3842_v46 = vsel %vm226_vm0, %v6619_v48, %v3698_v38  ;;  %v4348_v38 = vshll.u32 %v4209_v50, 16 }
 0x257   : > { %3823 = vrot.lane.b32.xlu0 %v3785_v28, %s5517_s24  ;;  %4538 = vrot.lane.b32.xlu1 %v4499_v9, %s5517_s24  ;;  %v3790_v28 = vrot.slane %v3492_v35, 1  ;;  %v3634_v9 = vsel %vm493_vm4, %v7012_v2, %v3633_v29  ;;  %v4213_v29 = vpack.c.bf16 %v4178_v45, %v4178_v45 }
 0x259   : > { %v2983_v32 = vpop.permute.xlu1 %2982  ;;  %v2985_v25 = vpop.permute.xlu0 %2984  ;;  %v3791_v47 = vsel %vm750_vm3, %v6997_v58, %v3790_v28 }
 0x25a   : > { %v3127_v43 = vsel %vm226_vm0, %v6629_v27, %v2983_v32  ;;  %v3129_v11 = vsel %vm226_vm0, %v6619_v48, %v2985_v25  ;;  %v3461_v25 = vld [vmem:[#allocation3 + $0x148] sm:$0x3] }
 0x25b   : > { %v3159_v30 = vsel %vm863_vm6, %v3127_v43, %v3095_v5  ;;  %4428 = vrot.lane.b32.xlu0 %v4327_v1, %s5518_s27  ;;  %3713 = vrot.lane.b32.xlu1 %v3622_v42, %s5518_s27  ;;  %v3161_v39 = vsel %vm863_vm6, %v3129_v11, %v3097_v26  ;;  %v4502_v5 = vsel %vm750_vm3, %v6961_v53, %v4501_v20 }
 0x25c   : > { %5386 = vmatmul.mubr.msk.bf16.vlgmr.msra.gmra.mxu1 %vm903_vm7, %v3159_v30  ;;  %v3788_v26 = vsel %vm750_vm3, %v6961_v53, %v3787_v44  ;;  %v4505_v1 = vsel %vm750_vm3, %v6997_v58, %v4504_v8  ;;  %v3496_v20 = vpack.c.bf16 %v3461_v25, %v3461_v25  ;;  %v4507_v30 = vrot.slane %v4209_v50, 1 }
 0x25d   : > { %v7097_v49 = vpop.permute.xlu1 %3813  ;;  %5389 = vmatprep.mubr.msk.bf16.mxu1 %vm903_vm7, %v3161_v39  ;;  %v4413_v33 = vpop.permute.xlu0 %4412  ;;  %5452 = vmatpush3.bf16.msra.mxu1 %v4661_v51  ;;  %v3793_v39 = vrot.slane %v3494_v4, 1 }
 0x25e   : > { %v4557_v15 = vsel %vm226_vm0, %v6619_v48, %v4413_v33  ;;  %v3874_v48 = vsel %vm863_vm6, %v3842_v46, %v7058_v16  ;;  %v4350_v16 = vrot.slane %v4348_v38, 1  ;;  %v3655_v58 = vshll.u32 %v3496_v20, 16  ;;  %v3464_v33 = vld [vmem:[#allocation3 + $0x160] sm:$0x3] }
 0x25f   : > { %4540 = vrot.lane.b32.xlu0 %v4502_v5, %s5517_s24  ;;  %3825 = vrot.lane.b32.xlu1 %v3788_v26, %s5517_s24  ;;  %v7109_v40 = vsel %vm863_vm6, %v4557_v15, %v4525_v17  ;;  %v4339_v17 = vsel %vm493_vm4, %v7012_v2, %v4338_v62  ;;  %v4175_v2 = vld [vmem:[#allocation3 + $0x148] sm:$0x3]  ;;  %v4508_v5 = vsel %vm750_vm3, %v6991_v36, %v4507_v30  ;;  %v3796_v28 = vrot.slane %v3496_v20, 1  ;;  %v3467_v20 = vld [vmem:[#allocation3 + $0x178] sm:$0x3] }
 0x260   : > { %v4211_v44 = vpack.c.bf16 %v4175_v2, %v4175_v2  ;;  %v4351_v42 = vsel %vm493_vm4, %v7010_v57, %v4350_v16  ;;  %v3498_v62 = vpack.c.bf16 %v3464_v33, %v3464_v33  ;;  %v3657_v50 = vrot.slane %v3655_v58, 1  ;;  %v4184_v33 = vld [vmem:[#allocation3 + $0x190] sm:$0x3] }
 0x261   : > { %v3099_v63 = vpop.permute.xlu1 %3098  ;;  %v3696_v7 = vpop.permute.xlu0 %3695 }
 0x262   : > { %v3840_v53 = vsel %vm226_vm0, %v6629_v27, %v3696_v7  ;;  %v3643_v27 = vshll.u32 %v3494_v4, 16  ;;  %v4360_v6 = vshll.u32 %v4211_v44, 16  ;;  %v3667_v38 = vshll.u32 %v3498_v62, 16 }
 0x263   : > { %3715 = vrot.lane.b32.xlu0 %v3634_v9, %s5518_s27  ;;  %4430 = vrot.lane.b32.xlu1 %v4339_v17, %s5518_s27  ;;  %v3872_v54 = vsel %vm863_vm6, %v3840_v53, %v3808_v10  ;;  %v4510_v53 = vrot.slane %v4211_v44, 1  ;;  %v3658_v17 = vsel %vm493_vm4, %v7041_v56, %v3657_v50  ;;  %v4181_v44 = vld [vmem:[#allocation3 + $0x178] sm:$0x3]  ;;  %v3799_v45 = vrot.slane %v3498_v62, 1 }
 0x264   : > { %5419 = vmatprep.mubr.msk.bf16.mxu0 %vm903_vm7, %v3872_v54  ;;  %v3645_v10 = vrot.slane %v3643_v27, 1  ;;  %v4362_v4 = vrot.slane %v4360_v6, 1  ;;  %v4183_v27 = vld [vmem:[#allocation3 + $0x188] sm:$0xff] }
 0x265   : > { %v4527_v35 = vpop.permute.xlu1 %4526  ;;  %5420 = vmatmul.mubr.msk.bf16.vlgmr.msra.gmra.mxu0 %vm903_vm7, %v3874_v48  ;;  %v3101_v32 = vpop.permute.xlu0 %3100  ;;  %v4372_v48 = vshll.u32 %v4213_v29, 16 }
 0x266   : > { %v3646_v51 = vsel %vm493_vm4, %v7010_v57, %v3645_v10  ;;  %v3794_v57 = vsel %vm750_vm3, %v6991_v36, %v3793_v39  ;;  %v3669_v10 = vrot.slane %v3667_v38, 1 }
 0x267   : > { %3827 = vrot.lane.b32.xlu0 %v3791_v47, %s5517_s24  ;;  %4542 = vrot.lane.b32.xlu1 %v4505_v1, %s5517_s24  ;;  %v4182_v47 = vld [vmem:[#allocation3 + $0x180] sm:$0xff]  ;;  %v4511_v1 = vsel %vm750_vm3, %v7029_v12, %v4510_v53 }
 0x268   : > { %v7171_v16 = vpack.c.bf16 %v4183_v27, %v4182_v47  ;;  %v3670_v6 = vsel %vm493_vm4, %v7039_v23, %v3669_v10 }
 0x269   : > { %v3702_v43 = vpop.permute.xlu1 %3701  ;;  %v4529_v11 = vpop.permute.xlu0 %4528 }
 0x26a   : > { %v3846_v30 = vsel %vm226_vm0, %v6673_v3, %v3702_v43  ;;  %v7193_v43 = vpack.c.bf16 %v4184_v33, %v4184_v33  ;;  %v4389_v53 = vshrl.u32 %v7171_v16, 16 }
 0x26b   : > { %4432 = vrot.lane.b32.xlu0 %v4351_v42, %s5518_s27  ;;  %3717 = vrot.lane.b32.xlu1 %v3646_v51, %s5518_s27  ;;  %v4513_v51 = vrot.slane %v4213_v29, 1  ;;  %v4186_v29 = vld [vmem:[#allocation3 + $0x1a0] sm:$0xff] }
 0x26d   : > { %v2987_v34 = vpop.permute.xlu1 %2986  ;;  %v3812_v21 = vpop.permute.xlu0 %3811 }
 0x26e   : > { %v3131_v15 = vsel %vm226_vm0, %v6687_v19, %v2987_v34  ;;  %v3470_v34 = vld [vmem:[#allocation3 + $0x190] sm:$0x3] }
 0x26f   : > { %4544 = vrot.lane.b32.xlu0 %v4508_v5, %s5517_s24  ;;  %3829 = vrot.lane.b32.xlu1 %v3794_v57, %s5517_s24  ;;  %v3163_v26 = vsel %vm863_vm6, %v3131_v15, %v3099_v63  ;;  %v4363_v63 = vsel %vm493_vm4, %v7041_v56, %v4362_v4  ;;  %v4215_v5 = vpack.c.bf16 %v4181_v44, %v4181_v44  ;;  %v4391_v57 = vshll.u32 %v7171_v16, 16 }
 0x270   : > { %5390 = vmatmul.mubr.msk.bf16.gmra.mxu1 %vm903_vm7, %v3163_v26  ;;  %v7195_v26 = vpack.c.bf16 %v3470_v34, %v3470_v34  ;;  %v4514_v4 = vsel %vm750_vm3, %v7026_v61, %v4513_v51 }
 0x271   : > { %v4415_v46 = vpop.permute.xlu1 %4414  ;;  %v2989_v7 = vpop.permute.xlu0 %2988 }
 0x272   : > { %v4559_v9 = vsel %vm226_vm0, %v6687_v19, %v4415_v46  ;;  %v3133_v36 = vsel %vm226_vm0, %v6673_v3, %v2989_v7  ;;  %v4516_v7 = vrot.slane %v4215_v5, 1 }
 0x273   : > { %v7157_v8 = vsel %vm863_vm6, %v4559_v9, %v4527_v35  ;;  %3719 = vrot.lane.b32.xlu0 %v3658_v17, %s5518_s27  ;;  %4434 = vrot.lane.b32.xlu1 %v4363_v63, %s5518_s27  ;;  %v3165_v54 = vsel %vm863_vm6, %v3133_v36, %v3101_v32  ;;  %v3797_v35 = vsel %vm750_vm3, %v7029_v12, %v3796_v28  ;;  %v4374_v32 = vrot.slane %v4372_v48, 1  ;;  %v4187_v17 = vld [vmem:[#allocation3 + $0x1a8] sm:$0x3] }
 0x274   : > { %5393 = vmatprep.mubr.msk.bf16.mxu1 %vm903_vm7, %v3165_v54  ;;  %v4393_v28 = vrot.slane %v4391_v57, 1  ;;  %v4396_v9 = vshll.u32 %v7193_v43, 16  ;;  %v3691_v36 = vshll.u32 %v7195_v26, 16  ;;  %v4517_v48 = vsel %vm750_vm3, %v7054_v24, %v4516_v7 }
 0x275   : > { %v7163_v25 = vpop.permute.xlu1 %3817  ;;  %v4417_v2 = vpop.permute.xlu0 %4416  ;;  %v4375_v12 = vsel %vm493_vm4, %v7039_v23, %v4374_v32  ;;  %v3878_v23 = vsel %vm863_vm6, %v3846_v30, %v7097_v49  ;;  %v4219_v27 = vpack.c.bf16 %v4187_v17, %v4187_v17 }
 0x276   : > { %v4561_v56 = vsel %vm226_vm0, %v6673_v3, %v4417_v2  ;;  %v4394_v38 = vor.u32 %v4393_v28, %v4389_v53  ;;  %v4398_v47 = vrot.slane %v4396_v9, 1 }
 0x277   : > { %3831 = vrot.lane.b32.xlu0 %v3797_v35, %s5517_s24  ;;  %4546 = vrot.lane.b32.xlu1 %v4511_v1, %s5517_s24  ;;  %v7176_v42 = vsel %vm863_vm6, %v4561_v56, %v4529_v11  ;;  %v3500_v11 = vpack.c.bf16 %v3467_v20, %v3467_v20  ;;  %v3693_v56 = vrot.slane %v3691_v36, 1  ;;  %v4384_v1 = vshll.u32 %v4215_v5, 16 }
 0x278   : > { %v4399_v44 = vsel %vm493_vm4, %v4394_v38, %v4398_v47  ;;  %v3805_v5 = vrot.slane %v7195_v26, 1  ;;  %v4522_v53 = vrot.slane %v4219_v27, 1 }
 0x279   : > { %v3103_v39 = vpop.permute.xlu1 %3102  ;;  %v3700_v58 = vpop.permute.xlu0 %3699  ;;  %v3802_v46 = vrot.slane %v3500_v11, 1  ;;  %v3679_v35 = vshll.u32 %v3500_v11, 16  ;;  %v4519_v11 = vrot.slane %v7193_v43, 1 }
 0x27a   : > { %v3844_v15 = vsel %vm226_vm0, %v6687_v19, %v3700_v58  ;;  %v4185_v19 = vld [vmem:[#allocation3 + $0x198] sm:$0xff] }
 0x27b   : > { %4436 = vrot.lane.b32.xlu0 %v4375_v12, %s5518_s27  ;;  %3721 = vrot.lane.b32.xlu1 %v3670_v6, %s5518_s27  ;;  %v3876_v3 = vsel %vm863_vm6, %v3844_v15, %v3812_v21  ;;  %v3800_v21 = vsel %vm750_vm3, %v7026_v61, %v3799_v45  ;;  %v7204_v49 = vpack.c.bf16 %v4186_v29, %v4185_v19  ;;  %v3681_v58 = vrot.slane %v3679_v35, 1 }
 0x27c   : > { %5423 = vmatprep.mubr.msk.bf16.mxu0 %vm903_vm7, %v3876_v3  ;;  %v3803_v61 = vsel %vm750_vm3, %v7054_v24, %v3802_v46  ;;  %v3694_v24 = vsel %vm493_vm4, %v4394_v38, %v3693_v56  ;;  %v4386_v12 = vrot.slane %v4384_v1, 1  ;;  %v4408_v45 = vshll.u32 %v4219_v27, 16 }
 0x27d   : > { %v4531_v62 = vpop.permute.xlu1 %4530  ;;  %5424 = vmatmul.mubr.msk.bf16.gmra.mxu0 %vm903_vm7, %v3878_v23  ;;  %v3105_v50 = vpop.permute.xlu0 %3104  ;;  %v4403_v2 = vshll.u32 %v7204_v49, 16  ;;  %v4401_v30 = vshrl.u32 %v7204_v49, 16  ;;  %v4518_v15 = vrot.slane %v7171_v16, 1  ;;  %v3682_v3 = vsel %vm493_vm4, %v7065_v55, %v3681_v58 }
 0x27e   : > { %v4387_v23 = vsel %vm493_vm4, %v7065_v55, %v4386_v12  ;;  %v4410_v29 = vrot.slane %v4408_v45, 1  ;;  %v4521_v28 = vrot.slane %v7204_v49, 1 }
 0x27f   : > { %4548 = vrot.lane.b32.xlu0 %v4514_v4, %s5517_s24  ;;  %3833 = vrot.lane.b32.xlu1 %v3800_v21, %s5517_s24  ;;  %v4405_v6 = vrot.slane %v4403_v2, 1  ;;  %v4520_v55 = vsel %vm750_vm3, %v4518_v15, %v4519_v11  ;;  %v3806_v7 = vsel %vm750_vm3, %v4518_v15, %v3805_v5 }
 0x280   : > { %v4523_v38 = vsel %vm750_vm3, %v4521_v28, %v4522_v53 }
 0x281   : > { %v3706_v63 = vpop.permute.xlu1 %3705  ;;  %v4533_v54 = vpop.permute.xlu0 %4532  ;;  %v4406_v19 = vor.u32 %v4405_v6, %v4401_v30 }
 0x282   : > { %v3850_v9 = vsel %vm226_vm0, %v6760_v31, %v3706_v63 }
 0x283   : > { %3835 = vrot.lane.b32.xlu0 %v3803_v61, %s5517_s24  ;;  %4550 = vrot.lane.b32.xlu1 %v4517_v48, %s5517_s24 }
 0x285   : > { %v2991_v32 = vpop.permute.xlu1 %2990  ;;  %v3816_v10 = vpop.permute.xlu0 %3815 }
 0x286   : > { %v3135_v20 = vsel %vm226_vm0, %v6776_v37, %v2991_v32 }
 0x287   : > { %4440 = vrot.lane.b32.xlu0 %v4399_v44, %s5518_s27  ;;  %3725 = vrot.lane.b32.xlu1 %v3694_v24, %s5518_s27  ;;  %v3167_v51 = vsel %vm863_vm6, %v3135_v20, %v3103_v39 }
 0x288   : > { %5394 = vmatmul.mubr.msk.bf16.gmra.mxu1 %vm903_vm7, %v3167_v51 }
 0x289   : > { %v4419_v33 = vpop.permute.xlu1 %4418  ;;  %v2993_v34 = vpop.permute.xlu0 %2992 }
 0x28a   : > { %v4563_v57 = vsel %vm226_vm0, %v6776_v37, %v4419_v33  ;;  %v3137_v39 = vsel %vm226_vm0, %v6760_v31, %v2993_v34 }
 0x28b   : > { %3723 = vrot.lane.b32.xlu0 %v3682_v3, %s5518_s27  ;;  %4438 = vrot.lane.b32.xlu1 %v4387_v23, %s5518_s27  ;;  %v3169_v43 = vsel %vm863_vm6, %v3137_v39, %v3105_v50  ;;  %v7240_v26 = vsel %vm863_vm6, %v4563_v57, %v4531_v62  ;;  %v4411_v50 = vsel %vm493_vm4, %v4406_v19, %v4410_v29 }
 0x28c   : > { %5397 = vmatprep.mubr.msk.bf16.mxu1 %vm903_vm7, %v3169_v43 }
 0x28d   : > { %v3822_v4 = vpop.permute.xlu1 %3821  ;;  %v4421_v21 = vpop.permute.xlu0 %4420 }
 0x28e   : > { %v4565_v46 = vsel %vm226_vm0, %v6760_v31, %v4421_v21 }
 0x28f   : > { %4552 = vrot.lane.b32.xlu0 %v4520_v55, %s5517_s24  ;;  %3837 = vrot.lane.b32.xlu1 %v3806_v7, %s5517_s24  ;;  %v7250_v62 = vsel %vm863_vm6, %v4565_v46, %v4533_v54  ;;  %v3882_v54 = vsel %vm863_vm6, %v3850_v9, %v7163_v25 }
 0x291   : > { %v3107_v36 = vpop.permute.xlu1 %3106  ;;  %v3704_v17 = vpop.permute.xlu0 %3703 }
 0x292   : > { %v3848_v61 = vsel %vm226_vm0, %v6776_v37, %v3704_v17 }
 0x293   : > { %4442 = vrot.lane.b32.xlu1 %v4411_v50, %s5518_s27  ;;  %v3880_v48 = vsel %vm863_vm6, %v3848_v61, %v3816_v10 }
 0x294   : > { %5427 = vmatprep.mubr.msk.bf16.mxu0 %vm903_vm7, %v3880_v48 }
 0x295   : > { %v7264_v27 = vpop.permute.xlu1 %4534  ;;  %5428 = vmatmul.mubr.msk.bf16.gmra.mxu0 %vm903_vm7, %v3882_v54  ;;  %v3109_v31 = vpop.permute.xlu0 %3108 }
 0x297   : > { %4554 = vrot.lane.b32.xlu1 %v4523_v38, %s5517_s24 }
 0x299   : > { %v3710_v63 = vpop.permute.xlu1 %3709  ;;  %v3820_v37 = vpop.permute.xlu0 %3819 }
 0x29a   : > { %v3854_v20 = vsel %vm226_vm0, %v6849_v59, %v3710_v63 }
 0x29b   : > { %v3886_v58 = vsel %vm863_vm6, %v3854_v20, %v3822_v4 }
 0x29d   : > { %v2995_v2 = vpop.permute.xlu1 %2994  ;;  %v2997_v47 = vpop.permute.xlu0 %2996 }
 0x29e   : > { %v3139_v56 = vsel %vm226_vm0, %v6872_v22, %v2995_v2  ;;  %v3141_v35 = vsel %vm226_vm0, %v6849_v59, %v2997_v47 }
 0x29f   : > { %v3171_v25 = vsel %vm863_vm6, %v3139_v56, %v3107_v36  ;;  %v3173_v1 = vsel %vm863_vm6, %v3141_v35, %v3109_v31 }
 0x2a0   : > { %5398 = vmatmul.mubr.msk.bf16.gmra.mxu1 %vm903_vm7, %v3171_v25 }
 0x2a1   : > { %v7275_v32 = vpop.permute.xlu1 %4422  ;;  %5401 = vmatprep.mubr.msk.bf16.mxu1 %vm903_vm7, %v3173_v1  ;;  %v7278_v10 = vpop.permute.xlu0 %4424 }
 0x2a5   : > { %v3111_v44 = vpop.permute.xlu1 %3110  ;;  %v3708_v24 = vpop.permute.xlu0 %3707 }
 0x2a6   : > { %v3852_v51 = vsel %vm226_vm0, %v6872_v22, %v3708_v24 }
 0x2a7   : > { %v3884_v30 = vsel %vm863_vm6, %v3852_v51, %v3820_v37 }
 0x2a8   : > { %5431 = vmatprep.mubr.msk.bf16.mxu0 %vm903_vm7, %v3884_v30  ;;  %v4567_v30 = vsel %vm226_vm0, %v6872_v22, %v7275_v32 }
 0x2a9   : > { %v2999_v12 = vpop.permute.xlu1 %2998  ;;  %5432 = vmatmul.mubr.msk.bf16.gmra.mxu0 %vm903_vm7, %v3886_v58  ;;  %v3113_v6 = vpop.permute.xlu0 %3112 }
 0x2aa   : > { %v3143_v45 = vsel %vm226_vm0, %v6924_v14, %v2999_v12 }
 0x2ab   : > { %v3175_v33 = vsel %vm863_vm6, %v3143_v45, %v3111_v44 }
 0x2ac   : > { %5402 = vmatmul.mubr.msk.bf16.gmra.mxu1 %vm903_vm7, %v3175_v33 }
 0x2ad   : > { %v7292_v34 = vpop.permute.xlu1 %4426  ;;  %v3001_v15 = vpop.permute.xlu0 %3000 }
 0x2ae   : > { %v3145_v11 = vsel %vm226_vm0, %v6926_v41, %v3001_v15 }
 0x2af   : > { %v3177_v5 = vsel %vm863_vm6, %v3145_v11, %v3113_v6  ;;  %v4599_v6 = vsel %vm863_vm6, %v4567_v30, %v7264_v27  ;;  %v4571_v27 = vsel %vm226_vm0, %v6924_v14, %v7292_v34 }
 0x2b0   : > { %5405 = vmatprep.mubr.msk.bf16.mxu1 %vm903_vm7, %v3177_v5 }
 0x2b1   : > { %v3115_v57 = vpop.permute.xlu1 %3114  ;;  %v3117_v39 = vpop.permute.xlu0 %3116 }
 0x2b5   : > { %v3003_v3 = vpop.permute.xlu1 %3002  ;;  %v3005_v23 = vpop.permute.xlu0 %3004 }
 0x2b6   : > { %v3147_v43 = vsel %vm226_vm0, %v6963_v0, %v3003_v3  ;;  %v3149_v19 = vsel %vm226_vm0, %v6958_v18, %v3005_v23 }
 0x2b7   : > { %v3179_v29 = vsel %vm863_vm6, %v3147_v43, %v3115_v57  ;;  %v3181_v4 = vsel %vm863_vm6, %v3149_v19, %v3117_v39 }
 0x2b8   : > { %5406 = vmatmul.mubr.msk.bf16.gmra.mxu1 %vm903_vm7, %v3179_v29 }
 0x2b9   : > { %v3119_v21 = vpop.permute.xlu1 %3118  ;;  %5409 = vmatprep.mubr.msk.bf16.mxu1 %vm903_vm7, %v3181_v4  ;;  %v3121_v46 = vpop.permute.xlu0 %3120 }
 0x2bd   : > { %v3007_v55 = vpop.permute.xlu1 %3006  ;;  %v3009_v7 = vpop.permute.xlu0 %3008 }
 0x2be   : > { %v3151_v50 = vsel %vm226_vm0, %v7001_v52, %v3007_v55  ;;  %v3153_v28 = vsel %vm226_vm0, %v6999_v13, %v3009_v7 }
 0x2bf   : > { %v3183_v53 = vsel %vm863_vm6, %v3151_v50, %v3119_v21  ;;  %v3185_v9 = vsel %vm863_vm6, %v3153_v28, %v3121_v46 }
 0x2c0   : > { %5410 = vmatmul.mubr.msk.bf16.gmra.mxu1 %vm903_vm7, %v3183_v53 }
 0x2c1   : > { %v3123_v36 = vpop.permute.xlu1 %3122  ;;  %5413 = vmatprep.mubr.msk.bf16.mxu1 %vm903_vm7, %v3185_v9  ;;  %v4537_v17 = vpop.permute.xlu0 %4536 }
 0x2c5   : > { %v3011_v61 = vpop.permute.xlu1 %3010  ;;  %v3712_v48 = vpop.permute.xlu0 %3711 }
 0x2c6   : > { %v3155_v54 = vsel %vm226_vm0, %v7045_v60, %v3011_v61  ;;  %v3856_v31 = vsel %vm226_vm0, %v6924_v14, %v3712_v48 }
 0x2c7   : > { %v3187_v38 = vsel %vm863_vm6, %v3155_v54, %v3123_v36 }
 0x2c8   : > { %5414 = vmatmul.mubr.msk.bf16.gmra.mxu1 %vm903_vm7, %v3187_v38 }
 0x2c9   : > { %v4539_v63 = vpop.permute.xlu1 %4538  ;;  %5453 = vmatprep.mubr.msk.bf16.mxu1 %vm903_vm7, %v7109_v40  ;;  %v3824_v37 = vpop.permute.xlu0 %3823 }
 0x2ca   : > { %v3888_v2 = vsel %vm863_vm6, %v3856_v31, %v3824_v37 }
 0x2cb   : > { %5435 = vmatprep.mubr.msk.bf16.mxu0 %vm903_vm7, %v3888_v2 }
 0x2cd   : > { %v3714_v47 = vpop.permute.xlu1 %3713  ;;  %v4429_v56 = vpop.permute.xlu0 %4428 }
 0x2ce   : > { %v3858_v35 = vsel %vm226_vm0, %v6926_v41, %v3714_v47  ;;  %v4573_v11 = vsel %vm226_vm0, %v6926_v41, %v4429_v56 }
 0x2d0   : > { %5454 = vmatmul.mubr.msk.bf16.vlgmr.msra.gmra.mxu1 %vm903_vm7, %v7157_v8 }
 0x2d1   : > { %v3826_v25 = vpop.permute.xlu1 %3825  ;;  %5457 = vmatprep.mubr.msk.bf16.mxu1 %vm903_vm7, %v7176_v42  ;;  %v4541_v1 = vpop.permute.xlu0 %4540 }
 0x2d2   : > { %v3890_v40 = vsel %vm863_vm6, %v3858_v35, %v3826_v25  ;;  %v4605_v5 = vsel %vm863_vm6, %v4573_v11, %v4541_v1 }
 0x2d3   : > { %5436 = vmatmul.mubr.msk.bf16.gmra.mxu0 %vm903_vm7, %v3890_v40 }
 0x2d5   : > { %v4431_v20 = vpop.permute.xlu1 %4430  ;;  %v3716_v44 = vpop.permute.xlu0 %3715 }
 0x2d6   : > { %v3860_v8 = vsel %vm226_vm0, %v6963_v0, %v3716_v44  ;;  %v4575_v41 = vsel %vm226_vm0, %v6963_v0, %v4431_v20 }
 0x2d8   : > { %5458 = vmatmul.mubr.msk.bf16.gmra.mxu1 %vm903_vm7, %v7240_v26  ;;  %v4569_v26 = vsel %vm226_vm0, %v6849_v59, %v7278_v10  ;;  %v4603_v10 = vsel %vm863_vm6, %v4571_v27, %v4539_v63 }
 0x2d9   : > { %v4543_v24 = vpop.permute.xlu1 %4542  ;;  %5461 = vmatprep.mubr.msk.bf16.mxu1 %vm903_vm7, %v7250_v62  ;;  %v3828_v51 = vpop.permute.xlu0 %3827  ;;  %v4601_v62 = vsel %vm863_vm6, %v4569_v26, %v4537_v17 }
 0x2da   : > { %v3892_v42 = vsel %vm863_vm6, %v3860_v8, %v3828_v51  ;;  %v4607_v43 = vsel %vm863_vm6, %v4575_v41, %v4543_v24 }
 0x2db   : > { %5439 = vmatprep.mubr.msk.bf16.mxu0 %vm903_vm7, %v3892_v42 }
 0x2dd   : > { %v3718_v58 = vpop.permute.xlu1 %3717  ;;  %v4433_v12 = vpop.permute.xlu0 %4432 }
 0x2de   : > { %v3862_v45 = vsel %vm226_vm0, %v6958_v18, %v3718_v58  ;;  %v4577_v19 = vsel %vm226_vm0, %v6958_v18, %v4433_v12 }
 0x2e0   : > { %5462 = vmatmul.mubr.msk.bf16.gmra.mxu1 %vm903_vm7, %v4599_v6 }
 0x2e1   : > { %v3830_v33 = vpop.permute.xlu1 %3829  ;;  %5465 = vmatprep.mubr.msk.bf16.mxu1 %vm903_vm7, %v4601_v62  ;;  %v4545_v22 = vpop.permute.xlu0 %4544 }
 0x2e2   : > { %v3894_v32 = vsel %vm863_vm6, %v3862_v45, %v3830_v33  ;;  %v4609_v29 = vsel %vm863_vm6, %v4577_v19, %v4545_v22 }
 0x2e3   : > { %5440 = vmatmul.mubr.msk.bf16.gmra.mxu0 %vm903_vm7, %v3894_v32 }
 0x2e5   : > { %v4435_v15 = vpop.permute.xlu1 %4434  ;;  %v3720_v59 = vpop.permute.xlu0 %3719 }
 0x2e6   : > { %v3864_v57 = vsel %vm226_vm0, %v7001_v52, %v3720_v59  ;;  %v4579_v18 = vsel %vm226_vm0, %v7001_v52, %v4435_v15 }
 0x2e8   : > { %5466 = vmatmul.mubr.msk.bf16.gmra.mxu1 %vm903_vm7, %v4603_v10 }
 0x2e9   : > { %v4547_v39 = vpop.permute.xlu1 %4546  ;;  %5469 = vmatprep.mubr.msk.bf16.mxu1 %vm903_vm7, %v4605_v5  ;;  %v3832_v3 = vpop.permute.xlu0 %3831 }
 0x2ea   : > { %v3896_v23 = vsel %vm863_vm6, %v3864_v57, %v3832_v3  ;;  %v4611_v50 = vsel %vm863_vm6, %v4579_v18, %v4547_v39 }
 0x2eb   : > { %5443 = vmatprep.mubr.msk.bf16.mxu0 %vm903_vm7, %v3896_v23 }
 0x2ed   : > { %v3722_v14 = vpop.permute.xlu1 %3721  ;;  %v4437_v34 = vpop.permute.xlu0 %4436 }
 0x2ee   : > { %v3866_v4 = vsel %vm226_vm0, %v6999_v13, %v3722_v14  ;;  %v4581_v28 = vsel %vm226_vm0, %v6999_v13, %v4437_v34 }
 0x2f0   : > { %5470 = vmatmul.mubr.msk.bf16.gmra.mxu1 %vm903_vm7, %v4607_v43 }
 0x2f1   : > { %v3834_v21 = vpop.permute.xlu1 %3833  ;;  %5473 = vmatprep.mubr.msk.bf16.mxu1 %vm903_vm7, %v4609_v29  ;;  %v4549_v46 = vpop.permute.xlu0 %4548 }
 0x2f2   : > { %v3898_v55 = vsel %vm863_vm6, %v3866_v4, %v3834_v21  ;;  %v4613_v53 = vsel %vm863_vm6, %v4581_v28, %v4549_v46  ;;  %v2639_v46 = vld [vmem:[#allocation2 + $0x31] sm:$0xff] }
 0x2f3   : > { %5444 = vmatmul.mubr.msk.bf16.gmra.mxu0 %vm903_vm7, %v3898_v55  ;;  %v7473_v55 = vld [vmem:[%s7660_s4] ss:$0 sm:$0xff] }
 0x2f5   : > { %v4551_v0 = vpop.permute.xlu1 %4550  ;;  %v3836_v7 = vpop.permute.xlu0 %3835 }
 0x2f8   : > { %5474 = vmatmul.mubr.msk.bf16.gmra.mxu1 %vm903_vm7, %v4611_v50  ;;  %v2678_v50 = vadd.f32 %v7473_v55, %v2639_v46  ;;  %v2644_v46 = vld [vmem:[#allocation2 + $0x69] sm:$0xff] }
 0x2f9   : > { %v3726_v9 = vpop.permute.xlu1 %3725  ;;  %5477 = vmatprep.mubr.msk.bf16.mxu1 %vm903_vm7, %v4613_v53  ;;  %v4441_v36 = vpop.permute.xlu0 %4440  ;;  %v2640_v53 = vld [vmem:[#allocation2 + $0x39] sm:$0xff] }
 0x2fa   : > { %v3870_v38 = vsel %vm226_vm0, %v7171_v16, %v3726_v9  ;;  %v4585_v31 = vsel %vm226_vm0, %v7171_v16, %v4441_v36 }
 0x2fd   : > { %v4439_v17 = vpop.permute.xlu1 %4438  ;;  %v3724_v61 = vpop.permute.xlu0 %3723 }
 0x2fe   : > { %v4583_v48 = vsel %vm226_vm0, %v7045_v60, %v4439_v17  ;;  %v3868_v52 = vsel %vm226_vm0, %v7045_v60, %v3724_v61  ;;  %v2638_v61 = vld [vmem:[#allocation2 + $0x21] sm:$0xff] }
 0x2ff   : > { %v3900_v54 = vsel %vm863_vm6, %v3868_v52, %v3836_v7  ;;  %v4615_v13 = vsel %vm863_vm6, %v4583_v48, %v4551_v0  ;;  %v2637_v7 = vld [vmem:[#allocation2 + $0x19] sm:$0xff] }
 0x300   : > { %5447 = vmatprep.mubr.msk.bf16.mxu0 %vm903_vm7, %v3900_v54  ;;  %5478 = vmatmul.mubr.msk.bf16.gmra.mxu1 %vm903_vm7, %v4615_v13  ;;  %v2676_v36 = vadd.f32 %v7473_v55, %v2637_v7  ;;  %v2679_v54 = vadd.f32 %v7473_v55, %v2640_v53  ;;  %v2643_v13 = vld [vmem:[#allocation2 + $0x61] sm:$0xff]  ;;  %v2642_v53 = vld [vmem:[#allocation2 + $0x51] sm:$0xff] }
 0x301   : > { %v3838_v63 = vpop.permute.xlu1 %3837  ;;  %v4553_v37 = vpop.permute.xlu0 %4552 }
 0x302   : > { %v3902_v2 = vsel %vm863_vm6, %v3870_v38, %v3838_v63  ;;  %v4617_v60 = vsel %vm863_vm6, %v4585_v31, %v4553_v37  ;;  %v2677_v63 = vadd.f32 %v7473_v55, %v2638_v61  ;;  %v2683_v61 = vadd.f32 %v7473_v55, %v2644_v46 }
 0x303   : > { %5448 = vmatmul.mubr.msk.bf16.gmra.mxu0 %vm903_vm7, %v3902_v2  ;;  %5481 = vmatprep.mubr.msk.bf16.mxu1 %vm903_vm7, %v4617_v60  ;;  %v2641_v2 = vld [vmem:[#allocation2 + $0x49] sm:$0xff] }
 0x305   : > { %v4443_v47 = vpop.permute.xlu1 %4442 }
 0x306   : > { %v4587_v56 = vsel %vm226_vm0, %v7204_v49, %v4443_v47 }
 0x309   : > { %v4555_v35 = vpop.permute.xlu1 %4554 }
 0x30a   : > { %v4619_v25 = vsel %vm863_vm6, %v4587_v56, %v4555_v35 }
 0x30b   : > { %5482 = vmatmul.mubr.msk.bf16.gmra.mxu1 %vm903_vm7, %v4619_v25  ;;  %v2682_v25 = vadd.f32 %v7473_v55, %v2643_v13 }
 0x31c   : > { %v5387_v16 = vpop.f32.mrf.mxu1 }
 0x31d   : > { %v3393_v52 = vadd.f32 %v5387_v16, %v2678_v50 }
 0x31e   : > { %v3264_v1 = vpop.f32.mrf.mxu1 }
 0x31f   : > { %v3391_v31 = vadd.f32 %v3264_v1, %v2676_v36  ;;  %v2680_v1 = vadd.f32 %v7473_v55, %v2641_v2 }
 0x320   : > { %v5388_v40 = vpop.f32.mrf.mxu1 }
 0x321   : > { %v3394_v56 = vadd.f32 %v5388_v40, %v2679_v54 }
 0x322   : > { %v7408_v20 = vpop.f32.mrf.mxu1 }
 0x325   : > { %v5421_v26 = vpop.f32.mrf.mxu0 }
 0x326   : > { %v4109_v37 = vadd.f32 %v5421_v26, %v3393_v52  ;;  %v3392_v26 = vadd.f32 %v7408_v20, %v2677_v63  ;;  %v2681_v20 = vadd.f32 %v7473_v55, %v2642_v53 }
 0x327   : > { %v3980_v62 = vpop.f32.mrf.mxu0 }
 0x328   : > { %v4107_v35 = vadd.f32 %v3980_v62, %v3391_v31  ;;  %v2647_v31 = vld [vmem:[#allocation2 + $0x91] sm:$0xff] }
 0x329   : > { %v5422_v33 = vpop.f32.mrf.mxu0 }
 0x32a   : > { %v4110_v50 = vadd.f32 %v5422_v33, %v3394_v56  ;;  %v2645_v56 = vld [vmem:[#allocation2 + $0x79] sm:$0xff] }
 0x32b   : > { %v3983_v15 = vpop.f32.mrf.mxu0 }
 0x32c   : > { %v4108_v54 = vadd.f32 %v3983_v15, %v3392_v26  ;;  %v2648_v26 = vld [vmem:[#allocation2 + $0x99] sm:$0xff] }
 0x330   : > { %v7410_v44 = vpop.f32.mrf.mxu1 }
 0x331   : > { %v3397_v13 = vadd.f32 %v7410_v44, %v2682_v25  ;;  %v2686_v25 = vadd.f32 %v7473_v55, %v2647_v31 }
 0x332   : > { %v7412_v8 = vpop.f32.mrf.mxu1 }
 0x333   : > { %v3395_v63 = vadd.f32 %v7412_v8, %v2680_v1  ;;  %v2684_v1 = vadd.f32 %v7473_v55, %v2645_v56  ;;  %v2649_v56 = vld [vmem:[#allocation2 + $0xa9] sm:$0xff] }
 0x334   : > { %v7414_v24 = vpop.f32.mrf.mxu1 }
 0x336   : > { %v7416_v51 = vpop.f32.mrf.mxu1 }
 0x33d   : > { %v7438_v27 = vpop.f32.mrf.mxu0 }
 0x33f   : > { %v7442_v11 = vpop.f32.mrf.mxu0 }
 0x341   : > { %v7446_v57 = vpop.f32.mrf.mxu0 }
 0x343   : > { %v7452_v23 = vpop.f32.mrf.mxu0 }
 0x348   : > { %v7418_v42 = vpop.f32.mrf.mxu1 }
 0x349   : > { %v3401_v31 = vadd.f32 %v7418_v42, %v2686_v25 }
 0x34a   : > { %v7420_v49 = vpop.f32.mrf.mxu1 }
 0x34c   : > { %v7422_v30 = vpop.f32.mrf.mxu1 }
 0x34e   : > { %v7424_v58 = vpop.f32.mrf.mxu1 }
 0x355   : > { %v7456_v34 = vpop.f32.mrf.mxu0 }
 0x357   : > { %v7462_v19 = vpop.f32.mrf.mxu0 }
 0x359   : > { %v7468_v21 = vpop.f32.mrf.mxu0 }
 0x35b   : > { %v7480_v28 = vpop.f32.mrf.mxu0 }
 0x360   : > { %v7426_v12 = vpop.f32.mrf.mxu1 }
 0x362   : > { %v7428_v6 = vpop.f32.mrf.mxu1 }
 0x364   : > { %v7430_v45 = vpop.f32.mrf.mxu1 }
 0x366   : > { %v7432_v22 = vpop.f32.mrf.mxu1 }
 0x369   : > { %v7485_v17 = vpop.f32.mrf.mxu0 }
 0x36b   : > { %v7494_v60 = vpop.f32.mrf.mxu0 }
 0x36c   : > { %v7434_v32 = vpop.f32.mrf.mxu1 }
 0x36d   : > { %v7504_v36 = vpop.f32.mrf.mxu0 }
 0x36e   : > { %v7436_v59 = vpop.f32.mrf.mxu1 }
 0x370   : > { %v7440_v10 = vpop.f32.mrf.mxu1 }
 0x372   : > { %v7444_v5 = vpop.f32.mrf.mxu1 }
 0x378   : > { %v7448_v39 = vpop.f32.mrf.mxu1 }
 0x37a   : > { %v7450_v3 = vpop.f32.mrf.mxu1 }
 0x37c   : > { %v7454_v14 = vpop.f32.mrf.mxu1 }
 0x37e   : > { %v7458_v41 = vpop.f32.mrf.mxu1 }
 0x380   : > { %v7460_v43 = vpop.f32.mrf.mxu1 }
 0x382   : > { %v7464_v29 = vpop.f32.mrf.mxu1 }
 0x384   : > { %v7466_v4 = vpop.f32.mrf.mxu1 }
 0x386   : > { %v7475_v0 = vpop.f32.mrf.mxu1 }
 0x388   : > { %v7477_v18 = vpop.f32.mrf.mxu1 }
 0x38a   : > { %v7482_v9 = vpop.f32.mrf.mxu1 }
 0x38c   : > { %v7487_v48 = vpop.f32.mrf.mxu1 }
 0x38e   : > { %v7490_v38 = vpop.f32.mrf.mxu1 }
 0x390   : > { %v5455_v47 = vpop.f32.mrf.mxu1 }
 0x391   : > { %v4826_v16 = vadd.f32 %v5455_v47, %v4109_v37  ;;  %v4113_v47 = vadd.f32 %v7438_v27, %v3397_v13 }
 0x392   : > { %v4697_v7 = vpop.f32.mrf.mxu1 }
 0x393   : > { %v4858_v40 = vmax.f32 %v4826_v16, 0.0  ;;  %v4824_v62 = vadd.f32 %v4697_v7, %v4107_v35  ;;  %v7513_v35 = vpop.f32.mrf.mxu0  ;;  %v3398_v16 = vadd.f32 %v7414_v24, %v2683_v61  ;;  %v4111_v7 = vadd.f32 %v7442_v11, %v3395_v63 }
 0x394   : > { %v5456_v52 = vpop.f32.mrf.mxu1  ;;  %v2687_v61 = vadd.f32 %v7473_v55, %v2648_v26  ;;  %v3399_v63 = vadd.f32 %v7420_v49, %v2684_v1  ;;  %v2688_v26 = vadd.f32 %v7473_v55, %v2649_v56  ;;  %v2656_v56 = vld [vmem:[#allocation2 + $0xf9] sm:$0xff] }
 0x395   : > { %4890 = vst.msk [vmem:[%s7500_s22 + $0x10] sm:$0xff] %vm226_vm0, %v4858_v40  ;;  %v4856_v37 = vmax.f32 %v4824_v62, 0.0  ;;  %v4827_v2 = vadd.f32 %v5456_v52, %v4110_v50  ;;  %v7520_v50 = vpop.f32.mrf.mxu0  ;;  %v3396_v40 = vadd.f32 %v7416_v51, %v2681_v20  ;;  %v4114_v62 = vadd.f32 %v7446_v57, %v3398_v16  ;;  %v2646_v52 = vld [vmem:[#allocation2 + $0x81] sm:$0xff]  ;;  %v2652_v16 = vld [vmem:[#allocation2 + $0xc9] sm:$0xff] }
 0x396   : > { %v4700_v33 = vpop.f32.mrf.mxu1  ;;  %v2685_v20 = vadd.f32 %v7473_v55, %v2646_v52  ;;  %v3402_v25 = vadd.f32 %v7422_v30, %v2687_v61 }
 0x397   : > { %4888 = vst.msk [vmem:[%s7500_s22] sm:$0xff] %vm226_vm0, %v4856_v37  ;;  %v4859_v15 = vmax.f32 %v4827_v2, 0.0  ;;  %v4825_v44 = vadd.f32 %v4700_v33, %v4108_v54  ;;  %v4112_v13 = vadd.f32 %v7452_v23, %v3396_v40  ;;  %v2651_v37 = vld [vmem:[#allocation2 + $0xc1] sm:$0xff]  ;;  %v7532_v2 = vpop.f32.mrf.mxu0  ;;  %v2691_v40 = vadd.f32 %v7473_v55, %v2652_v16 }
 0x398   : > { %v5459_v46 = vpop.f32.mrf.mxu1  ;;  %v4118_v1 = vadd.f32 %v7468_v21, %v3402_v25  ;;  %v2654_v25 = vld [vmem:[#allocation2 + $0xe1] sm:$0xff]  ;;  %v2695_v16 = vadd.f32 %v7473_v55, %v2656_v56 }
 0x399   : > { %4891 = vst.msk [vmem:[%s7500_s22 + $0x18] sm:$0xff] %vm226_vm0, %v4859_v15  ;;  %v4857_v8 = vmax.f32 %v4825_v44, 0.0  ;;  %v4830_v27 = vadd.f32 %v5459_v46, %v4113_v47  ;;  %v4117_v47 = vadd.f32 %v7456_v34, %v3401_v31  ;;  %v2690_v15 = vadd.f32 %v7473_v55, %v2651_v37 }
 0x39a   : > { %v4713_v53 = vpop.f32.mrf.mxu1  ;;  %v4115_v46 = vadd.f32 %v7462_v19, %v3399_v63  ;;  %v3403_v31 = vadd.f32 %v7428_v6, %v2688_v26  ;;  %v3406_v63 = vadd.f32 %v7430_v45, %v2691_v40 }
 0x39b   : > { %4889 = vst.msk [vmem:[%s7500_s22 + $0x8] sm:$0xff] %vm226_vm0, %v4857_v8  ;;  %v4862_v24 = vmax.f32 %v4830_v27, 0.0  ;;  %v4828_v11 = vadd.f32 %v4713_v53, %v4111_v7  ;;  %v7544_v7 = vpop.f32.mrf.mxu0  ;;  %v3400_v27 = vadd.f32 %v7424_v58, %v2685_v20  ;;  %v2650_v53 = vld [vmem:[#allocation2 + $0xb1] sm:$0xff] }
 0x39c   : > { %v5460_v54 = vpop.f32.mrf.mxu1 }
 0x39d   : > { %4894 = vst.msk [vmem:[%s7500_s22 + $0x30] sm:$0xff] %vm226_vm0, %v4862_v24  ;;  %v4860_v51 = vmax.f32 %v4828_v11, 0.0  ;;  %v4831_v57 = vadd.f32 %v5460_v54, %v4114_v62  ;;  %v4116_v52 = vadd.f32 %v7480_v28, %v3400_v27  ;;  %v3405_v24 = vadd.f32 %v7426_v12, %v2690_v15  ;;  %v2655_v11 = vld [vmem:[#allocation2 + $0xf1] sm:$0xff]  ;;  %v7556_v61 = vpop.f32.mrf.mxu0 }
 0x39e   : > { %v4716_v33 = vpop.f32.mrf.mxu1  ;;  %v2689_v54 = vadd.f32 %v7473_v55, %v2650_v53  ;;  %v2694_v20 = vadd.f32 %v7473_v55, %v2655_v11  ;;  %v2693_v27 = vadd.f32 %v7473_v55, %v2654_v25  ;;  %v2660_v11 = vld [vmem:[#allocation2 + $0x129] sm:$0xff] }
 0x39f   : > { %4892 = vst.msk [vmem:[%s7500_s22 + $0x20] sm:$0xff] %vm226_vm0, %v4860_v51  ;;  %v4863_v23 = vmax.f32 %v4831_v57, 0.0  ;;  %v4829_v42 = vadd.f32 %v4716_v33, %v4112_v13  ;;  %v4121_v37 = vadd.f32 %v7485_v17, %v3405_v24  ;;  %v2653_v51 = vld [vmem:[#allocation2 + $0xd9] sm:$0xff]  ;;  %v3410_v24 = vadd.f32 %v7440_v10, %v2695_v16 }
 0x3a0   : > { %v5463_v44 = vpop.f32.mrf.mxu1  ;;  %v3404_v15 = vadd.f32 %v7432_v22, %v2689_v54 }
 0x3a1   : > { %4895 = vst.msk [vmem:[%s7500_s22 + $0x38] sm:$0xff] %vm226_vm0, %v4863_v23  ;;  %v4861_v49 = vmax.f32 %v4829_v42, 0.0  ;;  %v4834_v34 = vadd.f32 %v5463_v44, %v4117_v47  ;;  %v4119_v47 = vadd.f32 %v7494_v60, %v3403_v31  ;;  %v2692_v23 = vadd.f32 %v7473_v55, %v2653_v51  ;;  %v2658_v31 = vld [vmem:[#allocation2 + $0x111] sm:$0xff] }
 0x3a2   : > { %v4729_v8 = vpop.f32.mrf.mxu1  ;;  %v4122_v44 = vadd.f32 %v7504_v36, %v3406_v63  ;;  %v4120_v26 = vadd.f32 %v7513_v35, %v3404_v15  ;;  %v2697_v56 = vadd.f32 %v7473_v55, %v2658_v31  ;;  %v2665_v31 = vld [vmem:[#allocation2 + $0x169] sm:$0xff] }
 0x3a3   : > { %4893 = vst.msk [vmem:[%s7500_s22 + $0x28] sm:$0xff] %vm226_vm0, %v4861_v49  ;;  %v4866_v30 = vmax.f32 %v4834_v34, 0.0  ;;  %v4832_v19 = vadd.f32 %v4729_v8, %v4115_v46  ;;  %v7565_v28 = vpop.f32.mrf.mxu0  ;;  %v3409_v34 = vadd.f32 %v7434_v32, %v2694_v20  ;;  %v2659_v8 = vld [vmem:[#allocation2 + $0x121] sm:$0xff]  ;;  %v3407_v53 = vadd.f32 %v7436_v59, %v2692_v23  ;;  %v2661_v23 = vld [vmem:[#allocation2 + $0x139] sm:$0xff] }
 0x3a4   : > { %v5464_v62 = vpop.f32.mrf.mxu1 }
 0x3a5   : > { %4898 = vst.msk [vmem:[%s7500_s22 + $0x50] sm:$0xff] %vm226_vm0, %v4866_v30  ;;  %v4864_v58 = vmax.f32 %v4832_v19, 0.0  ;;  %v4835_v21 = vadd.f32 %v5464_v62, %v4118_v1  ;;  %v4060_v46 = vpop.f32.mrf.mxu0  ;;  %v2657_v30 = vld [vmem:[#allocation2 + $0x109] sm:$0xff]  ;;  %v4125_v19 = vadd.f32 %v7520_v50, %v3409_v34  ;;  %v2698_v62 = vadd.f32 %v7473_v55, %v2659_v8  ;;  %v2662_v8 = vld [vmem:[#allocation2 + $0x141] sm:$0xff] }
 0x3a6   : > { %v4732_v13 = vpop.f32.mrf.mxu1  ;;  %v2696_v50 = vadd.f32 %v7473_v55, %v2657_v30 }
 0x3a7   : > { %4896 = vst.msk [vmem:[%s7500_s22 + $0x40] sm:$0xff] %vm226_vm0, %v4864_v58  ;;  %v4867_v12 = vmax.f32 %v4835_v21, 0.0  ;;  %v4833_v57 = vadd.f32 %v4732_v13, %v4116_v52  ;;  %v5442_v40 = vpop.f32.mrf.mxu0  ;;  %v4123_v58 = vadd.f32 %v7532_v2, %v3407_v53  ;;  %v3408_v13 = vadd.f32 %v7444_v5, %v2693_v27 }
 0x3a8   : > { %v5467_v33 = vpop.f32.mrf.mxu1  ;;  %v2699_v2 = vadd.f32 %v7473_v55, %v2660_v11  ;;  %v3413_v20 = vadd.f32 %v7448_v39, %v2698_v62 }
 0x3a9   : > { %4899 = vst.msk [vmem:[%s7500_s22 + $0x58] sm:$0xff] %vm226_vm0, %v4867_v12  ;;  %v4865_v6 = vmax.f32 %v4833_v57, 0.0  ;;  %v4838_v17 = vadd.f32 %v5467_v33, %v4121_v37  ;;  %v4126_v37 = vadd.f32 %v7544_v7, %v3410_v24  ;;  %v4063_v51 = vpop.f32.mrf.mxu0  ;;  %v2663_v33 = vld [vmem:[#allocation2 + $0x151] sm:$0xff]  ;;  %v4124_v63 = vadd.f32 %v7556_v61, %v3408_v13 }
 0x3aa   : > { %v4745_v42 = vpop.f32.mrf.mxu1  ;;  %v2702_v61 = vadd.f32 %v7473_v55, %v2663_v33  ;;  %v3414_v25 = vadd.f32 %v7454_v14, %v2699_v2 }
 0x3ab   : > { %4897 = vst.msk [vmem:[%s7500_s22 + $0x48] sm:$0xff] %vm226_vm0, %v4865_v6  ;;  %v4870_v45 = vmax.f32 %v4838_v17, 0.0  ;;  %v4836_v60 = vadd.f32 %v4745_v42, %v4119_v47  ;;  %v3411_v17 = vadd.f32 %v7450_v3, %v2696_v50  ;;  %v4129_v42 = vadd.f32 %v7565_v28, %v3413_v20 }
 0x3ac   : > { %v5468_v49 = vpop.f32.mrf.mxu1  ;;  %v2700_v28 = vadd.f32 %v7473_v55, %v2661_v23 }
 0x3ad   : > { %4902 = vst.msk [vmem:[%s7500_s22 + $0x70] sm:$0xff] %vm226_vm0, %v4870_v45  ;;  %v4868_v22 = vmax.f32 %v4836_v60, 0.0  ;;  %v4839_v36 = vadd.f32 %v5468_v49, %v4122_v44  ;;  %v2664_v45 = vld [vmem:[#allocation2 + $0x159] sm:$0xff]  ;;  %v4127_v60 = vadd.f32 %v4060_v46, %v3411_v17 }
 0x3ae   : > { %v4748_v1 = vpop.f32.mrf.mxu1  ;;  %v2703_v46 = vadd.f32 %v7473_v55, %v2664_v45 }
 0x3af   : > { %4900 = vst.msk [vmem:[%s7500_s22 + $0x60] sm:$0xff] %vm226_vm0, %v4868_v22  ;;  %v4871_v32 = vmax.f32 %v4839_v36, 0.0  ;;  %v4837_v35 = vadd.f32 %v4748_v1, %v4120_v26  ;;  %v3412_v26 = vadd.f32 %v7458_v41, %v2697_v56  ;;  %v4130_v22 = vadd.f32 %v5442_v40, %v3414_v25 }
 0x3b0   : > { %v5471_v52 = vpop.f32.mrf.mxu1  ;;  %v3417_v1 = vadd.f32 %v7460_v43, %v2702_v61  ;;  %v2701_v41 = vadd.f32 %v7473_v55, %v2662_v8  ;;  %v3418_v43 = vadd.f32 %v7466_v4, %v2703_v46 }
 0x3b1   : > { %4903 = vst.msk [vmem:[%s7500_s22 + $0x78] sm:$0xff] %vm226_vm0, %v4871_v32  ;;  %v4869_v59 = vmax.f32 %v4837_v35, 0.0  ;;  %v4842_v21 = vadd.f32 %v5471_v52, %v4125_v19  ;;  %v4128_v53 = vadd.f32 %v4063_v51, %v3412_v26  ;;  %v3415_v35 = vadd.f32 %v7464_v29, %v2700_v28 }
 0x3b2   : > { %v4761_v54 = vpop.f32.mrf.mxu1  ;;  %v3416_v29 = vadd.f32 %v7475_v0, %v2701_v41 }
 0x3b3   : > { %4901 = vst.msk [vmem:[%s7500_s22 + $0x68] sm:$0xff] %vm226_vm0, %v4869_v59  ;;  %v4874_v10 = vmax.f32 %v4842_v21, 0.0  ;;  %v4840_v12 = vadd.f32 %v4761_v54, %v4123_v58  ;;  %v5445_v47 = vpop.f32.mrf.mxu0  ;;  %v2667_v58 = vld [vmem:[#allocation2 + $0x181] sm:$0xff] }
 0x3b4   : > { %v5472_v57 = vpop.f32.mrf.mxu1  ;;  %v4133_v62 = vadd.f32 %v5445_v47, %v3417_v1  ;;  %v2706_v4 = vadd.f32 %v7473_v55, %v2667_v58 }
 0x3b5   : > { %4906 = vst.msk [vmem:[%s7500_s22 + $0x90] sm:$0xff] %vm226_vm0, %v4874_v10  ;;  %v4872_v5 = vmax.f32 %v4840_v12, 0.0  ;;  %v4843_v7 = vadd.f32 %v5472_v57, %v4126_v37  ;;  %v4076_v16 = vpop.f32.mrf.mxu0  ;;  %v2668_v57 = vld [vmem:[#allocation2 + $0x189] sm:$0xff] }
 0x3b6   : > { %v4764_v6 = vpop.f32.mrf.mxu1  ;;  %v4131_v59 = vadd.f32 %v4076_v16, %v3415_v35  ;;  %v3421_v17 = vadd.f32 %v7477_v18, %v2706_v4  ;;  %v2707_v23 = vadd.f32 %v7473_v55, %v2668_v57 }
 0x3b7   : > { %4904 = vst.msk [vmem:[%s7500_s22 + $0x80] sm:$0xff] %vm226_vm0, %v4872_v5  ;;  %v4875_v39 = vmax.f32 %v4843_v7, 0.0  ;;  %v4841_v15 = vadd.f32 %v4764_v6, %v4124_v63  ;;  %v5446_v30 = vpop.f32.mrf.mxu0  ;;  %v2704_v5 = vadd.f32 %v7473_v55, %v2665_v31  ;;  %v2666_v7 = vld [vmem:[#allocation2 + $0x171] sm:$0xff] }
 0x3b8   : > { %v5475_v44 = vpop.f32.mrf.mxu1  ;;  %v4134_v37 = vadd.f32 %v5446_v30, %v3418_v43  ;;  %v2705_v61 = vadd.f32 %v7473_v55, %v2666_v7  ;;  %v3422_v45 = vadd.f32 %v7487_v48, %v2707_v23 }
 0x3b9   : > { %4907 = vst.msk [vmem:[%s7500_s22 + $0x98] sm:$0xff] %vm226_vm0, %v4875_v39  ;;  %v4873_v3 = vmax.f32 %v4841_v15, 0.0  ;;  %v4846_v49 = vadd.f32 %v5475_v44, %v4129_v42  ;;  %v4079_v21 = vpop.f32.mrf.mxu0  ;;  %v3419_v15 = vadd.f32 %v7482_v9, %v2704_v5 }
 0x3ba   : > { %v4777_v34 = vpop.f32.mrf.mxu1  ;;  %v4132_v20 = vadd.f32 %v4079_v21, %v3416_v29 }
 0x3bb   : > { %4905 = vst.msk [vmem:[%s7500_s22 + $0x88] sm:$0xff] %vm226_vm0, %v4873_v3  ;;  %v4878_v36 = vmax.f32 %v4846_v49, 0.0  ;;  %v4844_v14 = vadd.f32 %v4777_v34, %v4127_v60  ;;  %v3420_v49 = vadd.f32 %v7490_v38, %v2705_v61 }
 0x3bc   : > { %v5476_v27 = vpop.f32.mrf.mxu1 }
 0x3bd   : > { %4910 = vst.msk [vmem:[%s7500_s22 + $0xb0] sm:$0xff] %vm226_vm0, %v4878_v36  ;;  %v4876_v19 = vmax.f32 %v4844_v14, 0.0  ;;  %v4847_v32 = vadd.f32 %v5476_v27, %v4130_v22 }
 0x3be   : > { %v4780_v40 = vpop.f32.mrf.mxu1 }
 0x3bf   : > { %4908 = vst.msk [vmem:[%s7500_s22 + $0xa0] sm:$0xff] %vm226_vm0, %v4876_v19  ;;  %v4879_v52 = vmax.f32 %v4847_v32, 0.0  ;;  %v4845_v24 = vadd.f32 %v4780_v40, %v4128_v53 }
 0x3c0   : > { %v5479_v11 = vpop.f32.mrf.mxu1 }
 0x3c1   : > { %4911 = vst.msk [vmem:[%s7500_s22 + $0xb8] sm:$0xff] %vm226_vm0, %v4879_v52  ;;  %v4877_v50 = vmax.f32 %v4845_v24, 0.0  ;;  %v4850_v54 = vadd.f32 %v5479_v11, %v4133_v62 }
 0x3c2   : > { %v4793_v13 = vpop.f32.mrf.mxu1 }
 0x3c3   : > { %4909 = vst.msk [vmem:[%s7500_s22 + $0xa8] sm:$0xff] %vm226_vm0, %v4877_v50  ;;  %v4882_v51 = vmax.f32 %v4850_v54, 0.0  ;;  %v4848_v10 = vadd.f32 %v4793_v13, %v4131_v59  ;;  %v5449_v12 = vpop.f32.mrf.mxu0 }
 0x3c4   : > { %v5480_v2 = vpop.f32.mrf.mxu1  ;;  %v4137_v44 = vadd.f32 %v5449_v12, %v3421_v17 }
 0x3c5   : > { %4914 = vst.msk [vmem:[%s7500_s22 + $0xd0] sm:$0xff] %vm226_vm0, %v4882_v51  ;;  %v4880_v33 = vmax.f32 %v4848_v10, 0.0  ;;  %v4851_v63 = vadd.f32 %v5480_v2, %v4134_v37  ;;  %v4092_v0 = vpop.f32.mrf.mxu0 }
 0x3c6   : > { %v4796_v47 = vpop.f32.mrf.mxu1  ;;  %v4135_v60 = vadd.f32 %v4092_v0, %v3419_v15 }
 0x3c7   : > { %4912 = vst.msk [vmem:[%s7500_s22 + $0xc0] sm:$0xff] %vm226_vm0, %v4880_v33  ;;  %v4883_v56 = vmax.f32 %v4851_v63, 0.0  ;;  %v4849_v6 = vadd.f32 %v4796_v47, %v4132_v20  ;;  %v5450_v39 = vpop.f32.mrf.mxu0 }
 0x3c8   : > { %v4138_v28 = vadd.f32 %v5450_v39, %v3422_v45 }
 0x3c9   : > { %4915 = vst.msk [vmem:[%s7500_s22 + $0xd8] sm:$0xff] %vm226_vm0, %v4883_v56  ;;  %v4881_v42 = vmax.f32 %v4849_v6, 0.0  ;;  %v4095_v16 = vpop.f32.mrf.mxu0 }
 0x3ca   : > { %v4136_v55 = vadd.f32 %v4095_v16, %v3420_v49 }
 0x3cb   : > { %4913 = vst.msk [vmem:[%s7500_s22 + $0xc8] sm:$0xff] %vm226_vm0, %v4881_v42  ;;  %v5483_v25 = vpop.f32.mrf.mxu1 }
 0x3cc   : > { %v4854_v18 = vadd.f32 %v5483_v25, %v4137_v44 }
 0x3cd   : > { %v4809_v3 = vpop.f32.mrf.mxu1 }
 0x3ce   : > { %v4886_v9 = vmax.f32 %v4854_v18, 0.0  ;;  %v4852_v34 = vadd.f32 %v4809_v3, %v4135_v60 }
 0x3cf   : > { %v5484_v26 = vpop.f32.mrf.mxu1 }
 0x3d0   : > { %4918 = vst.msk [vmem:[%s7500_s22 + $0xf0] sm:$0xff] %vm226_vm0, %v4886_v9  ;;  %v4884_v8 = vmax.f32 %v4852_v34, 0.0  ;;  %v4855_v22 = vadd.f32 %v5484_v26, %v4138_v28 }
 0x3d1   : > { %v4812_v36 = vpop.f32.mrf.mxu1 }
 0x3d2   : > { %4916 = vst.msk [vmem:[%s7500_s22 + $0xe0] sm:$0xff] %vm226_vm0, %v4884_v8  ;;  %v4887_v48 = vmax.f32 %v4855_v22, 0.0  ;;  %v4853_v14 = vadd.f32 %v4812_v36, %v4136_v55 }
 0x3d4   : > { %4919 = vst.msk [vmem:[%s7500_s22 + $0xf8] sm:$0xff] %vm226_vm0, %v4887_v48  ;;  %v4885_v46 = vmax.f32 %v4853_v14, 0.0 }
 0x3d6   : > { %4917 = vst.msk [vmem:[%s7500_s22 + $0xe8] sm:$0xff] %vm226_vm0, %v4885_v46 }
 0x3d7 PF: > { %s15_s18 = sadd.s32 1, %s5514_s18  }
 0x3d8   : > { %p12_p4 = scmp.ge.s32.totalorder %s15_s18, 4  }
 0x3da   :  { %14 = sbr.rel (!%p12_p4) target bundleno = 1 (0x1), region = 80 }

</bundles_post_ra>
